<compile_context>
chip_gen: v5e
topology: v5e:2x2
jax: 0.10.0
libtpu: 0.0.40
codegen_flags: <defaults>
</compile_context>

<pallas_src>
import functools

import jax
import jax.numpy as jnp
from jax.experimental import pallas as pl
from jax.experimental.pallas import tpu as pltpu


# ----------------------------------------------------------------------------
# Pallas kernels
# ----------------------------------------------------------------------------
def _decoder_lin_kernel(xt_ref, w1_ref, b1_ref, w2_ref, b2_ref, o_ref):
    """o = relu(W2 @ relu(W1 @ x^T + b1) + b2); channel-major, lane axis = N."""
    h = jnp.dot(w1_ref[...], xt_ref[...], preferred_element_type=jnp.float32)
    h = jnp.maximum(h + b1_ref[...], 0.0)
    y = jnp.dot(w2_ref[...], h.astype(w2_ref.dtype),
                preferred_element_type=jnp.float32)
    o_ref[...] = jnp.maximum(y + b2_ref[...], 0.0).astype(o_ref.dtype)


def _deconv_bn_stats_kernel(w_ref, b_ref, mask_ref, x_ref, y_ref,
                            sum_ref, sq_ref, *, offsets):
    """One group of samples: 9 accumulating taps, lane-dense [Cout, GLp] out.

    Also emits this group's per-channel masked sum / sum-of-squares so the
    following BatchNorm needs no extra pass over the activation."""
    co, glp = y_ref.shape
    acc = jnp.zeros((co, glp), jnp.float32)
    for t, off in enumerate(offsets):                       # static unroll (k*k)
        acc = acc + jnp.dot(w_ref[t], x_ref[0, :, off:off + glp],
                            preferred_element_type=jnp.float32)
    y = acc + b_ref[...]
    y_ref[...] = y.astype(y_ref.dtype)                      # bf16 writeback
    ym = y * mask_ref[...]                                  # drop over-compute lanes
    sum_ref[...] = jnp.sum(ym, axis=1, keepdims=True)[None]
    sq_ref[...] = jnp.sum(ym * ym, axis=1, keepdims=True)[None]


def _deconv_sigmoid_kernel(w_ref, b_ref, x_ref, y_ref, *, offsets):
    """Final ConvTranspose2d (Cout=1, padded to 8 MXU rows) + sigmoid."""
    glp = y_ref.shape[-1]
    co = w_ref.shape[1]
    acc = jnp.zeros((co, glp), jnp.float32)
    for t, off in enumerate(offsets):
        acc = acc + jnp.dot(w_ref[t], x_ref[0, :, off:off + glp],
                            preferred_element_type=jnp.float32)
    y = acc + b_ref[...]
    y_ref[...] = jax.nn.sigmoid(y[0:1])                     # only real row stored


# ----------------------------------------------------------------------------
# Helpers
# ----------------------------------------------------------------------------
def _round_up(x, m):
    return -(-x // m) * m


def _pick_group(n, lp, lane_tile):
    """Largest divisor of n with G*Lp <= lane_tile and >= 2 grid steps (n>=2)."""
    gmax = max(1, lane_tile // lp)
    if n >= 2:
        gmax = max(1, min(gmax, n // 2))
    for g in range(gmax, 0, -1):
        if n % g == 0:
            return g
    return 1


# ----------------------------------------------------------------------------
# Pallas wrappers
# ----------------------------------------------------------------------------
def fused_decoder_lin(x, w1, b1, w2, b2, *, lane_tile=512):
    """x: [N, D]; w1: [H1, D], w2: [H2, H1] (PyTorch [out,in]) -> [H2, N] bf16."""
    N, D = x.shape
    H1, H2 = w1.shape[0], w2.shape[0]
    tn = N if N <= lane_tile else lane_tile
    return pl.pallas_call(
        _decoder_lin_kernel,
        out_shape=jax.ShapeDtypeStruct((H2, N), jnp.bfloat16),
        grid=(pl.cdiv(N, tn),),
        in_specs=[
            pl.BlockSpec((D, tn), lambda i: (0, i)),     # x^T tile (lane = batch)
            pl.BlockSpec((H1, D), lambda i: (0, 0)),     # weights: VMEM resident
            pl.BlockSpec((H1, 1), lambda i: (0, 0)),
            pl.BlockSpec((H2, H1), lambda i: (0, 0)),
            pl.BlockSpec((H2, 1), lambda i: (0, 0)),
        ],
        out_specs=pl.BlockSpec((H2, tn), lambda i: (0, i)),
        compiler_params=pltpu.CompilerParams(
            dimension_semantics=("parallel",)),
    )(x.T.astype(jnp.bfloat16),
      w1.astype(jnp.bfloat16), b1.reshape(H1, 1).astype(jnp.float32),
      w2.astype(jnp.bfloat16), b2.reshape(H2, 1).astype(jnp.float32))


def conv_transpose_pallas(act, w_pt, bias, *, stride, padding, output_padding,
                          bn=None, eps=1e-5, lane_tile=2048):
    """ConvTranspose2d with fused in-kernel im2col.

    act:  [Cin, N, H, W]  (channel-major)
    w_pt: PyTorch ConvTranspose2d weight [Cin, Cout, k, k]
    bn = (gamma, beta): training-mode BatchNorm2d + ReLU applied, returns
         compact [Cout, N, Hout, Wout] bf16.
    bn = None: sigmoid applied, returns [N, 1, Hout, Wout] f32 (final layer).
    """
    Cin, N, H, W = act.shape
    Cout, k = w_pt.shape[1], w_pt.shape[2]
    s, p, op = stride, padding, output_padding
    lo, hi = k - 1 - p, k - 1 - p + op
    Hp = (H - 1) * s + 1 + lo + hi
    Wp = (W - 1) * s + 1 + lo + hi
    Hout, Wout = Hp - k + 1, Wp - k + 1
    o_max = (k - 1) * Wp + (k - 1)
    Lp = _round_up(Hp * Wp + o_max, 128)       # per-sample flat window (128-mult)
    G = _pick_group(N, Lp, lane_tile)
    NG, GLp = N // G, G * Lp

    # Dilate + pad + flatten + per-sample pad + group (+128-lane zero margin so
    # tap slices never leave the block).  One XLA-fused data-movement pass.
    xp = jax.lax.pad(act.astype(jnp.bfloat16), jnp.zeros((), jnp.bfloat16),
                     [(0, 0, 0), (0, 0, 0), (lo, hi, s - 1), (lo, hi, s - 1)])
    flat = jnp.pad(xp.reshape(Cin, N, Hp * Wp),
                   ((0, 0), (0, 0), (0, Lp - Hp * Wp)))
    xblk = jnp.pad(flat.reshape(Cin, NG, GLp), ((0, 0), (0, 0), (0, 128)))
    xblk = jnp.transpose(xblk, (1, 0, 2))                 # [NG, Cin, GLp+128]

    # Flipped / transposed weight taps [k*k, co, Cin] and bias [co, 1].
    co = _round_up(Cout, 8)
    wflip = jnp.transpose(w_pt, (1, 0, 2, 3))[:, :, ::-1, ::-1]   # [Cout,Cin,k,k]
    w_taps = jnp.transpose(wflip, (2, 3, 0, 1)).reshape(k * k, Cout, Cin)
    b_col = bias.reshape(Cout, 1)
    if co != Cout:
        w_taps = jnp.pad(w_taps, ((0, 0), (0, co - Cout), (0, 0)))
        b_col = jnp.pad(b_col, ((0, co - Cout), (0, 0)))
    w_taps = w_taps.astype(jnp.bfloat16)
    b_col = b_col.astype(jnp.float32)
    offsets = tuple(di * Wp + dj for di in range(k) for dj in range(k))

    x_spec = pl.BlockSpec((1, Cin, GLp + 128), lambda g: (g, 0, 0))
    w_spec = pl.BlockSpec((k * k, co, Cin), lambda g: (0, 0, 0))
    b_spec = pl.BlockSpec((co, 1), lambda g: (0, 0))
    cparams = pltpu.CompilerParams(dimension_semantics=("parallel",))

    if bn is not None:
        # Per-sample validity mask (over-compute lanes excluded from BN stats).
        m = jnp.arange(Lp)
        msk = (((m // Wp) < Hout) & ((m % Wp) < Wout)).astype(jnp.float32)
        msk = jnp.tile(msk, G)[None, :]                   # [1, GLp]
        y_wide, ssum, ssq = pl.pallas_call(
            functools.partial(_deconv_bn_stats_kernel, offsets=offsets),
            out_shape=(jax.ShapeDtypeStruct((co, N * Lp), jnp.bfloat16),
                       jax.ShapeDtypeStruct((NG, co, 1), jnp.float32),
                       jax.ShapeDtypeStruct((NG, co, 1), jnp.float32)),
            grid=(NG,),
            in_specs=[w_spec, b_spec,
                      pl.BlockSpec((1, GLp), lambda g: (0, 0)),
                      x_spec],
            out_specs=(pl.BlockSpec((co, GLp), lambda g: (0, g)),
                       pl.BlockSpec((1, co, 1), lambda g: (g, 0, 0)),
                       pl.BlockSpec((1, co, 1), lambda g: (g, 0, 0))),
            compiler_params=cparams,
        )(w_taps, b_col, msk, xblk)

        # Training-mode BatchNorm2d (biased batch variance) + ReLU, applied as a
        # per-channel affine in the XLA glue (fuses with next-layer input prep).
        gamma, beta = bn
        cnt = float(N * Hout * Wout)
        mean = jnp.sum(ssum[:, :Cout, 0], axis=0) / cnt
        var = jnp.maximum(jnp.sum(ssq[:, :Cout, 0], axis=0) / cnt - mean * mean,
                          0.0)
        scale = gamma * jax.lax.rsqrt(var + eps)
        shift = beta - mean * scale
        yc = y_wide[:Cout].astype(jnp.float32).reshape(Cout, N, Lp)
        yc = yc[:, :, :Hout * Wp].reshape(Cout, N, Hout, Wp)[:, :, :, :Wout]
        out = jnp.maximum(yc * scale[:, None, None, None]
                          + shift[:, None, None, None], 0.0)
        return out.astype(jnp.bfloat16)                   # [Cout, N, Hout, Wout]

    y_wide = pl.pallas_call(
        functools.partial(_deconv_sigmoid_kernel, offsets=offsets),
        out_shape=jax.ShapeDtypeStruct((1, N * Lp), jnp.float32),
        grid=(NG,),
        in_specs=[w_spec, b_spec, x_spec],
        out_specs=pl.BlockSpec((1, GLp), lambda g: (0, g)),
        compiler_params=cparams,
    )(w_taps, b_col, xblk)
    yc = y_wide.reshape(N, Lp)[:, :Hout * Wp]
    yc = yc.reshape(N, Hout, Wp)[:, :, :Wout]
    return yc[:, None]                                    # [N, 1, Hout, Wout]


# ----------------------------------------------------------------------------
# Decoder parameters (deterministic synthetic init) and forward pass
# ----------------------------------------------------------------------------
def init_decoder_params(key, encoded_space_dim):
    ks = jax.random.split(key, 10)

    def u(k, shape, fan_in):
        bound = 1.0 / jnp.sqrt(fan_in)
        return jax.random.uniform(k, shape, jnp.float32, -bound, bound)

    return {
        # decoder_lin
        "lin1_w": u(ks[0], (128, encoded_space_dim), encoded_space_dim),
        "lin1_b": u(ks[1], (128,), encoded_space_dim),
        "lin2_w": u(ks[2], (3 * 3 * 32, 128), 128),
        "lin2_b": u(ks[3], (3 * 3 * 32,), 128),
        # decoder_conv
        "conv1_w": u(ks[4], (32, 16, 3, 3), 32 * 9),   # ConvTranspose2d(32, 16, 3)
        "conv1_b": u(ks[5], (16,), 32 * 9),
        "bn1_g": jnp.ones((16,), jnp.float32),
        "bn1_b": jnp.zeros((16,), jnp.float32),
        "conv2_w": u(ks[6], (16, 8, 3, 3), 16 * 9),    # ConvTranspose2d(16, 8, 3)
        "conv2_b": u(ks[7], (8,), 16 * 9),
        "bn2_g": jnp.ones((8,), jnp.float32),
        "bn2_b": jnp.zeros((8,), jnp.float32),
        "conv3_w": u(ks[8], (8, 1, 3, 3), 8 * 9),      # ConvTranspose2d(8, 1, 3)
        "conv3_b": u(ks[9], (1,), 8 * 9),
    }


def decoder_forward(x, params):
    N = x.shape[0]

    # decoder_lin: Linear -> ReLU -> Linear -> ReLU, one kernel, channel-major.
    h = fused_decoder_lin(x, params["lin1_w"], params["lin1_b"],
                          params["lin2_w"], params["lin2_b"])        # [288, N]

    # Unflatten(1, (32, 3, 3)) in channel-major [C, N, H, W] (tiny tensor).
    act = jnp.transpose(h.reshape(32, 9, N), (0, 2, 1)).reshape(32, N, 3, 3)

    # ConvTranspose2d(32, 16, 3, stride=2) + BatchNorm2d(16) + ReLU
    a1 = conv_transpose_pallas(act, params["conv1_w"], params["conv1_b"],
                               stride=2, padding=0, output_padding=0,
                               bn=(params["bn1_g"], params["bn1_b"]))
    # -> [16, N, 7, 7]

    # ConvTranspose2d(16, 8, 3, stride=2, padding=1, output_padding=1) + BN + ReLU
    a2 = conv_transpose_pallas(a1, params["conv2_w"], params["conv2_b"],
                               stride=2, padding=1, output_padding=1,
                               bn=(params["bn2_g"], params["bn2_b"]))
    # -> [8, N, 14, 14]

    # ConvTranspose2d(8, 1, 3, stride=2, padding=1, output_padding=1) + sigmoid
    out = conv_transpose_pallas(a2, params["conv3_w"], params["conv3_b"],
                                stride=2, padding=1, output_padding=1,
                                bn=None)                             # [N,1,28,28]
    return out


if __name__ == "__main__":
    encoded_space_dim = 4
    batch = 2

    key = jax.random.PRNGKey(0)
    k_params, k_x = jax.random.split(key)
    params = init_decoder_params(k_params, encoded_space_dim)
    x = jax.random.normal(k_x, (batch, encoded_space_dim), jnp.float32)

    out = jax.jit(decoder_forward)(x, params)
    out = jax.block_until_ready(out)

    assert out.shape == (batch, 1, 28, 28), out.shape
    assert bool(jnp.all(jnp.isfinite(out)))
    assert bool(jnp.all((out >= 0.0) & (out <= 1.0)))   # sigmoid range
    print("KERNEL_OK")
</pallas_src>

<mosaic_0001>
module attributes {stable_mosaic.version = 11 : i64} {
  func.func @_decoder_lin_kernel(%arg0: i32, %arg1: memref<4x2xbf16, #tpu.memory_space<vmem>>, %arg2: memref<128x4xbf16, #tpu.memory_space<vmem>>, %arg3: memref<128x1xf32, #tpu.memory_space<vmem>>, %arg4: memref<288x128xbf16, #tpu.memory_space<vmem>>, %arg5: memref<288x1xf32, #tpu.memory_space<vmem>>, %arg6: memref<288x2xbf16, #tpu.memory_space<vmem>>) attributes {dimension_semantics = [#tpu.dimension_semantics<parallel>], iteration_bounds = array<i64: 1>, scalar_prefetch = 0 : i64, scratch_operands = 0 : i64, tpu.core_type = #tpu.core_type<tc>, window_params = [{transform_indices = @transform_0, window_bounds = array<i64: 4, 2>}, {pipeline_mode = #tpu.pipeline_mode<synchronous>, transform_indices = @transform_1, window_bounds = array<i64: 128, 4>}, {pipeline_mode = #tpu.pipeline_mode<synchronous>, transform_indices = @transform_2, window_bounds = array<i64: 128, 1>}, {pipeline_mode = #tpu.pipeline_mode<synchronous>, transform_indices = @transform_3, window_bounds = array<i64: 288, 128>}, {pipeline_mode = #tpu.pipeline_mode<synchronous>, transform_indices = @transform_4, window_bounds = array<i64: 288, 1>}, {transform_indices = @transform_5, window_bounds = array<i64: 288, 2>}]} {
    %c0 = arith.constant 0 : index
    %c0_0 = arith.constant 0 : index
    %0 = vector.load %arg2[%c0, %c0_0] : memref<128x4xbf16, #tpu.memory_space<vmem>>, vector<128x4xbf16>
    %c0_1 = arith.constant 0 : index
    %c0_2 = arith.constant 0 : index
    %1 = vector.load %arg1[%c0_1, %c0_2] : memref<4x2xbf16, #tpu.memory_space<vmem>>, vector<4x2xbf16>
    %cst = arith.constant dense<0.000000e+00> : vector<128x2xf32>
    %2 = tpu.matmul %0, %1, %cst {dimension_numbers = #tpu.dot_dimension_numbers<[1], [0], [0], [1], [0, 0, 1, 1], [], []>} : vector<128x4xbf16>, vector<4x2xbf16>, vector<128x2xf32> -> vector<128x2xf32>
    %c0_3 = arith.constant 0 : index
    %c0_4 = arith.constant 0 : index
    %3 = vector.load %arg3[%c0_3, %c0_4] : memref<128x1xf32, #tpu.memory_space<vmem>>, vector<128x1xf32>
    %4 = vector.broadcast %3 : vector<128x1xf32> to vector<128x2xf32>
    %5 = arith.addf %2, %4 : vector<128x2xf32>
    %cst_5 = arith.constant 0.000000e+00 : f32
    %6 = vector.broadcast %cst_5 : f32 to vector<128x2xf32>
    %7 = arith.maximumf %5, %6 : vector<128x2xf32>
    %c0_6 = arith.constant 0 : index
    %c0_7 = arith.constant 0 : index
    %8 = vector.load %arg4[%c0_6, %c0_7] : memref<288x128xbf16, #tpu.memory_space<vmem>>, vector<288x128xbf16>
    %9 = arith.truncf %7 : vector<128x2xf32> to vector<128x2xbf16>
    %cst_8 = arith.constant dense<0.000000e+00> : vector<288x2xf32>
    %10 = tpu.matmul %8, %9, %cst_8 {dimension_numbers = #tpu.dot_dimension_numbers<[1], [0], [0], [1], [0, 0, 1, 1], [], []>} : vector<288x128xbf16>, vector<128x2xbf16>, vector<288x2xf32> -> vector<288x2xf32>
    %c0_9 = arith.constant 0 : index
    %c0_10 = arith.constant 0 : index
    %11 = vector.load %arg5[%c0_9, %c0_10] : memref<288x1xf32, #tpu.memory_space<vmem>>, vector<288x1xf32>
    %12 = vector.broadcast %11 : vector<288x1xf32> to vector<288x2xf32>
    %13 = arith.addf %10, %12 : vector<288x2xf32>
    %cst_11 = arith.constant 0.000000e+00 : f32
    %14 = vector.broadcast %cst_11 : f32 to vector<288x2xf32>
    %15 = arith.maximumf %13, %14 : vector<288x2xf32>
    %16 = arith.truncf %15 : vector<288x2xf32> to vector<288x2xbf16>
    %c0_12 = arith.constant 0 : index
    %c0_13 = arith.constant 0 : index
    %17 = vector.load %arg6[%c0_12, %c0_13] : memref<288x2xbf16, #tpu.memory_space<vmem>>, vector<288x2xbf16>
    tpu.vector_store %arg6[%c0_12, %c0_13], %16 {strides = array<i32>} : memref<288x2xbf16, #tpu.memory_space<vmem>>, vector<288x2xbf16>,
    return
  }
  func.func @transform_0(%arg0: i32) -> (i32, i32) {
    %c0_i32 = arith.constant 0 : i32
    %c0_i32_0 = arith.constant 0 : i32
    return %c0_i32, %arg0 : i32, i32
  }
  func.func @transform_1(%arg0: i32) -> (i32, i32) {
    %c0_i32 = arith.constant 0 : i32
    %c0_i32_0 = arith.constant 0 : i32
    %c0_i32_1 = arith.constant 0 : i32
    return %c0_i32, %c0_i32_0 : i32, i32
  }
  func.func @transform_2(%arg0: i32) -> (i32, i32) {
    %c0_i32 = arith.constant 0 : i32
    %c0_i32_0 = arith.constant 0 : i32
    %c0_i32_1 = arith.constant 0 : i32
    return %c0_i32, %c0_i32_0 : i32, i32
  }
  func.func @transform_3(%arg0: i32) -> (i32, i32) {
    %c0_i32 = arith.constant 0 : i32
    %c0_i32_0 = arith.constant 0 : i32
    %c0_i32_1 = arith.constant 0 : i32
    return %c0_i32, %c0_i32_0 : i32, i32
  }
  func.func @transform_4(%arg0: i32) -> (i32, i32) {
    %c0_i32 = arith.constant 0 : i32
    %c0_i32_0 = arith.constant 0 : i32
    %c0_i32_1 = arith.constant 0 : i32
    return %c0_i32, %c0_i32_0 : i32, i32
  }
  func.func @transform_5(%arg0: i32) -> (i32, i32) {
    %c0_i32 = arith.constant 0 : i32
    %c0_i32_0 = arith.constant 0 : i32
    return %c0_i32, %arg0 : i32, i32
  }
}

module attributes {stable_mosaic.version = 11 : i64} {
  func.func @_deconv_bn_stats_kernel(%arg0: i32, %arg1: memref<9x16x32xbf16, #tpu.memory_space<vmem>>, %arg2: memref<16x1xf32, #tpu.memory_space<vmem>>, %arg3: memref<1x128xf32, #tpu.memory_space<vmem>>, %arg4: memref<1x32x256xbf16, #tpu.memory_space<vmem>>, %arg5: memref<16x128xbf16, #tpu.memory_space<vmem>>, %arg6: memref<1x16x1xf32, #tpu.memory_space<vmem>>, %arg7: memref<1x16x1xf32, #tpu.memory_space<vmem>>) attributes {dimension_semantics = [#tpu.dimension_semantics<parallel>], iteration_bounds = array<i64: 2>, scalar_prefetch = 0 : i64, scratch_operands = 0 : i64, tpu.core_type = #tpu.core_type<tc>, window_params = [{pipeline_mode = #tpu.pipeline_mode<synchronous>, transform_indices = @transform_0, window_bounds = array<i64: 9, 16, 32>}, {pipeline_mode = #tpu.pipeline_mode<synchronous>, transform_indices = @transform_1, window_bounds = array<i64: 16, 1>}, {pipeline_mode = #tpu.pipeline_mode<synchronous>, transform_indices = @transform_2, window_bounds = array<i64: 1, 128>}, {transform_indices = @transform_3, window_bounds = array<i64: 1, 32, 256>}, {transform_indices = @transform_4, window_bounds = array<i64: 16, 128>}, {transform_indices = @transform_5, window_bounds = array<i64: 1, 16, 1>}, {transform_indices = @transform_6, window_bounds = array<i64: 1, 16, 1>}]} {
    %cst = arith.constant 0.000000e+00 : f32
    %0 = vector.broadcast %cst : f32 to vector<16x128xf32>
    %c0 = arith.constant 0 : index
    %c0_0 = arith.constant 0 : index
    %c0_1 = arith.constant 0 : index
    %1 = vector.load %arg1[%c0, %c0_0, %c0_1] : memref<9x16x32xbf16, #tpu.memory_space<vmem>>, vector<1x16x32xbf16>
    %2 = vector.shape_cast %1 : vector<1x16x32xbf16> to vector<16x32xbf16>
    %c0_2 = arith.constant 0 : index
    %c0_3 = arith.constant 0 : index
    %c0_4 = arith.constant 0 : index
    %3 = vector.load %arg4[%c0_2, %c0_3, %c0_4] : memref<1x32x256xbf16, #tpu.memory_space<vmem>>, vector<1x32x128xbf16>
    %4 = vector.shape_cast %3 : vector<1x32x128xbf16> to vector<32x128xbf16>
    %cst_5 = arith.constant dense<0.000000e+00> : vector<16x128xf32>
    %5 = tpu.matmul %2, %4, %cst_5 {dimension_numbers = #tpu.dot_dimension_numbers<[1], [0], [0], [1], [0, 0, 1, 1], [], []>} : vector<16x32xbf16>, vector<32x128xbf16>, vector<16x128xf32> -> vector<16x128xf32>
    %6 = arith.addf %0, %5 : vector<16x128xf32>
    %c1 = arith.constant 1 : index
    %c0_6 = arith.constant 0 : index
    %c0_7 = arith.constant 0 : index
    %7 = vector.load %arg1[%c1, %c0_6, %c0_7] : memref<9x16x32xbf16, #tpu.memory_space<vmem>>, vector<1x16x32xbf16>
    %8 = vector.shape_cast %7 : vector<1x16x32xbf16> to vector<16x32xbf16>
    %c0_8 = arith.constant 0 : index
    %c0_9 = arith.constant 0 : index
    %c1_10 = arith.constant 1 : index
    %9 = vector.load %arg4[%c0_8, %c0_9, %c1_10] : memref<1x32x256xbf16, #tpu.memory_space<vmem>>, vector<1x32x128xbf16>
    %10 = vector.shape_cast %9 : vector<1x32x128xbf16> to vector<32x128xbf16>
    %cst_11 = arith.constant dense<0.000000e+00> : vector<16x128xf32>
    %11 = tpu.matmul %8, %10, %cst_11 {dimension_numbers = #tpu.dot_dimension_numbers<[1], [0], [0], [1], [0, 0, 1, 1], [], []>} : vector<16x32xbf16>, vector<32x128xbf16>, vector<16x128xf32> -> vector<16x128xf32>
    %12 = arith.addf %6, %11 : vector<16x128xf32>
    %c2 = arith.constant 2 : index
    %c0_12 = arith.constant 0 : index
    %c0_13 = arith.constant 0 : index
    %13 = vector.load %arg1[%c2, %c0_12, %c0_13] : memref<9x16x32xbf16, #tpu.memory_space<vmem>>, vector<1x16x32xbf16>
    %14 = vector.shape_cast %13 : vector<1x16x32xbf16> to vector<16x32xbf16>
    %c0_14 = arith.constant 0 : index
    %c0_15 = arith.constant 0 : index
    %c2_16 = arith.constant 2 : index
    %15 = vector.load %arg4[%c0_14, %c0_15, %c2_16] : memref<1x32x256xbf16, #tpu.memory_space<vmem>>, vector<1x32x128xbf16>
    %16 = vector.shape_cast %15 : vector<1x32x128xbf16> to vector<32x128xbf16>
    %cst_17 = arith.constant dense<0.000000e+00> : vector<16x128xf32>
    %17 = tpu.matmul %14, %16, %cst_17 {dimension_numbers = #tpu.dot_dimension_numbers<[1], [0], [0], [1], [0, 0, 1, 1], [], []>} : vector<16x32xbf16>, vector<32x128xbf16>, vector<16x128xf32> -> vector<16x128xf32>
    %18 = arith.addf %12, %17 : vector<16x128xf32>
    %c3 = arith.constant 3 : index
    %c0_18 = arith.constant 0 : index
    %c0_19 = arith.constant 0 : index
    %19 = vector.load %arg1[%c3, %c0_18, %c0_19] : memref<9x16x32xbf16, #tpu.memory_space<vmem>>, vector<1x16x32xbf16>
    %20 = vector.shape_cast %19 : vector<1x16x32xbf16> to vector<16x32xbf16>
    %c0_20 = arith.constant 0 : index
    %c0_21 = arith.constant 0 : index
    %c9 = arith.constant 9 : index
    %21 = vector.load %arg4[%c0_20, %c0_21, %c9] : memref<1x32x256xbf16, #tpu.memory_space<vmem>>, vector<1x32x128xbf16>
    %22 = vector.shape_cast %21 : vector<1x32x128xbf16> to vector<32x128xbf16>
    %cst_22 = arith.constant dense<0.000000e+00> : vector<16x128xf32>
    %23 = tpu.matmul %20, %22, %cst_22 {dimension_numbers = #tpu.dot_dimension_numbers<[1], [0], [0], [1], [0, 0, 1, 1], [], []>} : vector<16x32xbf16>, vector<32x128xbf16>, vector<16x128xf32> -> vector<16x128xf32>
    %24 = arith.addf %18, %23 : vector<16x128xf32>
    %c4 = arith.constant 4 : index
    %c0_23 = arith.constant 0 : index
    %c0_24 = arith.constant 0 : index
    %25 = vector.load %arg1[%c4, %c0_23, %c0_24] : memref<9x16x32xbf16, #tpu.memory_space<vmem>>, vector<1x16x32xbf16>
    %26 = vector.shape_cast %25 : vector<1x16x32xbf16> to vector<16x32xbf16>
    %c0_25 = arith.constant 0 : index
    %c0_26 = arith.constant 0 : index
    %c10 = arith.constant 10 : index
    %27 = vector.load %arg4[%c0_25, %c0_26, %c10] : memref<1x32x256xbf16, #tpu.memory_space<vmem>>, vector<1x32x128xbf16>
    %28 = vector.shape_cast %27 : vector<1x32x128xbf16> to vector<32x128xbf16>
    %cst_27 = arith.constant dense<0.000000e+00> : vector<16x128xf32>
    %29 = tpu.matmul %26, %28, %cst_27 {dimension_numbers = #tpu.dot_dimension_numbers<[1], [0], [0], [1], [0, 0, 1, 1], [], []>} : vector<16x32xbf16>, vector<32x128xbf16>, vector<16x128xf32> -> vector<16x128xf32>
    %30 = arith.addf %24, %29 : vector<16x128xf32>
    %c5 = arith.constant 5 : index
    %c0_28 = arith.constant 0 : index
    %c0_29 = arith.constant 0 : index
    %31 = vector.load %arg1[%c5, %c0_28, %c0_29] : memref<9x16x32xbf16, #tpu.memory_space<vmem>>, vector<1x16x32xbf16>
    %32 = vector.shape_cast %31 : vector<1x16x32xbf16> to vector<16x32xbf16>
    %c0_30 = arith.constant 0 : index
    %c0_31 = arith.constant 0 : index
    %c11 = arith.constant 11 : index
    %33 = vector.load %arg4[%c0_30, %c0_31, %c11] : memref<1x32x256xbf16, #tpu.memory_space<vmem>>, vector<1x32x128xbf16>
    %34 = vector.shape_cast %33 : vector<1x32x128xbf16> to vector<32x128xbf16>
    %cst_32 = arith.constant dense<0.000000e+00> : vector<16x128xf32>
    %35 = tpu.matmul %32, %34, %cst_32 {dimension_numbers = #tpu.dot_dimension_numbers<[1], [0], [0], [1], [0, 0, 1, 1], [], []>} : vector<16x32xbf16>, vector<32x128xbf16>, vector<16x128xf32> -> vector<16x128xf32>
    %36 = arith.addf %30, %35 : vector<16x128xf32>
    %c6 = arith.constant 6 : index
    %c0_33 = arith.constant 0 : index
    %c0_34 = arith.constant 0 : index
    %37 = vector.load %arg1[%c6, %c0_33, %c0_34] : memref<9x16x32xbf16, #tpu.memory_space<vmem>>, vector<1x16x32xbf16>
    %38 = vector.shape_cast %37 : vector<1x16x32xbf16> to vector<16x32xbf16>
    %c0_35 = arith.constant 0 : index
    %c0_36 = arith.constant 0 : index
    %c18 = arith.constant 18 : index
    %39 = vector.load %arg4[%c0_35, %c0_36, %c18] : memref<1x32x256xbf16, #tpu.memory_space<vmem>>, vector<1x32x128xbf16>
    %40 = vector.shape_cast %39 : vector<1x32x128xbf16> to vector<32x128xbf16>
    %cst_37 = arith.constant dense<0.000000e+00> : vector<16x128xf32>
    %41 = tpu.matmul %38, %40, %cst_37 {dimension_numbers = #tpu.dot_dimension_numbers<[1], [0], [0], [1], [0, 0, 1, 1], [], []>} : vector<16x32xbf16>, vector<32x128xbf16>, vector<16x128xf32> -> vector<16x128xf32>
    %42 = arith.addf %36, %41 : vector<16x128xf32>
    %c7 = arith.constant 7 : index
    %c0_38 = arith.constant 0 : index
    %c0_39 = arith.constant 0 : index
    %43 = vector.load %arg1[%c7, %c0_38, %c0_39] : memref<9x16x32xbf16, #tpu.memory_space<vmem>>, vector<1x16x32xbf16>
    %44 = vector.shape_cast %43 : vector<1x16x32xbf16> to vector<16x32xbf16>
    %c0_40 = arith.constant 0 : index
    %c0_41 = arith.constant 0 : index
    %c19 = arith.constant 19 : index
    %45 = vector.load %arg4[%c0_40, %c0_41, %c19] : memref<1x32x256xbf16, #tpu.memory_space<vmem>>, vector<1x32x128xbf16>
    %46 = vector.shape_cast %45 : vector<1x32x128xbf16> to vector<32x128xbf16>
    %cst_42 = arith.constant dense<0.000000e+00> : vector<16x128xf32>
    %47 = tpu.matmul %44, %46, %cst_42 {dimension_numbers = #tpu.dot_dimension_numbers<[1], [0], [0], [1], [0, 0, 1, 1], [], []>} : vector<16x32xbf16>, vector<32x128xbf16>, vector<16x128xf32> -> vector<16x128xf32>
    %48 = arith.addf %42, %47 : vector<16x128xf32>
    %c8 = arith.constant 8 : index
    %c0_43 = arith.constant 0 : index
    %c0_44 = arith.constant 0 : index
    %49 = vector.load %arg1[%c8, %c0_43, %c0_44] : memref<9x16x32xbf16, #tpu.memory_space<vmem>>, vector<1x16x32xbf16>
    %50 = vector.shape_cast %49 : vector<1x16x32xbf16> to vector<16x32xbf16>
    %c0_45 = arith.constant 0 : index
    %c0_46 = arith.constant 0 : index
    %c20 = arith.constant 20 : index
    %51 = vector.load %arg4[%c0_45, %c0_46, %c20] : memref<1x32x256xbf16, #tpu.memory_space<vmem>>, vector<1x32x128xbf16>
    %52 = vector.shape_cast %51 : vector<1x32x128xbf16> to vector<32x128xbf16>
    %cst_47 = arith.constant dense<0.000000e+00> : vector<16x128xf32>
    %53 = tpu.matmul %50, %52, %cst_47 {dimension_numbers = #tpu.dot_dimension_numbers<[1], [0], [0], [1], [0, 0, 1, 1], [], []>} : vector<16x32xbf16>, vector<32x128xbf16>, vector<16x128xf32> -> vector<16x128xf32>
    %54 = arith.addf %48, %53 : vector<16x128xf32>
    %c0_48 = arith.constant 0 : index
    %c0_49 = arith.constant 0 : index
    %55 = vector.load %arg2[%c0_48, %c0_49] : memref<16x1xf32, #tpu.memory_space<vmem>>, vector<16x1xf32>
    %56 = vector.broadcast %55 : vector<16x1xf32> to vector<16x128xf32>
    %57 = arith.addf %54, %56 : vector<16x128xf32>
    %58 = arith.truncf %57 : vector<16x128xf32> to vector<16x128xbf16>
    %c0_50 = arith.constant 0 : index
    %c0_51 = arith.constant 0 : index
    %59 = vector.load %arg5[%c0_50, %c0_51] : memref<16x128xbf16, #tpu.memory_space<vmem>>, vector<16x128xbf16>
    tpu.vector_store %arg5[%c0_50, %c0_51], %58 {strides = array<i32>} : memref<16x128xbf16, #tpu.memory_space<vmem>>, vector<16x128xbf16>,
    %c0_52 = arith.constant 0 : index
    %c0_53 = arith.constant 0 : index
    %60 = vector.load %arg3[%c0_52, %c0_53] : memref<1x128xf32, #tpu.memory_space<vmem>>, vector<1x128xf32>
    %61 = vector.broadcast %60 : vector<1x128xf32> to vector<16x128xf32>
    %62 = arith.mulf %57, %61 : vector<16x128xf32>
    %cst_54 = arith.constant dense<0.000000e+00> : vector<16xf32>
    %63 = vector.multi_reduction <add>, %62, %cst_54 [1] : vector<16x128xf32> to vector<16xf32>
    %64 = vector.shape_cast %63 : vector<16xf32> to vector<16x1xf32>
    %65 = vector.shape_cast %64 : vector<16x1xf32> to vector<1x16x1xf32>
    %c0_55 = arith.constant 0 : index
    %c0_56 = arith.constant 0 : index
    %c0_57 = arith.constant 0 : index
    %66 = vector.load %arg6[%c0_55, %c0_56, %c0_57] : memref<1x16x1xf32, #tpu.memory_space<vmem>>, vector<1x16x1xf32>
    tpu.vector_store %arg6[%c0_55, %c0_56, %c0_57], %65 {strides = array<i32>} : memref<1x16x1xf32, #tpu.memory_space<vmem>>, vector<1x16x1xf32>,
    %67 = arith.mulf %62, %62 : vector<16x128xf32>
    %cst_58 = arith.constant dense<0.000000e+00> : vector<16xf32>
    %68 = vector.multi_reduction <add>, %67, %cst_58 [1] : vector<16x128xf32> to vector<16xf32>
    %69 = vector.shape_cast %68 : vector<16xf32> to vector<16x1xf32>
    %70 = vector.shape_cast %69 : vector<16x1xf32> to vector<1x16x1xf32>
    %c0_59 = arith.constant 0 : index
    %c0_60 = arith.constant 0 : index
    %c0_61 = arith.constant 0 : index
    %71 = vector.load %arg7[%c0_59, %c0_60, %c0_61] : memref<1x16x1xf32, #tpu.memory_space<vmem>>, vector<1x16x1xf32>
    tpu.vector_store %arg7[%c0_59, %c0_60, %c0_61], %70 {strides = array<i32>} : memref<1x16x1xf32, #tpu.memory_space<vmem>>, vector<1x16x1xf32>,
    return
  }
  func.func @transform_0(%arg0: i32) -> (i32, i32, i32) {
    %c0_i32 = arith.constant 0 : i32
    %c0_i32_0 = arith.constant 0 : i32
    %c0_i32_1 = arith.constant 0 : i32
    %c0_i32_2 = arith.constant 0 : i32
    return %c0_i32, %c0_i32_0, %c0_i32_1 : i32, i32, i32
  }
  func.func @transform_1(%arg0: i32) -> (i32, i32) {
    %c0_i32 = arith.constant 0 : i32
    %c0_i32_0 = arith.constant 0 : i32
    %c0_i32_1 = arith.constant 0 : i32
    return %c0_i32, %c0_i32_0 : i32, i32
  }
  func.func @transform_2(%arg0: i32) -> (i32, i32) {
    %c0_i32 = arith.constant 0 : i32
    %c0_i32_0 = arith.constant 0 : i32
    %c0_i32_1 = arith.constant 0 : i32
    return %c0_i32, %c0_i32_0 : i32, i32
  }
  func.func @transform_3(%arg0: i32) -> (i32, i32, i32) {
    %c0_i32 = arith.constant 0 : i32
    %c0_i32_0 = arith.constant 0 : i32
    %c0_i32_1 = arith.constant 0 : i32
    return %arg0, %c0_i32, %c0_i32_0 : i32, i32, i32
  }
  func.func @transform_4(%arg0: i32) -> (i32, i32) {
    %c0_i32 = arith.constant 0 : i32
    %c0_i32_0 = arith.constant 0 : i32
    return %c0_i32, %arg0 : i32, i32
  }
  func.func @transform_5(%arg0: i32) -> (i32, i32, i32) {
    %c0_i32 = arith.constant 0 : i32
    %c0_i32_0 = arith.constant 0 : i32
    %c0_i32_1 = arith.constant 0 : i32
    return %arg0, %c0_i32, %c0_i32_0 : i32, i32, i32
  }
  func.func @transform_6(%arg0: i32) -> (i32, i32, i32) {
    %c0_i32 = arith.constant 0 : i32
    %c0_i32_0 = arith.constant 0 : i32
    %c0_i32_1 = arith.constant 0 : i32
    return %arg0, %c0_i32, %c0_i32_0 : i32, i32, i32
  }
}

module attributes {stable_mosaic.version = 11 : i64} {
  func.func @_deconv_bn_stats_kernel(%arg0: i32, %arg1: memref<9x8x16xbf16, #tpu.memory_space<vmem>>, %arg2: memref<8x1xf32, #tpu.memory_space<vmem>>, %arg3: memref<1x384xf32, #tpu.memory_space<vmem>>, %arg4: memref<1x16x512xbf16, #tpu.memory_space<vmem>>, %arg5: memref<8x384xbf16, #tpu.memory_space<vmem>>, %arg6: memref<1x8x1xf32, #tpu.memory_space<vmem>>, %arg7: memref<1x8x1xf32, #tpu.memory_space<vmem>>) attributes {dimension_semantics = [#tpu.dimension_semantics<parallel>], iteration_bounds = array<i64: 2>, scalar_prefetch = 0 : i64, scratch_operands = 0 : i64, tpu.core_type = #tpu.core_type<tc>, window_params = [{pipeline_mode = #tpu.pipeline_mode<synchronous>, transform_indices = @transform_0, window_bounds = array<i64: 9, 8, 16>}, {pipeline_mode = #tpu.pipeline_mode<synchronous>, transform_indices = @transform_1, window_bounds = array<i64: 8, 1>}, {pipeline_mode = #tpu.pipeline_mode<synchronous>, transform_indices = @transform_2, window_bounds = array<i64: 1, 384>}, {transform_indices = @transform_3, window_bounds = array<i64: 1, 16, 512>}, {transform_indices = @transform_4, window_bounds = array<i64: 8, 384>}, {transform_indices = @transform_5, window_bounds = array<i64: 1, 8, 1>}, {transform_indices = @transform_6, window_bounds = array<i64: 1, 8, 1>}]} {
    %cst = arith.constant 0.000000e+00 : f32
    %0 = vector.broadcast %cst : f32 to vector<8x384xf32>
    %c0 = arith.constant 0 : index
    %c0_0 = arith.constant 0 : index
    %c0_1 = arith.constant 0 : index
    %1 = vector.load %arg1[%c0, %c0_0, %c0_1] : memref<9x8x16xbf16, #tpu.memory_space<vmem>>, vector<1x8x16xbf16>
    %2 = vector.shape_cast %1 : vector<1x8x16xbf16> to vector<8x16xbf16>
    %c0_2 = arith.constant 0 : index
    %c0_3 = arith.constant 0 : index
    %c0_4 = arith.constant 0 : index
    %3 = vector.load %arg4[%c0_2, %c0_3, %c0_4] : memref<1x16x512xbf16, #tpu.memory_space<vmem>>, vector<1x16x384xbf16>
    %4 = vector.shape_cast %3 : vector<1x16x384xbf16> to vector<16x384xbf16>
    %cst_5 = arith.constant dense<0.000000e+00> : vector<8x384xf32>
    %5 = tpu.matmul %2, %4, %cst_5 {dimension_numbers = #tpu.dot_dimension_numbers<[1], [0], [0], [1], [0, 0, 1, 1], [], []>} : vector<8x16xbf16>, vector<16x384xbf16>, vector<8x384xf32> -> vector<8x384xf32>
    %6 = arith.addf %0, %5 : vector<8x384xf32>
    %c1 = arith.constant 1 : index
    %c0_6 = arith.constant 0 : index
    %c0_7 = arith.constant 0 : index
    %7 = vector.load %arg1[%c1, %c0_6, %c0_7] : memref<9x8x16xbf16, #tpu.memory_space<vmem>>, vector<1x8x16xbf16>
    %8 = vector.shape_cast %7 : vector<1x8x16xbf16> to vector<8x16xbf16>
    %c0_8 = arith.constant 0 : index
    %c0_9 = arith.constant 0 : index
    %c1_10 = arith.constant 1 : index
    %9 = vector.load %arg4[%c0_8, %c0_9, %c1_10] : memref<1x16x512xbf16, #tpu.memory_space<vmem>>, vector<1x16x384xbf16>
    %10 = vector.shape_cast %9 : vector<1x16x384xbf16> to vector<16x384xbf16>
    %cst_11 = arith.constant dense<0.000000e+00> : vector<8x384xf32>
    %11 = tpu.matmul %8, %10, %cst_11 {dimension_numbers = #tpu.dot_dimension_numbers<[1], [0], [0], [1], [0, 0, 1, 1], [], []>} : vector<8x16xbf16>, vector<16x384xbf16>, vector<8x384xf32> -> vector<8x384xf32>
    %12 = arith.addf %6, %11 : vector<8x384xf32>
    %c2 = arith.constant 2 : index
    %c0_12 = arith.constant 0 : index
    %c0_13 = arith.constant 0 : index
    %13 = vector.load %arg1[%c2, %c0_12, %c0_13] : memref<9x8x16xbf16, #tpu.memory_space<vmem>>, vector<1x8x16xbf16>
    %14 = vector.shape_cast %13 : vector<1x8x16xbf16> to vector<8x16xbf16>
    %c0_14 = arith.constant 0 : index
    %c0_15 = arith.constant 0 : index
    %c2_16 = arith.constant 2 : index
    %15 = vector.load %arg4[%c0_14, %c0_15, %c2_16] : memref<1x16x512xbf16, #tpu.memory_space<vmem>>, vector<1x16x384xbf16>
    %16 = vector.shape_cast %15 : vector<1x16x384xbf16> to vector<16x384xbf16>
    %cst_17 = arith.constant dense<0.000000e+00> : vector<8x384xf32>
    %17 = tpu.matmul %14, %16, %cst_17 {dimension_numbers = #tpu.dot_dimension_numbers<[1], [0], [0], [1], [0, 0, 1, 1], [], []>} : vector<8x16xbf16>, vector<16x384xbf16>, vector<8x384xf32> -> vector<8x384xf32>
    %18 = arith.addf %12, %17 : vector<8x384xf32>
    %c3 = arith.constant 3 : index
    %c0_18 = arith.constant 0 : index
    %c0_19 = arith.constant 0 : index
    %19 = vector.load %arg1[%c3, %c0_18, %c0_19] : memref<9x8x16xbf16, #tpu.memory_space<vmem>>, vector<1x8x16xbf16>
    %20 = vector.shape_cast %19 : vector<1x8x16xbf16> to vector<8x16xbf16>
    %c0_20 = arith.constant 0 : index
    %c0_21 = arith.constant 0 : index
    %c16 = arith.constant 16 : index
    %21 = vector.load %arg4[%c0_20, %c0_21, %c16] : memref<1x16x512xbf16, #tpu.memory_space<vmem>>, vector<1x16x384xbf16>
    %22 = vector.shape_cast %21 : vector<1x16x384xbf16> to vector<16x384xbf16>
    %cst_22 = arith.constant dense<0.000000e+00> : vector<8x384xf32>
    %23 = tpu.matmul %20, %22, %cst_22 {dimension_numbers = #tpu.dot_dimension_numbers<[1], [0], [0], [1], [0, 0, 1, 1], [], []>} : vector<8x16xbf16>, vector<16x384xbf16>, vector<8x384xf32> -> vector<8x384xf32>
    %24 = arith.addf %18, %23 : vector<8x384xf32>
    %c4 = arith.constant 4 : index
    %c0_23 = arith.constant 0 : index
    %c0_24 = arith.constant 0 : index
    %25 = vector.load %arg1[%c4, %c0_23, %c0_24] : memref<9x8x16xbf16, #tpu.memory_space<vmem>>, vector<1x8x16xbf16>
    %26 = vector.shape_cast %25 : vector<1x8x16xbf16> to vector<8x16xbf16>
    %c0_25 = arith.constant 0 : index
    %c0_26 = arith.constant 0 : index
    %c17 = arith.constant 17 : index
    %27 = vector.load %arg4[%c0_25, %c0_26, %c17] : memref<1x16x512xbf16, #tpu.memory_space<vmem>>, vector<1x16x384xbf16>
    %28 = vector.shape_cast %27 : vector<1x16x384xbf16> to vector<16x384xbf16>
    %cst_27 = arith.constant dense<0.000000e+00> : vector<8x384xf32>
    %29 = tpu.matmul %26, %28, %cst_27 {dimension_numbers = #tpu.dot_dimension_numbers<[1], [0], [0], [1], [0, 0, 1, 1], [], []>} : vector<8x16xbf16>, vector<16x384xbf16>, vector<8x384xf32> -> vector<8x384xf32>
    %30 = arith.addf %24, %29 : vector<8x384xf32>
    %c5 = arith.constant 5 : index
    %c0_28 = arith.constant 0 : index
    %c0_29 = arith.constant 0 : index
    %31 = vector.load %arg1[%c5, %c0_28, %c0_29] : memref<9x8x16xbf16, #tpu.memory_space<vmem>>, vector<1x8x16xbf16>
    %32 = vector.shape_cast %31 : vector<1x8x16xbf16> to vector<8x16xbf16>
    %c0_30 = arith.constant 0 : index
    %c0_31 = arith.constant 0 : index
    %c18 = arith.constant 18 : index
    %33 = vector.load %arg4[%c0_30, %c0_31, %c18] : memref<1x16x512xbf16, #tpu.memory_space<vmem>>, vector<1x16x384xbf16>
    %34 = vector.shape_cast %33 : vector<1x16x384xbf16> to vector<16x384xbf16>
    %cst_32 = arith.constant dense<0.000000e+00> : vector<8x384xf32>
    %35 = tpu.matmul %32, %34, %cst_32 {dimension_numbers = #tpu.dot_dimension_numbers<[1], [0], [0], [1], [0, 0, 1, 1], [], []>} : vector<8x16xbf16>, vector<16x384xbf16>, vector<8x384xf32> -> vector<8x384xf32>
    %36 = arith.addf %30, %35 : vector<8x384xf32>
    %c6 = arith.constant 6 : index
    %c0_33 = arith.constant 0 : index
    %c0_34 = arith.constant 0 : index
    %37 = vector.load %arg1[%c6, %c0_33, %c0_34] : memref<9x8x16xbf16, #tpu.memory_space<vmem>>, vector<1x8x16xbf16>
    %38 = vector.shape_cast %37 : vector<1x8x16xbf16> to vector<8x16xbf16>
    %c0_35 = arith.constant 0 : index
    %c0_36 = arith.constant 0 : index
    %c32 = arith.constant 32 : index
    %39 = vector.load %arg4[%c0_35, %c0_36, %c32] : memref<1x16x512xbf16, #tpu.memory_space<vmem>>, vector<1x16x384xbf16>
    %40 = vector.shape_cast %39 : vector<1x16x384xbf16> to vector<16x384xbf16>
    %cst_37 = arith.constant dense<0.000000e+00> : vector<8x384xf32>
    %41 = tpu.matmul %38, %40, %cst_37 {dimension_numbers = #tpu.dot_dimension_numbers<[1], [0], [0], [1], [0, 0, 1, 1], [], []>} : vector<8x16xbf16>, vector<16x384xbf16>, vector<8x384xf32> -> vector<8x384xf32>
    %42 = arith.addf %36, %41 : vector<8x384xf32>
    %c7 = arith.constant 7 : index
    %c0_38 = arith.constant 0 : index
    %c0_39 = arith.constant 0 : index
    %43 = vector.load %arg1[%c7, %c0_38, %c0_39] : memref<9x8x16xbf16, #tpu.memory_space<vmem>>, vector<1x8x16xbf16>
    %44 = vector.shape_cast %43 : vector<1x8x16xbf16> to vector<8x16xbf16>
    %c0_40 = arith.constant 0 : index
    %c0_41 = arith.constant 0 : index
    %c33 = arith.constant 33 : index
    %45 = vector.load %arg4[%c0_40, %c0_41, %c33] : memref<1x16x512xbf16, #tpu.memory_space<vmem>>, vector<1x16x384xbf16>
    %46 = vector.shape_cast %45 : vector<1x16x384xbf16> to vector<16x384xbf16>
    %cst_42 = arith.constant dense<0.000000e+00> : vector<8x384xf32>
    %47 = tpu.matmul %44, %46, %cst_42 {dimension_numbers = #tpu.dot_dimension_numbers<[1], [0], [0], [1], [0, 0, 1, 1], [], []>} : vector<8x16xbf16>, vector<16x384xbf16>, vector<8x384xf32> -> vector<8x384xf32>
    %48 = arith.addf %42, %47 : vector<8x384xf32>
    %c8 = arith.constant 8 : index
    %c0_43 = arith.constant 0 : index
    %c0_44 = arith.constant 0 : index
    %49 = vector.load %arg1[%c8, %c0_43, %c0_44] : memref<9x8x16xbf16, #tpu.memory_space<vmem>>, vector<1x8x16xbf16>
    %50 = vector.shape_cast %49 : vector<1x8x16xbf16> to vector<8x16xbf16>
    %c0_45 = arith.constant 0 : index
    %c0_46 = arith.constant 0 : index
    %c34 = arith.constant 34 : index
    %51 = vector.load %arg4[%c0_45, %c0_46, %c34] : memref<1x16x512xbf16, #tpu.memory_space<vmem>>, vector<1x16x384xbf16>
    %52 = vector.shape_cast %51 : vector<1x16x384xbf16> to vector<16x384xbf16>
    %cst_47 = arith.constant dense<0.000000e+00> : vector<8x384xf32>
    %53 = tpu.matmul %50, %52, %cst_47 {dimension_numbers = #tpu.dot_dimension_numbers<[1], [0], [0], [1], [0, 0, 1, 1], [], []>} : vector<8x16xbf16>, vector<16x384xbf16>, vector<8x384xf32> -> vector<8x384xf32>
    %54 = arith.addf %48, %53 : vector<8x384xf32>
    %c0_48 = arith.constant 0 : index
    %c0_49 = arith.constant 0 : index
    %55 = vector.load %arg2[%c0_48, %c0_49] : memref<8x1xf32, #tpu.memory_space<vmem>>, vector<8x1xf32>
    %56 = vector.broadcast %55 : vector<8x1xf32> to vector<8x384xf32>
    %57 = arith.addf %54, %56 : vector<8x384xf32>
    %58 = arith.truncf %57 : vector<8x384xf32> to vector<8x384xbf16>
    %c0_50 = arith.constant 0 : index
    %c0_51 = arith.constant 0 : index
    %59 = vector.load %arg5[%c0_50, %c0_51] : memref<8x384xbf16, #tpu.memory_space<vmem>>, vector<8x384xbf16>
    tpu.vector_store %arg5[%c0_50, %c0_51], %58 {strides = array<i32>} : memref<8x384xbf16, #tpu.memory_space<vmem>>, vector<8x384xbf16>,
    %c0_52 = arith.constant 0 : index
    %c0_53 = arith.constant 0 : index
    %60 = vector.load %arg3[%c0_52, %c0_53] : memref<1x384xf32, #tpu.memory_space<vmem>>, vector<1x384xf32>
    %61 = vector.broadcast %60 : vector<1x384xf32> to vector<8x384xf32>
    %62 = arith.mulf %57, %61 : vector<8x384xf32>
    %cst_54 = arith.constant dense<0.000000e+00> : vector<8xf32>
    %63 = vector.multi_reduction <add>, %62, %cst_54 [1] : vector<8x384xf32> to vector<8xf32>
    %64 = vector.shape_cast %63 : vector<8xf32> to vector<8x1xf32>
    %65 = vector.shape_cast %64 : vector<8x1xf32> to vector<1x8x1xf32>
    %c0_55 = arith.constant 0 : index
    %c0_56 = arith.constant 0 : index
    %c0_57 = arith.constant 0 : index
    %66 = vector.load %arg6[%c0_55, %c0_56, %c0_57] : memref<1x8x1xf32, #tpu.memory_space<vmem>>, vector<1x8x1xf32>
    tpu.vector_store %arg6[%c0_55, %c0_56, %c0_57], %65 {strides = array<i32>} : memref<1x8x1xf32, #tpu.memory_space<vmem>>, vector<1x8x1xf32>,
    %67 = arith.mulf %62, %62 : vector<8x384xf32>
    %cst_58 = arith.constant dense<0.000000e+00> : vector<8xf32>
    %68 = vector.multi_reduction <add>, %67, %cst_58 [1] : vector<8x384xf32> to vector<8xf32>
    %69 = vector.shape_cast %68 : vector<8xf32> to vector<8x1xf32>
    %70 = vector.shape_cast %69 : vector<8x1xf32> to vector<1x8x1xf32>
    %c0_59 = arith.constant 0 : index
    %c0_60 = arith.constant 0 : index
    %c0_61 = arith.constant 0 : index
    %71 = vector.load %arg7[%c0_59, %c0_60, %c0_61] : memref<1x8x1xf32, #tpu.memory_space<vmem>>, vector<1x8x1xf32>
    tpu.vector_store %arg7[%c0_59, %c0_60, %c0_61], %70 {strides = array<i32>} : memref<1x8x1xf32, #tpu.memory_space<vmem>>, vector<1x8x1xf32>,
    return
  }
  func.func @transform_0(%arg0: i32) -> (i32, i32, i32) {
    %c0_i32 = arith.constant 0 : i32
    %c0_i32_0 = arith.constant 0 : i32
    %c0_i32_1 = arith.constant 0 : i32
    %c0_i32_2 = arith.constant 0 : i32
    return %c0_i32, %c0_i32_0, %c0_i32_1 : i32, i32, i32
  }
  func.func @transform_1(%arg0: i32) -> (i32, i32) {
    %c0_i32 = arith.constant 0 : i32
    %c0_i32_0 = arith.constant 0 : i32
    %c0_i32_1 = arith.constant 0 : i32
    return %c0_i32, %c0_i32_0 : i32, i32
  }
  func.func @transform_2(%arg0: i32) -> (i32, i32) {
    %c0_i32 = arith.constant 0 : i32
    %c0_i32_0 = arith.constant 0 : i32
    %c0_i32_1 = arith.constant 0 : i32
    return %c0_i32, %c0_i32_0 : i32, i32
  }
  func.func @transform_3(%arg0: i32) -> (i32, i32, i32) {
    %c0_i32 = arith.constant 0 : i32
    %c0_i32_0 = arith.constant 0 : i32
    %c0_i32_1 = arith.constant 0 : i32
    return %arg0, %c0_i32, %c0_i32_0 : i32, i32, i32
  }
  func.func @transform_4(%arg0: i32) -> (i32, i32) {
    %c0_i32 = arith.constant 0 : i32
    %c0_i32_0 = arith.constant 0 : i32
    return %c0_i32, %arg0 : i32, i32
  }
  func.func @transform_5(%arg0: i32) -> (i32, i32, i32) {
    %c0_i32 = arith.constant 0 : i32
    %c0_i32_0 = arith.constant 0 : i32
    %c0_i32_1 = arith.constant 0 : i32
    return %arg0, %c0_i32, %c0_i32_0 : i32, i32, i32
  }
  func.func @transform_6(%arg0: i32) -> (i32, i32, i32) {
    %c0_i32 = arith.constant 0 : i32
    %c0_i32_0 = arith.constant 0 : i32
    %c0_i32_1 = arith.constant 0 : i32
    return %arg0, %c0_i32, %c0_i32_0 : i32, i32, i32
  }
}

module attributes {stable_mosaic.version = 11 : i64} {
  func.func @_deconv_sigmoid_kernel(%arg0: i32, %arg1: memref<9x8x8xbf16, #tpu.memory_space<vmem>>, %arg2: memref<8x1xf32, #tpu.memory_space<vmem>>, %arg3: memref<1x8x1152xbf16, #tpu.memory_space<vmem>>, %arg4: memref<1x1024xf32, #tpu.memory_space<vmem>>) attributes {dimension_semantics = [#tpu.dimension_semantics<parallel>], iteration_bounds = array<i64: 2>, scalar_prefetch = 0 : i64, scratch_operands = 0 : i64, tpu.core_type = #tpu.core_type<tc>, window_params = [{pipeline_mode = #tpu.pipeline_mode<synchronous>, transform_indices = @transform_0, window_bounds = array<i64: 9, 8, 8>}, {pipeline_mode = #tpu.pipeline_mode<synchronous>, transform_indices = @transform_1, window_bounds = array<i64: 8, 1>}, {transform_indices = @transform_2, window_bounds = array<i64: 1, 8, 1152>}, {transform_indices = @transform_3, window_bounds = array<i64: 1, 1024>}]} {
    %cst = arith.constant 0.000000e+00 : f32
    %0 = vector.broadcast %cst : f32 to vector<8x1024xf32>
    %c0 = arith.constant 0 : index
    %c0_0 = arith.constant 0 : index
    %c0_1 = arith.constant 0 : index
    %1 = vector.load %arg1[%c0, %c0_0, %c0_1] : memref<9x8x8xbf16, #tpu.memory_space<vmem>>, vector<1x8x8xbf16>
    %2 = vector.shape_cast %1 : vector<1x8x8xbf16> to vector<8x8xbf16>
    %c0_2 = arith.constant 0 : index
    %c0_3 = arith.constant 0 : index
    %c0_4 = arith.constant 0 : index
    %3 = vector.load %arg3[%c0_2, %c0_3, %c0_4] : memref<1x8x1152xbf16, #tpu.memory_space<vmem>>, vector<1x8x1024xbf16>
    %4 = vector.shape_cast %3 : vector<1x8x1024xbf16> to vector<8x1024xbf16>
    %cst_5 = arith.constant dense<0.000000e+00> : vector<8x1024xf32>
    %5 = tpu.matmul %2, %4, %cst_5 {dimension_numbers = #tpu.dot_dimension_numbers<[1], [0], [0], [1], [0, 0, 1, 1], [], []>} : vector<8x8xbf16>, vector<8x1024xbf16>, vector<8x1024xf32> -> vector<8x1024xf32>
    %6 = arith.addf %0, %5 : vector<8x1024xf32>
    %c1 = arith.constant 1 : index
    %c0_6 = arith.constant 0 : index
    %c0_7 = arith.constant 0 : index
    %7 = vector.load %arg1[%c1, %c0_6, %c0_7] : memref<9x8x8xbf16, #tpu.memory_space<vmem>>, vector<1x8x8xbf16>
    %8 = vector.shape_cast %7 : vector<1x8x8xbf16> to vector<8x8xbf16>
    %c0_8 = arith.constant 0 : index
    %c0_9 = arith.constant 0 : index
    %c1_10 = arith.constant 1 : index
    %9 = vector.load %arg3[%c0_8, %c0_9, %c1_10] : memref<1x8x1152xbf16, #tpu.memory_space<vmem>>, vector<1x8x1024xbf16>
    %10 = vector.shape_cast %9 : vector<1x8x1024xbf16> to vector<8x1024xbf16>
    %cst_11 = arith.constant dense<0.000000e+00> : vector<8x1024xf32>
    %11 = tpu.matmul %8, %10, %cst_11 {dimension_numbers = #tpu.dot_dimension_numbers<[1], [0], [0], [1], [0, 0, 1, 1], [], []>} : vector<8x8xbf16>, vector<8x1024xbf16>, vector<8x1024xf32> -> vector<8x1024xf32>
    %12 = arith.addf %6, %11 : vector<8x1024xf32>
    %c2 = arith.constant 2 : index
    %c0_12 = arith.constant 0 : index
    %c0_13 = arith.constant 0 : index
    %13 = vector.load %arg1[%c2, %c0_12, %c0_13] : memref<9x8x8xbf16, #tpu.memory_space<vmem>>, vector<1x8x8xbf16>
    %14 = vector.shape_cast %13 : vector<1x8x8xbf16> to vector<8x8xbf16>
    %c0_14 = arith.constant 0 : index
    %c0_15 = arith.constant 0 : index
    %c2_16 = arith.constant 2 : index
    %15 = vector.load %arg3[%c0_14, %c0_15, %c2_16] : memref<1x8x1152xbf16, #tpu.memory_space<vmem>>, vector<1x8x1024xbf16>
    %16 = vector.shape_cast %15 : vector<1x8x1024xbf16> to vector<8x1024xbf16>
    %cst_17 = arith.constant dense<0.000000e+00> : vector<8x1024xf32>
    %17 = tpu.matmul %14, %16, %cst_17 {dimension_numbers = #tpu.dot_dimension_numbers<[1], [0], [0], [1], [0, 0, 1, 1], [], []>} : vector<8x8xbf16>, vector<8x1024xbf16>, vector<8x1024xf32> -> vector<8x1024xf32>
    %18 = arith.addf %12, %17 : vector<8x1024xf32>
    %c3 = arith.constant 3 : index
    %c0_18 = arith.constant 0 : index
    %c0_19 = arith.constant 0 : index
    %19 = vector.load %arg1[%c3, %c0_18, %c0_19] : memref<9x8x8xbf16, #tpu.memory_space<vmem>>, vector<1x8x8xbf16>
    %20 = vector.shape_cast %19 : vector<1x8x8xbf16> to vector<8x8xbf16>
    %c0_20 = arith.constant 0 : index
    %c0_21 = arith.constant 0 : index
    %c30 = arith.constant 30 : index
    %21 = vector.load %arg3[%c0_20, %c0_21, %c30] : memref<1x8x1152xbf16, #tpu.memory_space<vmem>>, vector<1x8x1024xbf16>
    %22 = vector.shape_cast %21 : vector<1x8x1024xbf16> to vector<8x1024xbf16>
    %cst_22 = arith.constant dense<0.000000e+00> : vector<8x1024xf32>
    %23 = tpu.matmul %20, %22, %cst_22 {dimension_numbers = #tpu.dot_dimension_numbers<[1], [0], [0], [1], [0, 0, 1, 1], [], []>} : vector<8x8xbf16>, vector<8x1024xbf16>, vector<8x1024xf32> -> vector<8x1024xf32>
    %24 = arith.addf %18, %23 : vector<8x1024xf32>
    %c4 = arith.constant 4 : index
    %c0_23 = arith.constant 0 : index
    %c0_24 = arith.constant 0 : index
    %25 = vector.load %arg1[%c4, %c0_23, %c0_24] : memref<9x8x8xbf16, #tpu.memory_space<vmem>>, vector<1x8x8xbf16>
    %26 = vector.shape_cast %25 : vector<1x8x8xbf16> to vector<8x8xbf16>
    %c0_25 = arith.constant 0 : index
    %c0_26 = arith.constant 0 : index
    %c31 = arith.constant 31 : index
    %27 = vector.load %arg3[%c0_25, %c0_26, %c31] : memref<1x8x1152xbf16, #tpu.memory_space<vmem>>, vector<1x8x1024xbf16>
    %28 = vector.shape_cast %27 : vector<1x8x1024xbf16> to vector<8x1024xbf16>
    %cst_27 = arith.constant dense<0.000000e+00> : vector<8x1024xf32>
    %29 = tpu.matmul %26, %28, %cst_27 {dimension_numbers = #tpu.dot_dimension_numbers<[1], [0], [0], [1], [0, 0, 1, 1], [], []>} : vector<8x8xbf16>, vector<8x1024xbf16>, vector<8x1024xf32> -> vector<8x1024xf32>
    %30 = arith.addf %24, %29 : vector<8x1024xf32>
    %c5 = arith.constant 5 : index
    %c0_28 = arith.constant 0 : index
    %c0_29 = arith.constant 0 : index
    %31 = vector.load %arg1[%c5, %c0_28, %c0_29] : memref<9x8x8xbf16, #tpu.memory_space<vmem>>, vector<1x8x8xbf16>
    %32 = vector.shape_cast %31 : vector<1x8x8xbf16> to vector<8x8xbf16>
    %c0_30 = arith.constant 0 : index
    %c0_31 = arith.constant 0 : index
    %c32 = arith.constant 32 : index
    %33 = vector.load %arg3[%c0_30, %c0_31, %c32] : memref<1x8x1152xbf16, #tpu.memory_space<vmem>>, vector<1x8x1024xbf16>
    %34 = vector.shape_cast %33 : vector<1x8x1024xbf16> to vector<8x1024xbf16>
    %cst_32 = arith.constant dense<0.000000e+00> : vector<8x1024xf32>
    %35 = tpu.matmul %32, %34, %cst_32 {dimension_numbers = #tpu.dot_dimension_numbers<[1], [0], [0], [1], [0, 0, 1, 1], [], []>} : vector<8x8xbf16>, vector<8x1024xbf16>, vector<8x1024xf32> -> vector<8x1024xf32>
    %36 = arith.addf %30, %35 : vector<8x1024xf32>
    %c6 = arith.constant 6 : index
    %c0_33 = arith.constant 0 : index
    %c0_34 = arith.constant 0 : index
    %37 = vector.load %arg1[%c6, %c0_33, %c0_34] : memref<9x8x8xbf16, #tpu.memory_space<vmem>>, vector<1x8x8xbf16>
    %38 = vector.shape_cast %37 : vector<1x8x8xbf16> to vector<8x8xbf16>
    %c0_35 = arith.constant 0 : index
    %c0_36 = arith.constant 0 : index
    %c60 = arith.constant 60 : index
    %39 = vector.load %arg3[%c0_35, %c0_36, %c60] : memref<1x8x1152xbf16, #tpu.memory_space<vmem>>, vector<1x8x1024xbf16>
    %40 = vector.shape_cast %39 : vector<1x8x1024xbf16> to vector<8x1024xbf16>
    %cst_37 = arith.constant dense<0.000000e+00> : vector<8x1024xf32>
    %41 = tpu.matmul %38, %40, %cst_37 {dimension_numbers = #tpu.dot_dimension_numbers<[1], [0], [0], [1], [0, 0, 1, 1], [], []>} : vector<8x8xbf16>, vector<8x1024xbf16>, vector<8x1024xf32> -> vector<8x1024xf32>
    %42 = arith.addf %36, %41 : vector<8x1024xf32>
    %c7 = arith.constant 7 : index
    %c0_38 = arith.constant 0 : index
    %c0_39 = arith.constant 0 : index
    %43 = vector.load %arg1[%c7, %c0_38, %c0_39] : memref<9x8x8xbf16, #tpu.memory_space<vmem>>, vector<1x8x8xbf16>
    %44 = vector.shape_cast %43 : vector<1x8x8xbf16> to vector<8x8xbf16>
    %c0_40 = arith.constant 0 : index
    %c0_41 = arith.constant 0 : index
    %c61 = arith.constant 61 : index
    %45 = vector.load %arg3[%c0_40, %c0_41, %c61] : memref<1x8x1152xbf16, #tpu.memory_space<vmem>>, vector<1x8x1024xbf16>
    %46 = vector.shape_cast %45 : vector<1x8x1024xbf16> to vector<8x1024xbf16>
    %cst_42 = arith.constant dense<0.000000e+00> : vector<8x1024xf32>
    %47 = tpu.matmul %44, %46, %cst_42 {dimension_numbers = #tpu.dot_dimension_numbers<[1], [0], [0], [1], [0, 0, 1, 1], [], []>} : vector<8x8xbf16>, vector<8x1024xbf16>, vector<8x1024xf32> -> vector<8x1024xf32>
    %48 = arith.addf %42, %47 : vector<8x1024xf32>
    %c8 = arith.constant 8 : index
    %c0_43 = arith.constant 0 : index
    %c0_44 = arith.constant 0 : index
    %49 = vector.load %arg1[%c8, %c0_43, %c0_44] : memref<9x8x8xbf16, #tpu.memory_space<vmem>>, vector<1x8x8xbf16>
    %50 = vector.shape_cast %49 : vector<1x8x8xbf16> to vector<8x8xbf16>
    %c0_45 = arith.constant 0 : index
    %c0_46 = arith.constant 0 : index
    %c62 = arith.constant 62 : index
    %51 = vector.load %arg3[%c0_45, %c0_46, %c62] : memref<1x8x1152xbf16, #tpu.memory_space<vmem>>, vector<1x8x1024xbf16>
    %52 = vector.shape_cast %51 : vector<1x8x1024xbf16> to vector<8x1024xbf16>
    %cst_47 = arith.constant dense<0.000000e+00> : vector<8x1024xf32>
    %53 = tpu.matmul %50, %52, %cst_47 {dimension_numbers = #tpu.dot_dimension_numbers<[1], [0], [0], [1], [0, 0, 1, 1], [], []>} : vector<8x8xbf16>, vector<8x1024xbf16>, vector<8x1024xf32> -> vector<8x1024xf32>
    %54 = arith.addf %48, %53 : vector<8x1024xf32>
    %c0_48 = arith.constant 0 : index
    %c0_49 = arith.constant 0 : index
    %55 = vector.load %arg2[%c0_48, %c0_49] : memref<8x1xf32, #tpu.memory_space<vmem>>, vector<8x1xf32>
    %56 = vector.broadcast %55 : vector<8x1xf32> to vector<8x1024xf32>
    %57 = arith.addf %54, %56 : vector<8x1024xf32>
    %58 = vector.extract_strided_slice %57 {offsets = [0, 0], sizes = [1, 1024], strides = [1, 1]} : vector<8x1024xf32> to vector<1x1024xf32>
    %59 = arith.negf %58 : vector<1x1024xf32>
    %60 = math.exp %59 : vector<1x1024xf32>
    %cst_50 = arith.constant 1.000000e+00 : f32
    %61 = vector.broadcast %cst_50 : f32 to vector<1x1024xf32>
    %62 = arith.addf %61, %60 : vector<1x1024xf32>
    %63 = arith.divf %61, %62 : vector<1x1024xf32>
    %c0_51 = arith.constant 0 : index
    %c0_52 = arith.constant 0 : index
    %64 = vector.load %arg4[%c0_51, %c0_52] : memref<1x1024xf32, #tpu.memory_space<vmem>>, vector<1x1024xf32>
    tpu.vector_store %arg4[%c0_51, %c0_52], %63 {strides = array<i32>} : memref<1x1024xf32, #tpu.memory_space<vmem>>, vector<1x1024xf32>,
    return
  }
  func.func @transform_0(%arg0: i32) -> (i32, i32, i32) {
    %c0_i32 = arith.constant 0 : i32
    %c0_i32_0 = arith.constant 0 : i32
    %c0_i32_1 = arith.constant 0 : i32
    %c0_i32_2 = arith.constant 0 : i32
    return %c0_i32, %c0_i32_0, %c0_i32_1 : i32, i32, i32
  }
  func.func @transform_1(%arg0: i32) -> (i32, i32) {
    %c0_i32 = arith.constant 0 : i32
    %c0_i32_0 = arith.constant 0 : i32
    %c0_i32_1 = arith.constant 0 : i32
    return %c0_i32, %c0_i32_0 : i32, i32
  }
  func.func @transform_2(%arg0: i32) -> (i32, i32, i32) {
    %c0_i32 = arith.constant 0 : i32
    %c0_i32_0 = arith.constant 0 : i32
    %c0_i32_1 = arith.constant 0 : i32
    return %arg0, %c0_i32, %c0_i32_0 : i32, i32, i32
  }
  func.func @transform_3(%arg0: i32) -> (i32, i32) {
    %c0_i32 = arith.constant 0 : i32
    %c0_i32_0 = arith.constant 0 : i32
    return %c0_i32, %arg0 : i32, i32
  }
}

</mosaic_0001>

<bundles_post_ra>
// kernel: decoder_forward.5
= control target key start
LH: loop header
LB: loop body
LE: loop exit
PB: predicated region body
PF: predicated region fallthrough
CT: control target
= control target key end

     0   :  { %s1088_s21 = smov 0   ;;  %s1090_s22 = smov 0   ;;  %s1216_s0 = inlined_call_operand.vmem [shape: bf16[9,16,32], index: 0, kind: input, shape index: {}]   ;;  %s1217_s1 = inlined_call_operand.vmem [shape: f32[16,1], index: 1, kind: input, shape index: {}]   ;;  %s1218_s2 = inlined_call_operand.vmem [shape: f32[1,128], index: 2, kind: input, shape index: {}]   ;;  %s1219_s3 = inlined_call_operand.vmem [shape: bf16[2,32,256], index: 3, kind: input, shape index: {}]   ;;  %s1220_s4 = inlined_call_operand.vmem [shape: bf16[16,256], index: 4, kind: output, shape index: {0}]   ;;  %s1221_s5 = inlined_call_operand.vmem [shape: f32[2,16,1], index: 5, kind: output, shape index: {1}]   ;;  %s1222_s6 = inlined_call_operand.vmem [shape: f32[2,16,1], index: 6, kind: output, shape index: {2}]  }
   0x1   :  { %s1092_s23 = smov 0  }
   0x2 LB: > { %s1101_s24 = sadd.s32 4294967295, %s1042_s23   ;;  %s1103_s25 = sadd.s32 1, %s1042_s23   ;;  %s1042_s23 = sphi %s1092_s23, %s1226_s23   ;;  %s1038_s22 = sphi %s1090_s22, %s1225_s22   ;;  %s1034_s21 = sphi %s1088_s21, %s1224_s21  }
   0x3   : > { %s110_s26 = ssub.s32 %s1042_s23, %s1103_s25  ;;  %s113_s27 = sadd.s32 1, %s1038_s22 }
   0x4   : > { %p111_p0 = scmp.eq.s32.totalorder %s110_s26, 0  ;;  %p123_p1 = scmp.ne.s32.totalorder %s1038_s22, %s1034_s21 }
   0x5   : > { %p124_p2 = scmp.eq.s32.totalorder %s1101_s24, 1  ;;  %p864_p3 = scmp.ge.s32.totalorder %s1042_s23, 1 }
   0x6   : > { %s1111_s28 = scalar_select %p111_p0, %s1038_s22, %s113_s27  }
   0x7   : > { %p1113_p4 = por %p124_p2, %p123_p1  ;;  %p217_p5 = scmp.lt.s32.totalorder %s1042_s23, 3 }
   0x9   : > { %p218_p6 = pnand %p864_p3, %p217_p5 }
   0xa   : > { %p256_p7 = scmp.lt.s32.totalorder (!%p218_p6), %s1101_s24, 1  ;;  %s1044_s11 = smov (!%p218_p6), 127  }
   0xb   : > { %221 = sbr.rel (%p218_p6) target bundleno = 488 (0x1e8), region = 36  ;;  %s1045_s12 = smov (!%p218_p6), 126  }
   0xc   : > { %s1046_s13 = smov (!%p218_p6), 119   ;;  %s1047_s14 = smov (!%p218_p6), 118  }
   0xd   : > { %s1048_s15 = smov (!%p218_p6), 110   ;;  %s1049_s16 = smov (!%p218_p6), 109  }
   0xe   : > { %s1050_s17 = smov (!%p218_p6), 117   ;;  %s1051_s18 = smov (!%p218_p6), 108  }
   0xf   : > { %s239_s9 = sand.u32 (!%p218_p6), 1, %s1034_s21  }
  0x10   : > { %s1119_s30 = scalar_select %p256_p7, %s1101_s24, 1  ;;  %vm387_vm0 = vcmask 1031168   ;;  %vm314_vm1 = vcmask 1039360   ;;  %v964_v28 = vld [vmem:[%s1216_s0] sm:$0xff]  ;;  %v967_v30 = vld [vmem:[%s1216_s0 + $0x8] sm:$0xff]  ;;  %vm319_vm2 = vcmask 261120  }
  0x11   : > { %vm427_vm3 = vcmask 973824   ;;  %v972_v38 = vld [vmem:[%s1216_s0 + $0x10] sm:$0xff]  ;;  %v973_v40 = vld [vmem:[%s1216_s0 + $0x18] sm:$0xff]  ;;  %vm467_vm4 = vcmask 965632   ;;  %vm547_vm5 = vcmask 900096   ;;  %v974_v49 = vld [vmem:[%s1216_s0 + $0x20] sm:$0xff] }
  0x12   : > { %s961_s7 = sshll.u32 %s1119_s30, 5  ;;  %vm587_vm6 = vcmask 891904   ;;  %vm507_vm7 = vcmask 957440   ;;  %v652_v55 = vld [vmem:[%s1217_s1 + $0x8] sm:$0xff]  ;;  %v651_v56 = vld [vmem:[%s1217_s1] sm:$0xff]  ;;  %v1052_v57 = vmov 0  }
  0x13   : > { %s1125_s10 = scalar_lea.vmem %s1219_s3, %s961_s7  ;;  %1018 = vset.pattern.permute.xlu0 %v1052_v57  ;;  %1017 = vset.pattern.permute.xlu2 %v1052_v57  ;;  %v976_v62 = vld [vmem:[%s1216_s0 + $0x30] sm:$0xff]  ;;  %vm627_vm8 = vcmask 883712   ;;  %vm679_vm9 = vcmask 7168  }
  0x14   : > { %v888_v0 = vld [vmem:[%s1125_s10 + $0x10] sm:$0xf]  ;;  %v971_v1 = vld [vmem:[%s1125_s10 + $0x14] sm:$0xf0]  ;;  %v880_v2 = vld [vmem:[%s1125_s10] sm:$0xf] }
  0x15   : > { %v889_v3 = vor.u32 %v971_v1, %v888_v0  ;;  %v969_v4 = vld [vmem:[%s1125_s10 + $0x4] sm:$0xf0]  ;;  %v970_v6 = vld [vmem:[%s1125_s10 + $0x14] sm:$0xf]  ;;  %v890_v7 = vld [vmem:[%s1125_s10 + $0x18] sm:$0xf0] }
  0x16   : > { %v881_v5 = vor.u32 %v969_v4, %v880_v2  ;;  %v968_v8 = vld [vmem:[%s1125_s10 + $0x4] sm:$0xf]  ;;  %v882_v9 = vld [vmem:[%s1125_s10 + $0x8] sm:$0xf0]  ;;  %v893_v10 = vor.u32 %v970_v6, %v890_v7  ;;  %v905_v18 = vld [vmem:[%s1125_s10 + $0x10] sm:$0xf] }
  0x17   : > { %310 = vrot.lane.b32.xlu0 %v889_v3, %s1044_s11  ;;  %383 = vrot.lane.b32.xlu2 %v889_v3, %s1045_s12  ;;  %v885_v11 = vor.u32 %v968_v8, %v882_v9  ;;  %v966_v19 = vld [vmem:[%s1125_s10 + $0x14] sm:$0xf0]  ;;  %v901_v22 = vld [vmem:[%s1125_s10] sm:$0xf] }
  0x18   : > { %306 = vrot.lane.b32.xlu1 %v881_v5, %s1044_s11  ;;  %v906_v20 = vor.u32 %v966_v19, %v905_v18  ;;  %v965_v23 = vld [vmem:[%s1125_s10 + $0x4] sm:$0xf0]  ;;  %s865_s10 = sshll.u32 %s239_s9, 3 }
  0x19   : > { %v902_v26 = vor.u32 %v965_v23, %v901_v22  ;;  %v975_v8 = vld [vmem:[%s1216_s0 + $0x28] sm:$0xff] }
  0x1a   : > { %363 = vmatpush.bf16.msra.mxu1 %v906_v20 }
  0x1e   : > { %364 = vmatpush.bf16.msra.mxu1 %v902_v26 }
  0x1f   : > { %312 = vrot.lane.b32.xlu0 %v893_v10, %s1044_s11  ;;  %385 = vrot.lane.b32.xlu2 %v893_v10, %s1045_s12 }
  0x20   : > { %308 = vrot.lane.b32.xlu1 %v885_v11, %s1044_s11  ;;  %s241_s11 = scalar_lea.vmem [#allocation2], %s865_s10 }
  0x21   : > { %907 = vmatmul.msk.bf16.vlgmr.msra.gmra.mxu1 %vm319_vm2, %v964_v28 }
  0x27   : > { %423 = vrot.lane.b32.xlu0 %v889_v3, %s1046_s13  ;;  %379 = vrot.lane.b32.xlu2 %v881_v5, %s1045_s12 }
  0x28   : > { %425 = vrot.lane.b32.xlu1 %v893_v10, %s1046_s13 }
  0x2f   : > { %381 = vrot.lane.b32.xlu0 %v885_v11, %s1045_s12  ;;  %421 = vrot.lane.b32.xlu2 %v885_v11, %s1046_s13  ;;  %s962_s12 = sshll.u32 %s1119_s30, 4  ;;  %s958_s30 = sshll.u32 (%p1113_p4), %s1101_s24, 2 }
  0x30   : > { %419 = vrot.lane.b32.xlu1 %v881_v5, %s1046_s13  ;;  %s708_s20 = scalar_lea.vmem (%p1113_p4), %s1220_s4, %s958_s30 }
  0x37   : > { %463 = vrot.lane.b32.xlu0 %v889_v3, %s1047_s14  ;;  %459 = vrot.lane.b32.xlu2 %v881_v5, %s1047_s14 }
  0x38   : > { %465 = vrot.lane.b32.xlu1 %v893_v10, %s1047_s14 }
  0x3f   : > { %461 = vrot.lane.b32.xlu0 %v885_v11, %s1047_s14  ;;  %545 = vrot.lane.b32.xlu2 %v893_v10, %s1048_s15  ;;  %s265_s14 = scalar_lea.vmem %s1221_s5, %s962_s12 }
  0x40   : > { %543 = vrot.lane.b32.xlu1 %v889_v3, %s1048_s15 }
  0x47   : > { %583 = vrot.lane.b32.xlu0 %v889_v3, %s1049_s16  ;;  %503 = vrot.lane.b32.xlu2 %v889_v3, %s1050_s17 }
  0x48   : > { %585 = vrot.lane.b32.xlu1 %v893_v10, %s1049_s16 }
  0x4f   : > { %505 = vrot.lane.b32.xlu0 %v893_v10, %s1050_s17  ;;  %541 = vrot.lane.b32.xlu2 %v885_v11, %s1048_s15 }
  0x50   : > { %539 = vrot.lane.b32.xlu1 %v881_v5, %s1048_s15 }
  0x57   : > { %579 = vrot.lane.b32.xlu0 %v881_v5, %s1049_s16  ;;  %499 = vrot.lane.b32.xlu2 %v881_v5, %s1050_s17 }
  0x58   : > { %581 = vrot.lane.b32.xlu1 %v885_v11, %s1049_s16 }
  0x5f   : > { %501 = vrot.lane.b32.xlu0 %v885_v11, %s1050_s17  ;;  %625 = vrot.lane.b32.xlu2 %v893_v10, %s1051_s18  ;;  %s270_s17 = scalar_lea.vmem %s1222_s6, %s962_s12 }
  0x60   : > { %623 = vrot.lane.b32.xlu1 %v889_v3, %s1051_s18  ;;  %v977_v3 = vld [vmem:[%s1216_s0 + $0x38] sm:$0xff] }
  0x67   : > { %619 = vrot.lane.b32.xlu0 %v881_v5, %s1051_s18  ;;  %655 = vperm.xlu2 %1017, %v651_v56  }
  0x68   : > { %621 = vrot.lane.b32.xlu1 %v885_v11, %s1051_s18 }
  0x6f   : > { %660 = vperm.xlu0 %1018, %v652_v55  }
  0x71   : > { %v384_v12 = vpop.permute.xlu2 %383 }
  0x79   : > { %v386_v13 = vpop.permute.xlu2 %385 }
  0x7a   : > { %v389_v14 = vsel %vm387_vm0, %v384_v12, %v386_v13  ;;  %v978_v13 = vld [vmem:[%s1216_s0 + $0x40] sm:$0xff] }
  0x7b   : > { %401 = vmatpush.bf16.msra.mxu2 %v389_v14 }
  0x81   : > { %v380_v17 = vpop.permute.xlu2 %379 }
  0x89   : > { %v311_v15 = vpop.permute.xlu0 %310  ;;  %v422_v27 = vpop.permute.xlu2 %421 }
  0x8a   : > { %v307_v16 = vpop.permute.xlu1 %306 }
  0x91   : > { %v313_v21 = vpop.permute.xlu0 %312  ;;  %v460_v34 = vpop.permute.xlu2 %459 }
  0x92   : > { %v309_v24 = vpop.permute.xlu1 %308  ;;  %v316_v25 = vsel %vm314_vm1, %v311_v15, %v313_v21 }
  0x93   : > { %329 = vmatpush.bf16.msra.mxu0 %v316_v25  ;;  %v315_v29 = vsel %vm314_vm1, %v307_v16, %v309_v24 }
  0x97   : > { %330 = vmatpush.bf16.msra.mxu0 %v315_v29 }
  0x99   : > { %v424_v31 = vpop.permute.xlu0 %423  ;;  %v546_v41 = vpop.permute.xlu2 %545 }
  0x9a   : > { %v426_v32 = vpop.permute.xlu1 %425  ;;  %894 = vmatmul.msk.bf16.vlgmr.msra.gmra.mxu0 %vm319_vm2, %v967_v30 }
  0x9b   : > { %v429_v33 = vsel %vm427_vm3, %v424_v31, %v426_v32 }
  0x9c   : > { %441 = vmatpush.bf16.msra.mxu3 %v429_v33 }
  0x9e   : > { %v366_v16 = vpop.f32.mrf.mxu1 }
  0xa1   : > { %v382_v35 = vpop.permute.xlu0 %381  ;;  %v504_v48 = vpop.permute.xlu2 %503 }
  0xa2   : > { %v420_v36 = vpop.permute.xlu1 %419  ;;  %v388_v37 = vsel %vm387_vm0, %v380_v17, %v382_v35 }
  0xa3   : > { %402 = vmatpush.bf16.msra.mxu2 %v388_v37  ;;  %v428_v39 = vsel %vm427_vm3, %v420_v36, %v422_v27 }
  0xa4   : > { %442 = vmatpush.bf16.msra.mxu3 %v428_v39 }
  0xa6   : > { %914 = vmatmul.msk.bf16.vlgmr.msra.gmra.mxu2 %vm319_vm2, %v972_v38  ;;  %v368_v22 = vpop.f32.mrf.mxu1 }
  0xa7   : > { %921 = vmatmul.msk.bf16.vlgmr.msra.gmra.mxu3 %vm319_vm2, %v973_v40 }
  0xa9   : > { %v464_v42 = vpop.permute.xlu0 %463  ;;  %v542_v54 = vpop.permute.xlu2 %541 }
  0xaa   : > { %v466_v43 = vpop.permute.xlu1 %465 }
  0xab   : > { %v469_v44 = vsel %vm467_vm4, %v464_v42, %v466_v43  ;;  %v1019_v43 = vld [vmem:[%s1218_s2] ss:$0 sm:$0xff] }
  0xac   : > { %481 = vmatpush.bf16.msrb.mxu0 %v469_v44 }
  0xb1   : > { %v462_v45 = vpop.permute.xlu0 %461  ;;  %v500_v63 = vpop.permute.xlu2 %499 }
  0xb2   : > { %v544_v46 = vpop.permute.xlu1 %543  ;;  %v468_v47 = vsel %vm467_vm4, %v460_v34, %v462_v45 }
  0xb3   : > { %482 = vmatpush.bf16.msrb.mxu0 %v468_v47  ;;  %v549_v50 = vsel %vm547_vm5, %v544_v46, %v546_v41 }
  0xb4   : > { %561 = vmatpush.bf16.msrb.mxu2 %v549_v50 }
  0xb6   : > { %928 = vmatmul.msk.bf16.vlgmr.msrb.gmra.mxu0 %vm319_vm2, %v974_v49 }
  0xb9   : > { %v584_v51 = vpop.permute.xlu0 %583  ;;  %v626_v4 = vpop.permute.xlu2 %625 }
  0xba   : > { %v586_v52 = vpop.permute.xlu1 %585 }
  0xbb   : > { %v589_v53 = vsel %vm587_vm6, %v584_v51, %v586_v52 }
  0xbc   : > { %601 = vmatpush.bf16.msrb.mxu3 %v589_v53 }
  0xc1   : > { %v506_v58 = vpop.permute.xlu0 %505  ;;  %v656_v41 = vpop.permute.xlu2 %655 }
  0xc2   : > { %v540_v59 = vpop.permute.xlu1 %539  ;;  %v509_v60 = vsel %vm507_vm7, %v504_v48, %v506_v58 }
  0xc3   : > { %521 = vmatpush.bf16.msrb.mxu1 %v509_v60  ;;  %v548_v61 = vsel %vm547_vm5, %v540_v59, %v542_v54 }
  0xc4   : > { %562 = vmatpush.bf16.msrb.mxu2 %v548_v61 }
  0xc7   : > { %942 = vmatmul.msk.bf16.vlgmr.msrb.gmra.mxu2 %vm319_vm2, %v976_v62 }
  0xc9   : > { %v580_v0 = vpop.permute.xlu0 %579 }
  0xca   : > { %v582_v1 = vpop.permute.xlu1 %581 }
  0xcb   : > { %v588_v2 = vsel %vm587_vm6, %v580_v0, %v582_v1 }
  0xcc   : > { %602 = vmatpush.bf16.msrb.mxu3 %v588_v2 }
  0xcf   : > { %949 = vmatmul.msk.bf16.vlgmr.msrb.gmra.mxu3 %vm319_vm2, %v977_v3 }
  0xd1   : > { %v502_v5 = vpop.permute.xlu0 %501 }
  0xd2   : > { %v624_v6 = vpop.permute.xlu1 %623  ;;  %v508_v7 = vsel %vm507_vm7, %v500_v63, %v502_v5 }
  0xd3   : > { %v629_v9 = vsel %vm627_vm8, %v624_v6, %v626_v4  ;;  %522 = vmatpush.bf16.msrb.mxu1 %v508_v7 }
  0xd4   : > { %641 = vmatpush.bf16.msra.mxu0 %v629_v9 }
  0xd6   : > { %935 = vmatmul.msk.bf16.vlgmr.msrb.gmra.mxu1 %vm319_vm2, %v975_v8 }
  0xd9   : > { %v620_v10 = vpop.permute.xlu0 %619 }
  0xda   : > { %v622_v11 = vpop.permute.xlu1 %621 }
  0xdb   : > { %v628_v12 = vsel %vm627_vm8, %v620_v10, %v622_v11 }
  0xdc   : > { %642 = vmatpush.bf16.msra.mxu0 %v628_v12 }
  0xdf   : > { %956 = vmatmul.msk.bf16.vlgmr.msra.gmra.mxu0 %vm319_vm2, %v978_v13 }
  0xe1   : > { %v661_v52 = vpop.permute.xlu0 %660 }
 0x117   : > { %v332_v14 = vpop.f32.mrf.mxu0 }
 0x118   : > { %v367_v18 = vadd.f32 %v366_v16, %v332_v14 }
 0x11f   : > { %v334_v15 = vpop.f32.mrf.mxu0 }
 0x120   : > { %v369_v25 = vadd.f32 %v368_v22, %v334_v15 }
 0x129   : > { %v404_v17 = vpop.f32.mrf.mxu2 }
 0x12a   : > { %v444_v19 = vpop.f32.mrf.mxu3  ;;  %v409_v20 = vadd.f32 %v404_v17, %v367_v18 }
 0x12c   : > { %v449_v24 = vadd.f32 %v444_v19, %v409_v20 }
 0x131   : > { %v406_v23 = vpop.f32.mrf.mxu2 }
 0x132   : > { %v446_v26 = vpop.f32.mrf.mxu3  ;;  %v410_v28 = vadd.f32 %v406_v23, %v369_v25 }
 0x133   : > { %v484_v21 = vpop.f32.mrf.mxu0 }
 0x134   : > { %v489_v27 = vadd.f32 %v484_v21, %v449_v24  ;;  %v450_v33 = vadd.f32 %v446_v26, %v410_v28 }
 0x13b   : > { %v486_v30 = vpop.f32.mrf.mxu0 }
 0x13c   : > { %v490_v36 = vadd.f32 %v486_v30, %v450_v33 }
 0x14a   : > { %v564_v32 = vpop.f32.mrf.mxu2 }
 0x152   : > { %v604_v35 = vpop.f32.mrf.mxu3  ;;  %v566_v44 = vpop.f32.mrf.mxu2 }
 0x153   : > { %v524_v29 = vpop.f32.mrf.mxu1 }
 0x154   : > { %v529_v31 = vadd.f32 %v524_v29, %v489_v27 }
 0x156   : > { %v569_v34 = vadd.f32 %v564_v32, %v529_v31 }
 0x158   : > { %v609_v37 = vadd.f32 %v604_v35, %v569_v34 }
 0x15a   : > { %v606_v48 = vpop.f32.mrf.mxu3 }
 0x15b   : > { %v526_v38 = vpop.f32.mrf.mxu1 }
 0x15c   : > { %v530_v39 = vadd.f32 %v526_v38, %v490_v36  ;;  %v644_v40 = vpop.f32.mrf.mxu0 }
 0x15d   : > { %v649_v42 = vadd.f32 %v644_v40, %v609_v37 }
 0x15e   : > { %v570_v45 = vadd.f32 %v566_v44, %v530_v39 }
 0x15f   : > { %v663_v46 = vadd.f32 %v656_v41, %v649_v42 }
 0x160   : > { %v610_v49 = vadd.f32 %v606_v48, %v570_v45 }
 0x161   : > { %v673_v47 = vmul.f32 %v1019_v43, %v663_v46 }
 0x163   : > { %675 = vadd.xlane.f32.xlu1 %v673_v47  ;;  %v682_v50 = vmul.f32 %v673_v47, %v673_v47 }
 0x164   : > { %v646_v51 = vpop.f32.mrf.mxu0 }
 0x165   : > { %v650_v53 = vadd.f32 %v646_v51, %v610_v49  ;;  %684 = vadd.xlane.f32.xlu0 %v682_v50 }
 0x167   : > { %v664_v54 = vadd.f32 %v661_v52, %v650_v53 }
 0x169   : > { %v982_v55 = vpack.c.bf16 %v664_v54, %v663_v46  ;;  %v674_v56 = vmul.f32 %v1019_v43, %v664_v54 }
 0x16b   : > { %983 = vst [vmem:[%s241_s11] sm:$0xff] %v982_v55   ;;  %677 = vadd.xlane.f32.xlu2 %v674_v56  ;;  %v683_v57 = vmul.f32 %v674_v56, %v674_v56 }
 0x172   : > { %v725_v62 = vld [vmem:[%s241_s11] sm:$0xf] (%p1113_p4)  ;;  %v727_v63 = vld [vmem:[%s241_s11 + $0x4] sm:$0xf] (%p1113_p4) }
 0x173   : > { %686 = vadd.xlane.f32.xlu2 %v683_v57  ;;  %726 = vst [vmem:[%s708_s20] sm:$0xf] (%p1113_p4), %v725_v62 }
 0x174   : > { %728 = vst [vmem:[%s708_s20 + $0x8] sm:$0xf] (%p1113_p4), %v727_v63 }
 0x1d6   : > { %v676_v58 = vpop.xlane.xlu1 %675 }
 0x1d7   : > { %680 = vst.msk [vmem:[%s265_s14] sm:$0xff] %vm679_vm9, %v676_v58 }
 0x1d8   : > { %v685_v59 = vpop.xlane.xlu0 %684 }
 0x1d9   : > { %688 = vst.msk [vmem:[%s270_s17] sm:$0xff] %vm679_vm9, %v685_v59 }
 0x1de   : > { %v678_v60 = vpop.xlane.xlu2 %677 }
 0x1df   : > { %681 = vst.msk [vmem:[%s265_s14 + $0x8] sm:$0xff] %vm679_vm9, %v678_v60 }
 0x1e3   : > { %706 = sbr.rel (!%p1113_p4) target bundleno = 488 (0x1e8), region = 40 }
 0x1e6   : > { %v687_v61 = vpop.xlane.xlu2 %686 }
 0x1e7   : > { %689 = vst.msk [vmem:[%s270_s17 + $0x8] sm:$0xff] %vm679_vm9, %v687_v61 }
 0x1e8 PF: > { %p14_p8 = scmp.ge.s32.totalorder %s1103_s25, 4   ;;  %s1224_s21 = smov %s1038_s22 }
 0x1e9   : > { %s1225_s22 = smov %s1111_s28  ;;  %s1226_s23 = smov %s1103_s25 }
 0x1ea   :  { %16 = sbr.rel (!%p14_p8) target bundleno = 2 (0x2), region = 139 }

// kernel: decoder_forward.4
= control target key start
LH: loop header
LB: loop body
LE: loop exit
PB: predicated region body
PF: predicated region fallthrough
CT: control target
= control target key end

     0   :  { %vm199_vm0 = vcmask 1041408   ;;  %v1006_v0 = vmov 0   ;;  %vm174_vm1 = vcmask 31744   ;;  %vm807_vm2 = vcmask 11264   ;;  %s1514_s2 = inlined_call_operand.vmem [shape: f32[128,1], index: 2, kind: input, shape index: {}]   ;;  %s1515_s0 = inlined_call_operand.vmem [shape: bf16[4,2], index: 0, kind: input, shape index: {}]   ;;  %s1516_s1 = inlined_call_operand.vmem [shape: bf16[128,4], index: 1, kind: input, shape index: {}]   ;;  %s1517_s4 = inlined_call_operand.vmem [shape: f32[288,1], index: 4, kind: input, shape index: {}]   ;;  %s1518_s3 = inlined_call_operand.vmem [shape: bf16[288,128], index: 3, kind: input, shape index: {}]   ;;  %s1519_s5 = inlined_call_operand.vmem [shape: bf16[288,2], index: 5, kind: output, shape index: {}]  }
   0x1   :  { %1004 = vset.pattern.permute.xlu1 %v1006_v0  ;;  %1003 = vset.pattern.permute.xlu0 %v1006_v0  ;;  %v52_v1 = vld [vmem:[%s1514_s2 + $0x70] sm:$0xff]  ;;  %v50_v2 = vld [vmem:[%s1514_s2 + $0x60] sm:$0xff]  ;;  %v53_v7 = vld [vmem:[%s1514_s2 + $0x78] sm:$0xff] }
   0x2   :  { %v37_v3 = vld [vmem:[%s1515_s0] sm:$0x3]  ;;  %126 = vperm.xlu0 %1003, %v52_v1   ;;  %116 = vperm.xlu1 %1004, %v50_v2   ;;  %v48_v6 = vld [vmem:[%s1514_s2 + $0x50] sm:$0xff]  ;;  %v51_v8 = vld [vmem:[%s1514_s2 + $0x68] sm:$0xff] }
   0x3   :  { %v201_v4 = vsel %vm199_vm0, %v37_v3, 0  ;;  %v960_v5 = vld [vmem:[%s1516_s1] sm:$0xff]  ;;  %1005 = vset.pattern.permute.xlu2 %v1006_v0  ;;  %v49_v9 = vld [vmem:[%s1514_s2 + $0x58] sm:$0xff]  ;;  %v47_v10 = vld [vmem:[%s1514_s2 + $0x48] sm:$0xff] }
   0x4   :  { %210 = vmatpush.bf16.msra.mxu0 %v201_v4  ;;  %106 = vperm.xlu2 %1005, %v48_v6   ;;  %v46_v11 = vld [vmem:[%s1514_s2 + $0x40] sm:$0xff]  ;;  %v44_v12 = vld [vmem:[%s1514_s2 + $0x30] sm:$0xff]  ;;  %v961_v13 = vld [vmem:[%s1516_s1 + $0x8] sm:$0xff] }
   0x5   :  { %v45_v14 = vld [vmem:[%s1514_s2 + $0x38] sm:$0xff]  ;;  %v42_v15 = vld [vmem:[%s1514_s2 + $0x20] sm:$0xff]  ;;  %v43_v16 = vld [vmem:[%s1514_s2 + $0x28] sm:$0xff] }
   0x6   :  { %v41_v17 = vld [vmem:[%s1514_s2 + $0x18] sm:$0xff]  ;;  %v40_v18 = vld [vmem:[%s1514_s2 + $0x10] sm:$0xff]  ;;  %v38_v19 = vld [vmem:[%s1514_s2] sm:$0xff] }
   0x7   :  { %880 = vmatmul.msk.bf16.vlgmr.msra.gmra.mxu0 %vm174_vm1, %v960_v5  ;;  %v962_v20 = vld [vmem:[%s1516_s1 + $0x10] sm:$0xff]  ;;  %v312_v21 = vld [vmem:[%s1517_s4] sm:$0xff]  ;;  %v39_v22 = vld [vmem:[%s1514_s2 + $0x8] sm:$0xff] }
   0x8   :  { %v313_v23 = vld [vmem:[%s1517_s4 + $0x8] sm:$0xff]  ;;  %v315_v24 = vld [vmem:[%s1517_s4 + $0x18] sm:$0xff]  ;;  %v314_v25 = vld [vmem:[%s1517_s4 + $0x10] sm:$0xff] }
   0x9   :  { %v316_v26 = vld [vmem:[%s1517_s4 + $0x20] sm:$0xff]  ;;  %v963_v27 = vld [vmem:[%s1516_s1 + $0x18] sm:$0xff]  ;;  %v318_v28 = vld [vmem:[%s1517_s4 + $0x30] sm:$0xff] }
   0xa   :  { %131 = vperm.xlu0 %1003, %v53_v7   ;;  %121 = vperm.xlu1 %1004, %v51_v8   ;;  %v317_v29 = vld [vmem:[%s1517_s4 + $0x28] sm:$0xff]  ;;  %v319_v30 = vld [vmem:[%s1517_s4 + $0x38] sm:$0xff]  ;;  %v320_v32 = vld [vmem:[%s1517_s4 + $0x40] sm:$0xff] }
   0xb   :  { %v321_v31 = vld [vmem:[%s1517_s4 + $0x48] sm:$0xff]  ;;  %v322_v33 = vld [vmem:[%s1517_s4 + $0x50] sm:$0xff]  ;;  %v964_v34 = vld [vmem:[%s1516_s1 + $0x20] sm:$0xff] }
   0xc   :  { %111 = vperm.xlu2 %1005, %v49_v9   ;;  %v324_v35 = vld [vmem:[%s1517_s4 + $0x60] sm:$0xff]  ;;  %v323_v36 = vld [vmem:[%s1517_s4 + $0x58] sm:$0xff]  ;;  %v325_v37 = vld [vmem:[%s1517_s4 + $0x68] sm:$0xff] }
   0xd   :  { %v327_v38 = vld [vmem:[%s1517_s4 + $0x78] sm:$0xff]  ;;  %v326_v39 = vld [vmem:[%s1517_s4 + $0x70] sm:$0xff]  ;;  %v328_v40 = vld [vmem:[%s1517_s4 + $0x80] sm:$0xff] }
   0xe   :  { %v965_v41 = vld [vmem:[%s1516_s1 + $0x28] sm:$0xff]  ;;  %v330_v42 = vld [vmem:[%s1517_s4 + $0x90] sm:$0xff]  ;;  %v331_v44 = vld [vmem:[%s1517_s4 + $0x98] sm:$0xff] }
   0xf   :  { %v329_v43 = vld [vmem:[%s1517_s4 + $0x88] sm:$0xff]  ;;  %v332_v46 = vld [vmem:[%s1517_s4 + $0xa0] sm:$0xff]  ;;  %v334_v47 = vld [vmem:[%s1517_s4 + $0xb0] sm:$0xff] }
  0x10   :  { %v333_v45 = vld [vmem:[%s1517_s4 + $0xa8] sm:$0xff]  ;;  %v966_v48 = vld [vmem:[%s1516_s1 + $0x30] sm:$0xff]  ;;  %v336_v49 = vld [vmem:[%s1517_s4 + $0xc0] sm:$0xff] }
  0x11   :  { %v335_v50 = vld [vmem:[%s1517_s4 + $0xb8] sm:$0xff]  ;;  %v337_v51 = vld [vmem:[%s1517_s4 + $0xc8] sm:$0xff]  ;;  %v338_v53 = vld [vmem:[%s1517_s4 + $0xd0] sm:$0xff] }
  0x12   :  { %101 = vperm.xlu1 %1004, %v47_v10   ;;  %96 = vperm.xlu0 %1003, %v46_v11   ;;  %v339_v52 = vld [vmem:[%s1517_s4 + $0xd8] sm:$0xff]  ;;  %v340_v55 = vld [vmem:[%s1517_s4 + $0xe0] sm:$0xff]  ;;  %v342_v59 = vld [vmem:[%s1517_s4 + $0xf0] sm:$0xff] }
  0x13   :  { %v967_v56 = vld [vmem:[%s1516_s1 + $0x38] sm:$0xff]  ;;  %v341_v60 = vld [vmem:[%s1517_s4 + $0xe8] sm:$0xff]  ;;  %v344_v2 = vld [vmem:[%s1517_s4 + $0x100] sm:$0xff] }
  0x14   :  { %86 = vperm.xlu2 %1005, %v44_v12   ;;  %v343_v61 = vld [vmem:[%s1517_s4 + $0xf8] sm:$0xff]  ;;  %v345_v1 = vld [vmem:[%s1517_s4 + $0x108] sm:$0xff]  ;;  %v346_v3 = vld [vmem:[%s1517_s4 + $0x110] sm:$0xff] }
  0x15   :  { %v347_v8 = vld [vmem:[%s1517_s4 + $0x118] sm:$0xff] }
  0x17   :  { %881 = vmatmul.msk.bf16.gmra.mxu0 %vm174_vm1, %v961_v13 }
  0x1a   :  { %91 = vperm.xlu0 %1003, %v45_v14   ;;  %76 = vperm.xlu1 %1004, %v42_v15  }
  0x1c   :  { %81 = vperm.xlu2 %1005, %v43_v16  }
  0x22   :  { %71 = vperm.xlu1 %1004, %v41_v17   ;;  %66 = vperm.xlu0 %1003, %v40_v18  }
  0x24   :  { %56 = vperm.xlu2 %1005, %v38_v19  }
  0x27   :  { %882 = vmatmul.msk.bf16.gmra.mxu0 %vm174_vm1, %v962_v20 }
  0x2a   :  { %350 = vperm.xlu1 %1004, %v312_v21   ;;  %61 = vperm.xlu0 %1003, %v39_v22  }
  0x2c   :  { %355 = vperm.xlu2 %1005, %v313_v23  }
  0x32   :  { %365 = vperm.xlu1 %1004, %v315_v24   ;;  %360 = vperm.xlu0 %1003, %v314_v25  }
  0x34   :  { %370 = vperm.xlu2 %1005, %v316_v26  }
  0x37   :  { %883 = vmatmul.msk.bf16.gmra.mxu0 %vm174_vm1, %v963_v27 }
  0x3a   :  { %380 = vperm.xlu1 %1004, %v318_v28   ;;  %375 = vperm.xlu0 %1003, %v317_v29  }
  0x3c   :  { %385 = vperm.xlu2 %1005, %v319_v30  }
  0x42   :  { %395 = vperm.xlu1 %1004, %v321_v31   ;;  %390 = vperm.xlu0 %1003, %v320_v32  }
  0x44   :  { %400 = vperm.xlu2 %1005, %v322_v33  }
  0x47   :  { %884 = vmatmul.msk.bf16.gmra.mxu0 %vm174_vm1, %v964_v34 }
  0x4a   :  { %410 = vperm.xlu1 %1004, %v324_v35   ;;  %405 = vperm.xlu0 %1003, %v323_v36  }
  0x4c   :  { %415 = vperm.xlu2 %1005, %v325_v37  }
  0x52   :  { %425 = vperm.xlu1 %1004, %v327_v38   ;;  %420 = vperm.xlu0 %1003, %v326_v39  }
  0x54   :  { %430 = vperm.xlu2 %1005, %v328_v40  }
  0x57   :  { %885 = vmatmul.msk.bf16.gmra.mxu0 %vm174_vm1, %v965_v41 }
  0x5a   :  { %440 = vperm.xlu1 %1004, %v330_v42   ;;  %435 = vperm.xlu0 %1003, %v329_v43  }
  0x5c   :  { %445 = vperm.xlu2 %1005, %v331_v44  }
  0x5e   :  { %v1200_v54 = vpop.permute.xlu2 %106 }
  0x62   :  { %455 = vperm.xlu1 %1004, %v333_v45   ;;  %450 = vperm.xlu0 %1003, %v332_v46  }
  0x64   :  { %460 = vperm.xlu2 %1005, %v334_v47  }
  0x66   :  { %v1222_v62 = vpop.permute.xlu2 %111 }
  0x67   :  { %886 = vmatmul.msk.bf16.gmra.mxu0 %vm174_vm1, %v966_v48 }
  0x6a   :  { %470 = vperm.xlu1 %1004, %v336_v49   ;;  %465 = vperm.xlu0 %1003, %v335_v50  }
  0x6c   :  { %475 = vperm.xlu2 %1005, %v337_v51  }
  0x6e   :  { %v87_v5 = vpop.permute.xlu2 %86 }
  0x72   :  { %485 = vperm.xlu1 %1004, %v339_v52   ;;  %480 = vperm.xlu0 %1003, %v338_v53  }
  0x74   :  { %v1208_v57 = vpop.permute.xlu0 %126  ;;  %v1210_v58 = vpop.permute.xlu1 %116  ;;  %490 = vperm.xlu2 %1005, %v340_v55  }
  0x76   :  { %v82_v11 = vpop.permute.xlu2 %81 }
  0x77   :  { %887 = vmatmul.msk.bf16.gmra.mxu0 %vm174_vm1, %v967_v56 }
  0x7a   :  { %500 = vperm.xlu1 %1004, %v342_v59   ;;  %495 = vperm.xlu0 %1003, %v341_v60  }
  0x7c   :  { %v132_v63 = vpop.permute.xlu0 %131  ;;  %505 = vperm.xlu2 %1005, %v343_v61   ;;  %v122_v0 = vpop.permute.xlu1 %121 }
  0x7e   :  { %v57_v15 = vpop.permute.xlu2 %56 }
  0x82   :  { %515 = vperm.xlu1 %1004, %v345_v1   ;;  %510 = vperm.xlu0 %1003, %v344_v2  }
  0x84   :  { %v212_v4 = vpop.f32.mrf.mxu0  ;;  %v1233_v6 = vpop.permute.xlu0 %96  ;;  %520 = vperm.xlu2 %1005, %v346_v3  }
  0x85   :  { %v102_v7 = vpop.permute.xlu1 %101  ;;  %v213_v17 = vadd.f32 %v212_v4, %v57_v15  ;;  %v983_v15 = vld [vmem:[%s1518_s3 + $0x78] sm:$0xff] }
  0x87   :  { %v252_v25 = vmax.f32 %v213_v17, 0.0  ;;  %v977_v17 = vld [vmem:[%s1518_s3 + $0x48] sm:$0xff] }
  0x8a   :  { %525 = vperm.xlu0 %1003, %v347_v8  }
  0x8c   :  { %v214_v9 = vpop.f32.mrf.mxu0  ;;  %v92_v10 = vpop.permute.xlu0 %91 }
  0x8d   :  { %v77_v12 = vpop.permute.xlu1 %76 }
  0x94   :  { %v217_v13 = vpop.f32.mrf.mxu0  ;;  %v67_v14 = vpop.permute.xlu0 %66 }
  0x95   :  { %v218_v16 = vadd.f32 %v217_v13, %v67_v14  ;;  %v72_v18 = vpop.permute.xlu1 %71  ;;  %v970_v13 = vld [vmem:[%s1518_s3 + $0x10] sm:$0xff]  ;;  %v976_v14 = vld [vmem:[%s1518_s3 + $0x40] sm:$0xff] }
  0x97   :  { %v254_v23 = vmax.f32 %v218_v16, 0.0  ;;  %v971_v16 = vld [vmem:[%s1518_s3 + $0x18] sm:$0xff] }
  0x9c   :  { %v219_v19 = vpop.f32.mrf.mxu0  ;;  %v62_v21 = vpop.permute.xlu0 %61 }
  0x9d   :  { %v220_v20 = vadd.f32 %v219_v19, %v72_v18  ;;  %v215_v22 = vadd.f32 %v214_v9, %v62_v21  ;;  %v981_v9 = vld [vmem:[%s1518_s3 + $0x68] sm:$0xff]  ;;  %v984_v18 = vld [vmem:[%s1518_s3 + $0x80] sm:$0xff]  ;;  %v351_v19 = vpop.permute.xlu1 %350  ;;  %v356_v21 = vpop.permute.xlu2 %355 }
  0x9f   :  { %v255_v24 = vmax.f32 %v220_v20, 0.0  ;;  %v253_v26 = vmax.f32 %v215_v22, 0.0 }
  0xa1   :  { %v1238_v27 = vpack.c.bf16 %v255_v24, %v254_v23  ;;  %v1240_v28 = vpack.c.bf16 %v253_v26, %v252_v25  ;;  %v972_v23 = vld [vmem:[%s1518_s3 + $0x20] sm:$0xff]  ;;  %v978_v24 = vld [vmem:[%s1518_s3 + $0x50] sm:$0xff]  ;;  %v985_v25 = vld [vmem:[%s1518_s3 + $0x88] sm:$0xff] }
  0xa4   :  { %v222_v29 = vpop.f32.mrf.mxu0  ;;  %v1289_v20 = vpop.permute.xlu0 %360 }
  0xa5   :  { %v223_v30 = vadd.f32 %v222_v29, %v77_v12  ;;  %v982_v12 = vld [vmem:[%s1518_s3 + $0x70] sm:$0xff]  ;;  %v1291_v22 = vpop.permute.xlu1 %365 }
  0xa7   :  { %v256_v33 = vmax.f32 %v223_v30, 0.0  ;;  %v973_v30 = vld [vmem:[%s1518_s3 + $0x28] sm:$0xff] }
  0xac   :  { %v224_v31 = vpop.f32.mrf.mxu0  ;;  %v1302_v26 = vpop.permute.xlu0 %375 }
  0xad   :  { %v225_v32 = vadd.f32 %v224_v31, %v82_v11  ;;  %v975_v11 = vld [vmem:[%s1518_s3 + $0x38] sm:$0xff] }
  0xae   :  { %v979_v31 = vld [vmem:[%s1518_s3 + $0x58] sm:$0xff] }
  0xaf   :  { %v257_v34 = vmax.f32 %v225_v32, 0.0 }
  0xb1   :  { %v306_v35 = vpack.c.bf16 %v257_v34, %v256_v33 }
  0xb4   :  { %v227_v36 = vpop.f32.mrf.mxu0  ;;  %v1308_v29 = vpop.permute.xlu0 %390 }
  0xb5   :  { %v228_v37 = vadd.f32 %v227_v36, %v87_v5 }
  0xb7   :  { %v258_v40 = vmax.f32 %v228_v37, 0.0 }
  0xbc   :  { %v229_v38 = vpop.f32.mrf.mxu0  ;;  %v1320_v34 = vpop.permute.xlu0 %405 }
  0xbd   :  { %v230_v39 = vadd.f32 %v229_v38, %v92_v10  ;;  %v969_v10 = vld [vmem:[%s1518_s3 + $0x8] sm:$0xff]  ;;  %v980_v38 = vld [vmem:[%s1518_s3 + $0x60] sm:$0xff] }
  0xbf   :  { %v259_v41 = vmax.f32 %v230_v39, 0.0 }
  0xc1   :  { %v307_v42 = vpack.c.bf16 %v259_v41, %v258_v40 }
  0xc4   :  { %v232_v43 = vpop.f32.mrf.mxu0  ;;  %v421_v37 = vpop.permute.xlu0 %420 }
  0xcc   :  { %v234_v44 = vpop.f32.mrf.mxu0  ;;  %v1329_v41 = vpop.permute.xlu0 %435 }
  0xcd   :  { %v235_v4 = vadd.f32 %v234_v44, %v102_v7  ;;  %v974_v7 = vld [vmem:[%s1518_s3 + $0x30] sm:$0xff] }
  0xd4   :  { %v237_v45 = vpop.f32.mrf.mxu0  ;;  %v1335_v44 = vpop.permute.xlu0 %450 }
  0xd5   :  { %v238_v2 = vadd.f32 %v237_v45, %v1200_v54 }
  0xdc   :  { %v239_v46 = vpop.f32.mrf.mxu0 }
  0xdd   :  { %v240_v60 = vadd.f32 %v239_v46, %v1222_v62 }
  0xdf   :  { %v263_v5 = vmax.f32 %v240_v60, 0.0 }
  0xe4   :  { %v242_v47 = vpop.f32.mrf.mxu0 }
  0xe5   :  { %v243_v55 = vadd.f32 %v242_v47, %v1210_v58  ;;  %v261_v58 = vmax.f32 %v235_v4, 0.0  ;;  %v1341_v47 = vpop.permute.xlu0 %465 }
  0xe7   :  { %v264_v3 = vmax.f32 %v243_v55, 0.0 }
  0xec   :  { %v244_v48 = vpop.f32.mrf.mxu0 }
  0xed   :  { %v245_v52 = vadd.f32 %v244_v48, %v122_v0  ;;  %v233_v0 = vadd.f32 %v232_v43, %v1233_v6  ;;  %v968_v6 = vld [vmem:[%s1518_s3] sm:$0xff] }
  0xef   :  { %v265_v61 = vmax.f32 %v245_v52, 0.0  ;;  %v260_v62 = vmax.f32 %v233_v0, 0.0 }
  0xf1   :  { %v308_v54 = vpack.c.bf16 %v261_v58, %v260_v62 }
  0xf4   :  { %v247_v49 = vpop.f32.mrf.mxu0 }
  0xf5   :  { %v248_v50 = vadd.f32 %v247_v49, %v1208_v57  ;;  %v310_v57 = vpack.c.bf16 %v265_v61, %v264_v3 }
  0xf7   :  { %v266_v56 = vmax.f32 %v248_v50, 0.0 }
  0xfc   :  { %v249_v51 = vpop.f32.mrf.mxu0 }
  0xfd   :  { %v250_v53 = vadd.f32 %v249_v51, %v132_v63  ;;  %v262_v63 = vmax.f32 %v238_v2, 0.0 }
  0xff   :  { %v267_v59 = vmax.f32 %v250_v53, 0.0  ;;  %v309_v8 = vpack.c.bf16 %v263_v5, %v262_v63 }
 0x101   :  { %v311_v1 = vpack.c.bf16 %v267_v59, %v266_v56  ;;  %v481_v56 = vpop.permute.xlu0 %480 }
 0x103   :  { %636 = vmatpush.bf16.msra.mxu1 %v311_v1  ;;  %986 = vmatpush.bf16.msra.mxu2 %v311_v1 }
 0x104   :  { %987 = vmatpush.bf16.msra.mxu3 %v311_v1 }
 0x107   :  { %637 = vmatpush.bf16.msra.mxu1 %v310_v57  ;;  %988 = vmatpush.bf16.msra.mxu2 %v310_v57 }
 0x108   :  { %989 = vmatpush.bf16.msra.mxu3 %v310_v57 }
 0x10b   :  { %638 = vmatpush.bf16.msra.mxu1 %v309_v8  ;;  %990 = vmatpush.bf16.msra.mxu2 %v309_v8 }
 0x10c   :  { %991 = vmatpush.bf16.msra.mxu3 %v309_v8 }
 0x10f   :  { %639 = vmatpush.bf16.msra.mxu1 %v308_v54  ;;  %992 = vmatpush.bf16.msra.mxu2 %v308_v54 }
 0x110   :  { %993 = vmatpush.bf16.msra.mxu3 %v308_v54 }
 0x113   :  { %640 = vmatpush.bf16.msra.mxu1 %v307_v42  ;;  %994 = vmatpush.bf16.msra.mxu2 %v307_v42 }
 0x114   :  { %995 = vmatpush.bf16.msra.mxu3 %v307_v42 }
 0x117   :  { %641 = vmatpush.bf16.msra.mxu1 %v306_v35  ;;  %996 = vmatpush.bf16.msra.mxu2 %v306_v35 }
 0x118   :  { %997 = vmatpush.bf16.msra.mxu3 %v306_v35 }
 0x11b   :  { %642 = vmatpush.bf16.msra.mxu1 %v1238_v27  ;;  %998 = vmatpush.bf16.msra.mxu2 %v1238_v27 }
 0x11c   :  { %999 = vmatpush.bf16.msra.mxu3 %v1238_v27  ;;  %v1304_v27 = vpop.permute.xlu2 %370 }
 0x11f   :  { %643 = vmatpush.bf16.msra.mxu1 %v1240_v28  ;;  %1000 = vmatpush.bf16.msra.mxu2 %v1240_v28 }
 0x120   :  { %1001 = vmatpush.bf16.msra.mxu3 %v1240_v28  ;;  %v1306_v28 = vpop.permute.xlu1 %380 }
 0x122   :  { %644 = vmatmul.bf16.vlgmr.msra.gmra.mxu1 %v968_v6  ;;  %674 = vmatmul.bf16.vlgmr.msra.gmra.mxu2 %v974_v7 }
 0x123   :  { %709 = vmatmul.bf16.vlgmr.msra.gmra.mxu3 %v981_v9 }
 0x124   :  { %v1316_v32 = vpop.permute.xlu2 %385 }
 0x128   :  { %v1318_v33 = vpop.permute.xlu1 %395 }
 0x12c   :  { %v1322_v35 = vpop.permute.xlu2 %400 }
 0x130   :  { %v411_v36 = vpop.permute.xlu1 %410 }
 0x132   :  { %649 = vmatmul.bf16.gmra.mxu1 %v969_v10  ;;  %679 = vmatmul.bf16.gmra.mxu2 %v975_v11 }
 0x133   :  { %714 = vmatmul.bf16.gmra.mxu3 %v982_v12 }
 0x134   :  { %v416_v39 = vpop.permute.xlu2 %415 }
 0x138   :  { %v1327_v40 = vpop.permute.xlu1 %425 }
 0x13c   :  { %v1331_v42 = vpop.permute.xlu2 %430 }
 0x140   :  { %v1333_v43 = vpop.permute.xlu1 %440 }
 0x142   :  { %654 = vmatmul.bf16.gmra.mxu1 %v970_v13  ;;  %684 = vmatmul.bf16.gmra.mxu2 %v976_v14 }
 0x143   :  { %719 = vmatmul.bf16.gmra.mxu3 %v983_v15 }
 0x144   :  { %v1337_v45 = vpop.permute.xlu2 %445 }
 0x148   :  { %v1339_v46 = vpop.permute.xlu1 %455 }
 0x14c   :  { %v1343_v50 = vpop.permute.xlu2 %460 }
 0x150   :  { %v1345_v52 = vpop.permute.xlu1 %470 }
 0x152   :  { %659 = vmatmul.bf16.gmra.mxu1 %v971_v16  ;;  %689 = vmatmul.bf16.gmra.mxu2 %v977_v17 }
 0x153   :  { %724 = vmatmul.bf16.gmra.mxu3 %v984_v18 }
 0x154   :  { %v1351_v63 = vpop.permute.xlu2 %475 }
 0x158   :  { %v486_v62 = vpop.permute.xlu1 %485 }
 0x15c   :  { %v491_v18 = vpop.permute.xlu2 %490 }
 0x162   :  { %664 = vmatmul.bf16.gmra.mxu1 %v972_v23  ;;  %694 = vmatmul.bf16.gmra.mxu2 %v978_v24 }
 0x163   :  { %729 = vmatmul.bf16.gmra.mxu3 %v985_v25 }
 0x172   :  { %669 = vmatmul.bf16.gmra.mxu1 %v973_v30  ;;  %699 = vmatmul.bf16.gmra.mxu2 %v979_v31 }
 0x182   :  { %704 = vmatmul.bf16.gmra.mxu2 %v980_v38 }
 0x19f   :  { %v645_v48 = vpop.f32.mrf.mxu1 }
 0x1a0   :  { %v646_v49 = vadd.f32 %v645_v48, %v351_v19  ;;  %v496_v48 = vpop.permute.xlu0 %495 }
 0x1a2   :  { %v735_v51 = vmax.f32 %v646_v49, 0.0 }
 0x1a4   :  { %v771_v53 = vpack.c.bf16 %v735_v51, %v735_v51 }
 0x1a5   :  { %v675_v55 = vpop.f32.mrf.mxu2 }
 0x1a6   :  { %808 = vst.msk [vmem:[%s1519_s5] sm:$0xf] %vm807_vm2, %v771_v53  ;;  %v676_v59 = vadd.f32 %v675_v55, %v411_v36  ;;  %v710_v60 = vpop.f32.mrf.mxu3 }
 0x1a7   :  { %v711_v61 = vadd.f32 %v710_v60, %v481_v56  ;;  %v647_v1 = vpop.f32.mrf.mxu1 }
 0x1a8   :  { %v747_v2 = vmax.f32 %v676_v59, 0.0  ;;  %v648_v3 = vadd.f32 %v647_v1, %v356_v21 }
 0x1a9   :  { %v761_v4 = vmax.f32 %v711_v61, 0.0 }
 0x1aa   :  { %v783_v5 = vpack.c.bf16 %v747_v2, %v747_v2  ;;  %v736_v57 = vmax.f32 %v648_v3, 0.0  ;;  %v501_v3 = vpop.permute.xlu1 %500 }
 0x1ab   :  { %v797_v0 = vpack.c.bf16 %v761_v4, %v761_v4 }
 0x1ac   :  { %820 = vst.msk [vmem:[%s1519_s5 + $0x30] sm:$0xf] %vm807_vm2, %v783_v5  ;;  %v772_v58 = vpack.c.bf16 %v736_v57, %v736_v57 }
 0x1ad   :  { %834 = vst.msk [vmem:[%s1519_s5 + $0x68] sm:$0xf] %vm807_vm2, %v797_v0  ;;  %v677_v8 = vpop.f32.mrf.mxu2 }
 0x1ae   :  { %809 = vst.msk [vmem:[%s1519_s5 + $0x4] sm:$0xf] %vm807_vm2, %v772_v58  ;;  %v678_v54 = vadd.f32 %v677_v8, %v416_v39  ;;  %v712_v6 = vpop.f32.mrf.mxu3 }
 0x1af   :  { %v713_v7 = vadd.f32 %v712_v6, %v486_v62  ;;  %v650_v9 = vpop.f32.mrf.mxu1 }
 0x1b0   :  { %v748_v10 = vmax.f32 %v678_v54, 0.0  ;;  %v651_v11 = vadd.f32 %v650_v9, %v1289_v20  ;;  %v506_v9 = vpop.permute.xlu2 %505 }
 0x1b1   :  { %v762_v12 = vmax.f32 %v713_v7, 0.0 }
 0x1b2   :  { %v784_v13 = vpack.c.bf16 %v748_v10, %v748_v10  ;;  %v737_v14 = vmax.f32 %v651_v11, 0.0 }
 0x1b3   :  { %v798_v15 = vpack.c.bf16 %v762_v12, %v762_v12 }
 0x1b4   :  { %821 = vst.msk [vmem:[%s1519_s5 + $0x34] sm:$0xf] %vm807_vm2, %v784_v13  ;;  %v773_v16 = vpack.c.bf16 %v737_v14, %v737_v14 }
 0x1b5   :  { %835 = vst.msk [vmem:[%s1519_s5 + $0x6c] sm:$0xf] %vm807_vm2, %v798_v15  ;;  %v680_v17 = vpop.f32.mrf.mxu2 }
 0x1b6   :  { %810 = vst.msk [vmem:[%s1519_s5 + $0x8] sm:$0xf] %vm807_vm2, %v773_v16  ;;  %v681_v19 = vadd.f32 %v680_v17, %v421_v37  ;;  %v715_v20 = vpop.f32.mrf.mxu3 }
 0x1b7   :  { %v716_v21 = vadd.f32 %v715_v20, %v491_v18  ;;  %v652_v23 = vpop.f32.mrf.mxu1  ;;  %v511_v20 = vpop.permute.xlu0 %510 }
 0x1b8   :  { %v749_v24 = vmax.f32 %v681_v19, 0.0  ;;  %v653_v25 = vadd.f32 %v652_v23, %v1291_v22 }
 0x1b9   :  { %v763_v30 = vmax.f32 %v716_v21, 0.0 }
 0x1ba   :  { %v785_v31 = vpack.c.bf16 %v749_v24, %v749_v24  ;;  %v738_v36 = vmax.f32 %v653_v25, 0.0 }
 0x1bb   :  { %v799_v38 = vpack.c.bf16 %v763_v30, %v763_v30 }
 0x1bc   :  { %822 = vst.msk [vmem:[%s1519_s5 + $0x38] sm:$0xf] %vm807_vm2, %v785_v31  ;;  %v774_v39 = vpack.c.bf16 %v738_v36, %v738_v36 }
 0x1bd   :  { %836 = vst.msk [vmem:[%s1519_s5 + $0x70] sm:$0xf] %vm807_vm2, %v799_v38  ;;  %v682_v37 = vpop.f32.mrf.mxu2 }
 0x1be   :  { %811 = vst.msk [vmem:[%s1519_s5 + $0xc] sm:$0xf] %vm807_vm2, %v774_v39  ;;  %v683_v22 = vadd.f32 %v682_v37, %v1327_v40  ;;  %v717_v49 = vpop.f32.mrf.mxu3 }
 0x1bf   :  { %v718_v51 = vadd.f32 %v717_v49, %v496_v48  ;;  %v655_v53 = vpop.f32.mrf.mxu1  ;;  %v516_v48 = vpop.permute.xlu1 %515 }
 0x1c0   :  { %v750_v55 = vmax.f32 %v683_v22, 0.0  ;;  %v656_v56 = vadd.f32 %v655_v53, %v1304_v27 }
 0x1c1   :  { %v764_v59 = vmax.f32 %v718_v51, 0.0 }
 0x1c2   :  { %v786_v60 = vpack.c.bf16 %v750_v55, %v750_v55  ;;  %v739_v61 = vmax.f32 %v656_v56, 0.0 }
 0x1c3   :  { %v800_v1 = vpack.c.bf16 %v764_v59, %v764_v59 }
 0x1c4   :  { %823 = vst.msk [vmem:[%s1519_s5 + $0x3c] sm:$0xf] %vm807_vm2, %v786_v60  ;;  %v775_v2 = vpack.c.bf16 %v739_v61, %v739_v61 }
 0x1c5   :  { %837 = vst.msk [vmem:[%s1519_s5 + $0x74] sm:$0xf] %vm807_vm2, %v800_v1  ;;  %v685_v40 = vpop.f32.mrf.mxu2 }
 0x1c6   :  { %812 = vst.msk [vmem:[%s1519_s5 + $0x10] sm:$0xf] %vm807_vm2, %v775_v2  ;;  %v686_v27 = vadd.f32 %v685_v40, %v1331_v42  ;;  %v720_v4 = vpop.f32.mrf.mxu3  ;;  %v521_v2 = vpop.permute.xlu2 %520 }
 0x1c7   :  { %v721_v5 = vadd.f32 %v720_v4, %v501_v3  ;;  %v657_v57 = vpop.f32.mrf.mxu1 }
 0x1c8   :  { %v751_v0 = vmax.f32 %v686_v27, 0.0  ;;  %v658_v58 = vadd.f32 %v657_v57, %v1302_v26 }
 0x1c9   :  { %v765_v8 = vmax.f32 %v721_v5, 0.0 }
 0x1ca   :  { %v787_v62 = vpack.c.bf16 %v751_v0, %v751_v0  ;;  %v740_v54 = vmax.f32 %v658_v58, 0.0 }
 0x1cb   :  { %v801_v6 = vpack.c.bf16 %v765_v8, %v765_v8 }
 0x1cc   :  { %824 = vst.msk [vmem:[%s1519_s5 + $0x40] sm:$0xf] %vm807_vm2, %v787_v62  ;;  %v776_v7 = vpack.c.bf16 %v740_v54, %v740_v54  ;;  %v526_v54 = vpop.permute.xlu0 %525 }
 0x1cd   :  { %838 = vst.msk [vmem:[%s1519_s5 + $0x78] sm:$0xf] %vm807_vm2, %v801_v6  ;;  %v687_v42 = vpop.f32.mrf.mxu2 }
 0x1ce   :  { %813 = vst.msk [vmem:[%s1519_s5 + $0x14] sm:$0xf] %vm807_vm2, %v776_v7  ;;  %v688_v26 = vadd.f32 %v687_v42, %v1329_v41  ;;  %v722_v10 = vpop.f32.mrf.mxu3 }
 0x1cf   :  { %v723_v11 = vadd.f32 %v722_v10, %v506_v9  ;;  %v660_v12 = vpop.f32.mrf.mxu1 }
 0x1d0   :  { %v752_v13 = vmax.f32 %v688_v26, 0.0  ;;  %v661_v14 = vadd.f32 %v660_v12, %v1306_v28 }
 0x1d1   :  { %v766_v15 = vmax.f32 %v723_v11, 0.0 }
 0x1d2   :  { %v788_v16 = vpack.c.bf16 %v752_v13, %v752_v13  ;;  %v741_v17 = vmax.f32 %v661_v14, 0.0 }
 0x1d3   :  { %v802_v18 = vpack.c.bf16 %v766_v15, %v766_v15 }
 0x1d4   :  { %825 = vst.msk [vmem:[%s1519_s5 + $0x44] sm:$0xf] %vm807_vm2, %v788_v16  ;;  %v777_v19 = vpack.c.bf16 %v741_v17, %v741_v17 }
 0x1d5   :  { %839 = vst.msk [vmem:[%s1519_s5 + $0x7c] sm:$0xf] %vm807_vm2, %v802_v18  ;;  %v690_v41 = vpop.f32.mrf.mxu2 }
 0x1d6   :  { %814 = vst.msk [vmem:[%s1519_s5 + $0x18] sm:$0xf] %vm807_vm2, %v777_v19  ;;  %v691_v28 = vadd.f32 %v690_v41, %v1333_v43  ;;  %v725_v21 = vpop.f32.mrf.mxu3 }
 0x1d7   :  { %v726_v23 = vadd.f32 %v725_v21, %v511_v20  ;;  %v662_v24 = vpop.f32.mrf.mxu1 }
 0x1d8   :  { %v753_v25 = vmax.f32 %v691_v28, 0.0  ;;  %v663_v30 = vadd.f32 %v662_v24, %v1316_v32 }
 0x1d9   :  { %v767_v31 = vmax.f32 %v726_v23, 0.0 }
 0x1da   :  { %v789_v36 = vpack.c.bf16 %v753_v25, %v753_v25  ;;  %v742_v38 = vmax.f32 %v663_v30, 0.0 }
 0x1db   :  { %v803_v39 = vpack.c.bf16 %v767_v31, %v767_v31 }
 0x1dc   :  { %826 = vst.msk [vmem:[%s1519_s5 + $0x48] sm:$0xf] %vm807_vm2, %v789_v36  ;;  %v778_v37 = vpack.c.bf16 %v742_v38, %v742_v38 }
 0x1dd   :  { %840 = vst.msk [vmem:[%s1519_s5 + $0x80] sm:$0xf] %vm807_vm2, %v803_v39  ;;  %v692_v43 = vpop.f32.mrf.mxu2 }
 0x1de   :  { %815 = vst.msk [vmem:[%s1519_s5 + $0x1c] sm:$0xf] %vm807_vm2, %v778_v37  ;;  %v693_v32 = vadd.f32 %v692_v43, %v1337_v45  ;;  %v727_v22 = vpop.f32.mrf.mxu3 }
 0x1df   :  { %v728_v49 = vadd.f32 %v727_v22, %v516_v48  ;;  %v665_v51 = vpop.f32.mrf.mxu1 }
 0x1e0   :  { %v754_v53 = vmax.f32 %v693_v32, 0.0  ;;  %v666_v55 = vadd.f32 %v665_v51, %v1308_v29 }
 0x1e1   :  { %v768_v56 = vmax.f32 %v728_v49, 0.0 }
 0x1e2   :  { %v790_v59 = vpack.c.bf16 %v754_v53, %v754_v53  ;;  %v743_v60 = vmax.f32 %v666_v55, 0.0 }
 0x1e3   :  { %v804_v61 = vpack.c.bf16 %v768_v56, %v768_v56 }
 0x1e4   :  { %827 = vst.msk [vmem:[%s1519_s5 + $0x4c] sm:$0xf] %vm807_vm2, %v790_v59  ;;  %v779_v1 = vpack.c.bf16 %v743_v60, %v743_v60 }
 0x1e5   :  { %841 = vst.msk [vmem:[%s1519_s5 + $0x84] sm:$0xf] %vm807_vm2, %v804_v61  ;;  %v695_v45 = vpop.f32.mrf.mxu2 }
 0x1e6   :  { %816 = vst.msk [vmem:[%s1519_s5 + $0x20] sm:$0xf] %vm807_vm2, %v779_v1  ;;  %v696_v29 = vadd.f32 %v695_v45, %v1335_v44  ;;  %v730_v40 = vpop.f32.mrf.mxu3 }
 0x1e7   :  { %v731_v3 = vadd.f32 %v730_v40, %v521_v2  ;;  %v667_v27 = vpop.f32.mrf.mxu1 }
 0x1e8   :  { %v755_v4 = vmax.f32 %v696_v29, 0.0  ;;  %v668_v5 = vadd.f32 %v667_v27, %v1318_v33 }
 0x1e9   :  { %v769_v57 = vmax.f32 %v731_v3, 0.0 }
 0x1ea   :  { %v791_v0 = vpack.c.bf16 %v755_v4, %v755_v4  ;;  %v744_v58 = vmax.f32 %v668_v5, 0.0 }
 0x1eb   :  { %v805_v8 = vpack.c.bf16 %v769_v57, %v769_v57 }
 0x1ec   :  { %828 = vst.msk [vmem:[%s1519_s5 + $0x50] sm:$0xf] %vm807_vm2, %v791_v0  ;;  %v780_v62 = vpack.c.bf16 %v744_v58, %v744_v58 }
 0x1ed   :  { %842 = vst.msk [vmem:[%s1519_s5 + $0x88] sm:$0xf] %vm807_vm2, %v805_v8  ;;  %v697_v44 = vpop.f32.mrf.mxu2 }
 0x1ee   :  { %817 = vst.msk [vmem:[%s1519_s5 + $0x24] sm:$0xf] %vm807_vm2, %v780_v62  ;;  %v698_v33 = vadd.f32 %v697_v44, %v1339_v46  ;;  %v732_v6 = vpop.f32.mrf.mxu3 }
 0x1ef   :  { %v733_v7 = vadd.f32 %v732_v6, %v526_v54  ;;  %v670_v42 = vpop.f32.mrf.mxu1 }
 0x1f0   :  { %v756_v9 = vmax.f32 %v698_v33, 0.0  ;;  %v671_v26 = vadd.f32 %v670_v42, %v1322_v35 }
 0x1f1   :  { %v770_v10 = vmax.f32 %v733_v7, 0.0 }
 0x1f2   :  { %v792_v11 = vpack.c.bf16 %v756_v9, %v756_v9  ;;  %v745_v12 = vmax.f32 %v671_v26, 0.0 }
 0x1f3   :  { %v806_v13 = vpack.c.bf16 %v770_v10, %v770_v10 }
 0x1f4   :  { %829 = vst.msk [vmem:[%s1519_s5 + $0x54] sm:$0xf] %vm807_vm2, %v792_v11  ;;  %v781_v14 = vpack.c.bf16 %v745_v12, %v745_v12 }
 0x1f5   :  { %843 = vst.msk [vmem:[%s1519_s5 + $0x8c] sm:$0xf] %vm807_vm2, %v806_v13  ;;  %v700_v46 = vpop.f32.mrf.mxu2 }
 0x1f6   :  { %818 = vst.msk [vmem:[%s1519_s5 + $0x28] sm:$0xf] %vm807_vm2, %v781_v14  ;;  %v701_v35 = vadd.f32 %v700_v46, %v1343_v50 }
 0x1f7   :  { %v672_v15 = vpop.f32.mrf.mxu1 }
 0x1f8   :  { %v757_v16 = vmax.f32 %v701_v35, 0.0  ;;  %v673_v17 = vadd.f32 %v672_v15, %v1320_v34 }
 0x1fa   :  { %v793_v18 = vpack.c.bf16 %v757_v16, %v757_v16  ;;  %v746_v19 = vmax.f32 %v673_v17, 0.0 }
 0x1fc   :  { %830 = vst.msk [vmem:[%s1519_s5 + $0x58] sm:$0xf] %vm807_vm2, %v793_v18  ;;  %v782_v41 = vpack.c.bf16 %v746_v19, %v746_v19 }
 0x1fd   :  { %v702_v20 = vpop.f32.mrf.mxu2 }
 0x1fe   :  { %819 = vst.msk [vmem:[%s1519_s5 + $0x2c] sm:$0xf] %vm807_vm2, %v782_v41  ;;  %v703_v50 = vadd.f32 %v702_v20, %v1341_v47 }
 0x200   :  { %v758_v28 = vmax.f32 %v703_v50, 0.0 }
 0x202   :  { %v794_v21 = vpack.c.bf16 %v758_v28, %v758_v28 }
 0x204   :  { %831 = vst.msk [vmem:[%s1519_s5 + $0x5c] sm:$0xf] %vm807_vm2, %v794_v21 }
 0x205   :  { %v705_v34 = vpop.f32.mrf.mxu2 }
 0x206   :  { %v706_v23 = vadd.f32 %v705_v34, %v1345_v52 }
 0x208   :  { %v759_v24 = vmax.f32 %v706_v23, 0.0 }
 0x20a   :  { %v795_v25 = vpack.c.bf16 %v759_v24, %v759_v24 }
 0x20c   :  { %832 = vst.msk [vmem:[%s1519_s5 + $0x60] sm:$0xf] %vm807_vm2, %v795_v25 }
 0x20d   :  { %v707_v30 = vpop.f32.mrf.mxu2 }
 0x20e   :  { %v708_v47 = vadd.f32 %v707_v30, %v1351_v63 }
 0x210   :  { %v760_v31 = vmax.f32 %v708_v47, 0.0 }
 0x212   :  { %v796_v36 = vpack.c.bf16 %v760_v31, %v760_v31 }
 0x214   :  { %833 = vst.msk [vmem:[%s1519_s5 + $0x64] sm:$0xf] %vm807_vm2, %v796_v36 }

// kernel: decoder_forward.6
= control target key start
LH: loop header
LB: loop body
LE: loop exit
PB: predicated region body
PF: predicated region fallthrough
CT: control target
= control target key end

     0   :  { %s1162_s21 = smov 0   ;;  %s1285_s0 = inlined_call_operand.vmem [shape: bf16[9,8,16], index: 0, kind: input, shape index: {}]   ;;  %s1286_s1 = inlined_call_operand.vmem [shape: f32[8,1], index: 1, kind: input, shape index: {}]   ;;  %s1287_s2 = inlined_call_operand.vmem [shape: f32[1,384], index: 2, kind: input, shape index: {}]   ;;  %s1288_s3 = inlined_call_operand.vmem [shape: bf16[2,16,512], index: 3, kind: input, shape index: {}]   ;;  %s1289_s4 = inlined_call_operand.vmem [shape: bf16[8,768], index: 4, kind: output, shape index: {0}]   ;;  %s1290_s5 = inlined_call_operand.vmem [shape: f32[2,8,1], index: 5, kind: output, shape index: {1}]   ;;  %s1291_s6 = inlined_call_operand.vmem [shape: f32[2,8,1], index: 6, kind: output, shape index: {2}]  }
   0x1 LB: > { %s1168_s22 = sadd.s32 4294967295, %s1116_s21   ;;  %p1012_p0 = scmp.ge.s32.totalorder %s1116_s21, 1  ;;  %s1116_s21 = sphi %s1162_s21, %s17_s21  }
   0x2   : > { %p217_p1 = scmp.lt.s32.totalorder %s1116_s21, 3 }
   0x4   : > { %p218_p2 = pnand %p1012_p0, %p217_p1 }
   0x5   : > { %p255_p3 = scmp.lt.s32.totalorder (!%p218_p2), %s1168_s22, 1  ;;  %s1118_s28 = smov (!%p218_p2), 127  }
   0x6   : > { %221 = sbr.rel (%p218_p2) target bundleno = 500 (0x1f4), region = 36  ;;  %s1119_s29 = smov (!%p218_p2), 126  }
   0x7   : > { %s1120_s30 = smov (!%p218_p2), 112   ;;  %s1121_s7 = smov (!%p218_p2), 111  }
   0x8   : > { %s1122_s8 = smov (!%p218_p2), 110   ;;  %s1123_s9 = smov (!%p218_p2), 96  }
   0x9   : > { %s1124_s10 = smov (!%p218_p2), 95   ;;  %s1125_s11 = smov (!%p218_p2), 94  }
   0xb   : > { %s1174_s23 = scalar_select %p255_p3, %s1168_s22, 1  ;;  %v275_v15 = vld [vmem:[%s1285_s0] sm:$0xf]  ;;  %vm317_vm0 = vcmask 130048   ;;  %vm310_vm1 = vcmask 1039360   ;;  %vm428_vm2 = vcmask 1031168  }
   0xc   : > { %v1018_v34 = vld [vmem:[%s1285_s0 + $0x4] sm:$0xf]  ;;  %vm490_vm3 = vcmask 916480   ;;  %v1053_v40 = vld [vmem:[%s1285_s0 + $0x8] sm:$0xf]  ;;  %vm552_vm4 = vcmask 908288  }
   0xd   : > { %s1083_s24 = sshll.u32 %s1174_s23, 5  ;;  %v1057_v50 = vld [vmem:[%s1285_s0 + $0xc] sm:$0xf]  ;;  %vm614_vm5 = vcmask 900096   ;;  %vm676_vm6 = vcmask 785408   ;;  %vm738_vm7 = vcmask 777216  }
   0xe   : > { %s1180_s27 = scalar_lea.vmem %s1288_s3, %s1083_s24  ;;  %v1065_v62 = vld [vmem:[%s1285_s0 + $0x14] sm:$0xf]  ;;  %vm800_vm8 = vcmask 769024   ;;  %s1016_s17 = sshll.u32 %s1174_s23, 3  ;;  %vm880_vm9 = vcmask 7168  }
   0xf   : > { %v1029_v0 = vld [vmem:[%s1180_s27 + $0x8] sm:$0xf]  ;;  %v1090_v1 = vld [vmem:[%s1180_s27 + $0x14] sm:$0xf0]  ;;  %v1021_v2 = vld [vmem:[%s1180_s27] sm:$0xf]  ;;  %s269_s20 = scalar_lea.vmem %s1290_s5, %s1016_s17  ;;  %s273_s26 = scalar_lea.vmem %s1291_s6, %s1016_s17 }
  0x10   : > { %v1030_v3 = vor.u32 %v1090_v1, %v1029_v0  ;;  %v1089_v4 = vld [vmem:[%s1180_s27 + $0xc] sm:$0xf0]  ;;  %v1088_v6 = vld [vmem:[%s1180_s27 + $0xc] sm:$0xf]  ;;  %v1031_v7 = vld [vmem:[%s1180_s27 + $0x18] sm:$0xf0] }
  0x11   : > { %v1022_v5 = vor.u32 %v1089_v4, %v1021_v2  ;;  %v1087_v8 = vld [vmem:[%s1180_s27 + $0x4] sm:$0xf]  ;;  %v1023_v9 = vld [vmem:[%s1180_s27 + $0x10] sm:$0xf0]  ;;  %v1034_v10 = vor.u32 %v1088_v6, %v1031_v7  ;;  %v1040_v12 = vld [vmem:[%s1180_s27] sm:$0xf] }
  0x12   : > { %306 = vrot.lane.b32.xlu0 %v1030_v3, %s1118_s28  ;;  %v1026_v11 = vor.u32 %v1087_v8, %v1023_v9  ;;  %v1085_v13 = vld [vmem:[%s1180_s27 + $0xc] sm:$0xf0]  ;;  %v1084_v21 = vld [vmem:[%s1180_s27 + $0x4] sm:$0xf]  ;;  %v1042_v22 = vld [vmem:[%s1180_s27 + $0x10] sm:$0xf0] }
  0x13   : > { %302 = vrot.lane.b32.xlu1 %v1022_v5, %s1118_s28  ;;  %420 = vrot.lane.b32.xlu2 %v1022_v5, %s1119_s29  ;;  %v1041_v14 = vor.u32 %v1085_v13, %v1040_v12  ;;  %v1048_v23 = vld [vmem:[%s1180_s27 + $0x8] sm:$0xf]  ;;  %v1086_v24 = vld [vmem:[%s1180_s27 + $0x14] sm:$0xf0]  ;;  %v1045_v26 = vor.u32 %v1084_v21, %v1042_v22 }
  0x14   : > { %v1049_v30 = vor.u32 %v1086_v24, %v1048_v23  ;;  %v1061_v4 = vld [vmem:[%s1285_s0 + $0x10] sm:$0xf]  ;;  %v1077_v21 = vld [vmem:[%s1285_s0 + $0x20] sm:$0xf]  ;;  %v1126_v24 = vmov 0  }
  0x15   : > { %386 = vmatpush.bf16.msra.mxu3 %v1041_v14  ;;  %v852_v23 = vld [vmem:[%s1286_s1] sm:$0xff]  ;;  %1108 = vset.pattern.permute.xlu2 %v1126_v24 }
  0x16   : > { %1109 = vset.pattern.permute.xlu0 %v1126_v24 }
  0x18   : > { %1050 = vmatmul.msk.bf16.vlgmr.msra.gmra.mxu3 %vm317_vm0, %v275_v15 }
  0x1a   : > { %308 = vrot.lane.b32.xlu0 %v1034_v10, %s1118_s28 }
  0x1b   : > { %304 = vrot.lane.b32.xlu1 %v1026_v11, %s1118_s28  ;;  %422 = vrot.lane.b32.xlu2 %v1026_v11, %s1119_s29 }
  0x22   : > { %424 = vrot.lane.b32.xlu0 %v1030_v3, %s1119_s29 }
  0x23   : > { %484 = vrot.lane.b32.xlu1 %v1026_v11, %s1120_s30  ;;  %486 = vrot.lane.b32.xlu2 %v1030_v3, %s1120_s30 }
  0x2a   : > { %426 = vrot.lane.b32.xlu0 %v1034_v10, %s1119_s29 }
  0x2b   : > { %482 = vrot.lane.b32.xlu1 %v1022_v5, %s1120_s30  ;;  %488 = vrot.lane.b32.xlu2 %v1034_v10, %s1120_s30 }
  0x32   : > { %548 = vrot.lane.b32.xlu0 %v1030_v3, %s1121_s7 }
  0x33   : > { %550 = vrot.lane.b32.xlu1 %v1034_v10, %s1121_s7  ;;  %544 = vrot.lane.b32.xlu2 %v1022_v5, %s1121_s7 }
  0x3a   : > { %546 = vrot.lane.b32.xlu0 %v1026_v11, %s1121_s7 }
  0x3b   : > { %606 = vrot.lane.b32.xlu1 %v1022_v5, %s1122_s8  ;;  %608 = vrot.lane.b32.xlu2 %v1026_v11, %s1122_s8 }
  0x42   : > { %668 = vrot.lane.b32.xlu0 %v1022_v5, %s1123_s9 }
  0x43   : > { %670 = vrot.lane.b32.xlu1 %v1026_v11, %s1123_s9  ;;  %610 = vrot.lane.b32.xlu2 %v1030_v3, %s1122_s8 }
  0x4a   : > { %612 = vrot.lane.b32.xlu0 %v1034_v10, %s1122_s8 }
  0x4b   : > { %672 = vrot.lane.b32.xlu1 %v1030_v3, %s1123_s9  ;;  %732 = vrot.lane.b32.xlu2 %v1026_v11, %s1124_s10 }
  0x52   : > { %734 = vrot.lane.b32.xlu0 %v1030_v3, %s1124_s10 }
  0x53   : > { %674 = vrot.lane.b32.xlu1 %v1034_v10, %s1123_s9  ;;  %730 = vrot.lane.b32.xlu2 %v1022_v5, %s1124_s10 }
  0x5a   : > { %736 = vrot.lane.b32.xlu0 %v1034_v10, %s1124_s10 }
  0x5b   : > { %796 = vrot.lane.b32.xlu1 %v1030_v3, %s1125_s11  ;;  %798 = vrot.lane.b32.xlu2 %v1034_v10, %s1125_s11  ;;  %v1069_v10 = vld [vmem:[%s1285_s0 + $0x18] sm:$0xf] }
  0x62   : > { %792 = vrot.lane.b32.xlu0 %v1022_v5, %s1125_s11 }
  0x63   : > { %794 = vrot.lane.b32.xlu1 %v1026_v11, %s1125_s11  ;;  %855 = vperm.xlu2 %1108, %v852_v23   ;;  %s260_s11 = smul.u32 3, %s1168_s22 }
  0x65   : > { %p261_p4 = scmp.lt.s32.totalorder %s260_s11, 5 }
  0x67   : > { %s1293_s11 = smov (!%p261_p4, %s260_s11), 5 }
  0x68   : > { %s1015_s22 = sshll.u32 %s1293_s11, 2 }
  0x69   : > { %s264_s16 = scalar_lea.vmem %s1289_s4, %s1015_s22 }
  0x6d   : > { %v421_v16 = vpop.permute.xlu2 %420 }
  0x75   : > { %v423_v17 = vpop.permute.xlu2 %422 }
  0x76   : > { %v429_v29 = vsel %vm428_vm2, %v421_v16, %v423_v17 }
  0x7d   : > { %v487_v18 = vpop.permute.xlu2 %486 }
  0x84   : > { %v307_v19 = vpop.permute.xlu0 %306 }
  0x85   : > { %v303_v20 = vpop.permute.xlu1 %302  ;;  %v489_v31 = vpop.permute.xlu2 %488 }
  0x86   : > { %v493_v36 = vsel %vm490_vm3, %v487_v18, %v489_v31 }
  0x8c   : > { %v309_v25 = vpop.permute.xlu0 %308 }
  0x8d   : > { %v305_v27 = vpop.permute.xlu1 %304  ;;  %v313_v28 = vsel %vm310_vm1, %v307_v19, %v309_v25  ;;  %v545_v41 = vpop.permute.xlu2 %544 }
  0x8e   : > { %v311_v32 = vsel %vm310_vm1, %v303_v20, %v305_v27  ;;  %v312_v33 = vsel %vm310_vm1, %v305_v27, %v307_v19  ;;  %354 = vmatpush.bf16.msra.mxu2 %v313_v28  ;;  %v1073_v19 = vld [vmem:[%s1285_s0 + $0x1c] sm:$0xf] }
  0x8f   : > { %328 = vmatpush.bf16.msra.mxu0 %v311_v32  ;;  %341 = vmatpush.bf16.msra.mxu1 %v312_v33 }
  0x91   : > { %1037 = vmatmul.msk.bf16.vlgmr.msra.gmra.mxu2 %vm317_vm0, %v1018_v34 }
  0x92   : > { %445 = vmatpush.bf16.msrb.mxu2 %v429_v29  ;;  %1035 = vmatmul.msk.bf16.vlgmr.msra.gmra.mxu0 %vm317_vm0, %v1018_v34 }
  0x93   : > { %399 = vmatpush.bf16.msrb.mxu0 %v1045_v26  ;;  %412 = vmatpush.bf16.msrb.mxu1 %v1049_v30 }
  0x94   : > { %1036 = vmatmul.msk.bf16.vlgmr.msra.gmra.mxu1 %vm317_vm0, %v1018_v34  ;;  %v425_v35 = vpop.permute.xlu0 %424 }
  0x95   : > { %v485_v37 = vpop.permute.xlu1 %484  ;;  %v430_v38 = vsel %vm428_vm2, %v423_v17, %v425_v35  ;;  %v609_v46 = vpop.permute.xlu2 %608 }
  0x96   : > { %458 = vmatpush.bf16.msrb.mxu3 %v430_v38  ;;  %v492_v39 = vsel %vm490_vm3, %v485_v37, %v487_v18 }
  0x97   : > { %520 = vmatpush.bf16.msra.mxu2 %v492_v39 }
  0x99   : > { %1055 = vmatmul.msk.bf16.vlgmr.msrb.gmra.mxu3 %vm317_vm0, %v1053_v40 }
  0x9a   : > { %533 = vmatpush.bf16.msra.mxu3 %v493_v36 }
  0x9b   : > { %v388_v22 = vpop.f32.mrf.mxu3 }
  0x9c   : > { %v427_v42 = vpop.permute.xlu0 %426 }
  0x9d   : > { %v431_v43 = vsel %vm428_vm2, %v425_v35, %v427_v42  ;;  %v483_v44 = vpop.permute.xlu1 %482  ;;  %v611_v51 = vpop.permute.xlu2 %610 }
  0x9e   : > { %v491_v45 = vsel %vm490_vm3, %v483_v44, %v485_v37  ;;  %471 = vmatpush.bf16.msra.mxu0 %v431_v43  ;;  %v616_v57 = vsel %vm614_vm5, %v609_v46, %v611_v51 }
  0x9f   : > { %507 = vmatpush.bf16.msra.mxu1 %v491_v45 }
  0xa1   : > { %1054 = vmatmul.msk.bf16.vlgmr.msrb.gmra.mxu2 %vm317_vm0, %v1053_v40 }
  0xa2   : > { %1051 = vmatmul.msk.bf16.vlgmr.msrb.gmra.mxu0 %vm317_vm0, %v275_v15 }
  0xa3   : > { %v390_v25 = vpop.f32.mrf.mxu3 }
  0xa4   : > { %1052 = vmatmul.msk.bf16.vlgmr.msrb.gmra.mxu1 %vm317_vm0, %v275_v15  ;;  %v549_v47 = vpop.permute.xlu0 %548  ;;  %v865_v25 = vld [vmem:[%s1287_s2] sm:$0x7] }
  0xa5   : > { %v551_v48 = vpop.permute.xlu1 %550  ;;  %v733_v58 = vpop.permute.xlu2 %732 }
  0xa6   : > { %v555_v49 = vsel %vm552_vm4, %v549_v47, %v551_v48 }
  0xa7   : > { %595 = vmatpush.bf16.msrb.mxu2 %v555_v49 }
  0xa9   : > { %1060 = vmatmul.msk.bf16.vlgmr.msra.gmra.mxu3 %vm317_vm0, %v1057_v50 }
  0xac   : > { %v547_v52 = vpop.permute.xlu0 %546 }
  0xad   : > { %v553_v53 = vsel %vm552_vm4, %v545_v41, %v547_v52  ;;  %v554_v54 = vsel %vm552_vm4, %v547_v52, %v549_v47  ;;  %v607_v55 = vpop.permute.xlu1 %606  ;;  %v731_v2 = vpop.permute.xlu2 %730 }
  0xae   : > { %582 = vmatpush.bf16.msrb.mxu1 %v554_v54  ;;  %v615_v56 = vsel %vm614_vm5, %v607_v55, %v609_v46  ;;  %569 = vmatpush.bf16.msrb.mxu0 %v553_v53  ;;  %v739_v5 = vsel %vm738_vm7, %v731_v2, %v733_v58 }
  0xaf   : > { %631 = vmatpush.bf16.msrb.mxu3 %v615_v56 }
  0xb1   : > { %1059 = vmatmul.msk.bf16.vlgmr.msra.gmra.mxu2 %vm317_vm0, %v1057_v50 }
  0xb2   : > { %1056 = vmatmul.msk.bf16.vlgmr.msra.gmra.mxu0 %vm317_vm0, %v1053_v40 }
  0xb3   : > { %644 = vmatpush.bf16.msra.mxu0 %v616_v57 }
  0xb4   : > { %1058 = vmatmul.msk.bf16.vlgmr.msra.gmra.mxu1 %vm317_vm0, %v1057_v50  ;;  %v669_v59 = vpop.permute.xlu0 %668 }
  0xb5   : > { %v671_v60 = vpop.permute.xlu1 %670  ;;  %v799_v14 = vpop.permute.xlu2 %798 }
  0xb6   : > { %v677_v61 = vsel %vm676_vm6, %v669_v59, %v671_v60 }
  0xb7   : > { %693 = vmatpush.bf16.msra.mxu2 %v677_v61 }
  0xb9   : > { %1066 = vmatmul.msk.bf16.vlgmr.msrb.gmra.mxu3 %vm317_vm0, %v1065_v62 }
  0xbc   : > { %v613_v63 = vpop.permute.xlu0 %612 }
  0xbd   : > { %v617_v0 = vsel %vm614_vm5, %v611_v51, %v613_v63  ;;  %v673_v1 = vpop.permute.xlu1 %672 }
  0xbe   : > { %v678_v3 = vsel %vm676_vm6, %v671_v60, %v673_v1  ;;  %657 = vmatpush.bf16.msra.mxu1 %v617_v0 }
  0xbf   : > { %706 = vmatpush.bf16.msra.mxu3 %v678_v3 }
  0xc1   : > { %1064 = vmatmul.msk.bf16.vlgmr.msrb.gmra.mxu2 %vm317_vm0, %v1061_v4 }
  0xc2   : > { %1062 = vmatmul.msk.bf16.vlgmr.msrb.gmra.mxu0 %vm317_vm0, %v1061_v4 }
  0xc4   : > { %1063 = vmatmul.msk.bf16.vlgmr.msrb.gmra.mxu1 %vm317_vm0, %v1061_v4  ;;  %v735_v6 = vpop.permute.xlu0 %734 }
  0xc5   : > { %755 = vmatpush.bf16.msrb.mxu1 %v739_v5  ;;  %v740_v7 = vsel %vm738_vm7, %v733_v58, %v735_v6  ;;  %v675_v8 = vpop.permute.xlu1 %674 }
  0xc6   : > { %v679_v9 = vsel %vm676_vm6, %v673_v1, %v675_v8  ;;  %768 = vmatpush.bf16.msrb.mxu2 %v740_v7 }
  0xc7   : > { %719 = vmatpush.bf16.msrb.mxu0 %v679_v9 }
  0xc9   : > { %1071 = vmatmul.msk.bf16.vlgmr.msra.gmra.mxu3 %vm317_vm0, %v1069_v10 }
  0xcc   : > { %v737_v11 = vpop.permute.xlu0 %736 }
  0xcd   : > { %v741_v12 = vsel %vm738_vm7, %v735_v6, %v737_v11  ;;  %v797_v13 = vpop.permute.xlu1 %796 }
  0xce   : > { %781 = vmatpush.bf16.msrb.mxu3 %v741_v12  ;;  %v803_v15 = vsel %vm800_vm8, %v797_v13, %v799_v14 }
  0xd1   : > { %1070 = vmatmul.msk.bf16.vlgmr.msra.gmra.mxu2 %vm317_vm0, %v1069_v10 }
  0xd2   : > { %1067 = vmatmul.msk.bf16.vlgmr.msra.gmra.mxu0 %vm317_vm0, %v1065_v62  ;;  %843 = vmatpush.bf16.msra.mxu2 %v803_v15 }
  0xd4   : > { %1068 = vmatmul.msk.bf16.vlgmr.msra.gmra.mxu1 %vm317_vm0, %v1065_v62  ;;  %v793_v16 = vpop.permute.xlu0 %792 }
  0xd5   : > { %v795_v17 = vpop.permute.xlu1 %794 }
  0xd6   : > { %v802_v18 = vsel %vm800_vm8, %v795_v17, %v797_v13  ;;  %v801_v20 = vsel %vm800_vm8, %v793_v16, %v795_v17 }
  0xd7   : > { %830 = vmatpush.bf16.msra.mxu1 %v802_v18  ;;  %817 = vmatpush.bf16.msra.mxu0 %v801_v20 }
  0xd9   : > { %1076 = vmatmul.msk.bf16.vlgmr.msrb.gmra.mxu3 %vm317_vm0, %v1073_v19 }
  0xe1   : > { %1075 = vmatmul.msk.bf16.vlgmr.msrb.gmra.mxu2 %vm317_vm0, %v1073_v19 }
  0xe2   : > { %1072 = vmatmul.msk.bf16.vlgmr.msrb.gmra.mxu0 %vm317_vm0, %v1069_v10 }
  0xe4   : > { %1074 = vmatmul.msk.bf16.vlgmr.msrb.gmra.mxu1 %vm317_vm0, %v1073_v19 }
  0xf1   : > { %1080 = vmatmul.msk.bf16.vlgmr.msra.gmra.mxu2 %vm317_vm0, %v1077_v21 }
  0xf2   : > { %1078 = vmatmul.msk.bf16.vlgmr.msra.gmra.mxu0 %vm317_vm0, %v1077_v21 }
  0xf4   : > { %1079 = vmatmul.msk.bf16.vlgmr.msra.gmra.mxu1 %vm317_vm0, %v1077_v21 }
 0x10f   : > { %v330_v26 = vpop.f32.mrf.mxu0 }
 0x110   : > { %v389_v28 = vadd.f32 %v388_v22, %v330_v26 }
 0x111   : > { %v343_v27 = vpop.f32.mrf.mxu1 }
 0x114   : > { %v356_v29 = vpop.f32.mrf.mxu2 }
 0x117   : > { %v332_v30 = vpop.f32.mrf.mxu0 }
 0x119   : > { %v345_v31 = vpop.f32.mrf.mxu1 }
 0x11c   : > { %v358_v32 = vpop.f32.mrf.mxu2  ;;  %v460_v33 = vpop.f32.mrf.mxu3 }
 0x11f   : > { %v401_v34 = vpop.f32.mrf.mxu0 }
 0x120   : > { %v402_v36 = vadd.f32 %v401_v34, %v343_v27  ;;  %v867_v34 = vperm.slane %v865_v25, 0 }
 0x121   : > { %v414_v35 = vpop.f32.mrf.mxu1 }
 0x122   : > { %v415_v37 = vadd.f32 %v414_v35, %v356_v29  ;;  %v478_v38 = vadd.f32 %v460_v33, %v402_v36  ;;  %v868_v35 = vperm.slane %v865_v25, 1 }
 0x124   : > { %v447_v39 = vpop.f32.mrf.mxu2  ;;  %v462_v40 = vpop.f32.mrf.mxu3 }
 0x125   : > { %v477_v7 = vadd.f32 %v447_v39, %v389_v28  ;;  %v856_v28 = vpop.permute.xlu2 %855 }
 0x127   : > { %v403_v41 = vpop.f32.mrf.mxu0 }
 0x129   : > { %v416_v42 = vpop.f32.mrf.mxu1 }
 0x12c   : > { %v449_v43 = vpop.f32.mrf.mxu2  ;;  %v535_v44 = vpop.f32.mrf.mxu3 }
 0x12f   : > { %v473_v45 = vpop.f32.mrf.mxu0 }
 0x130   : > { %v479_v12 = vadd.f32 %v473_v45, %v415_v37 }
 0x131   : > { %v509_v46 = vpop.f32.mrf.mxu1 }
 0x132   : > { %v539_v8 = vadd.f32 %v509_v46, %v477_v7  ;;  %v541_v18 = vadd.f32 %v535_v44, %v479_v12  ;;  %v869_v44 = vperm.slane %v865_v25, 2 }
 0x134   : > { %v522_v47 = vpop.f32.mrf.mxu2  ;;  %v537_v48 = vpop.f32.mrf.mxu3 }
 0x135   : > { %v540_v9 = vadd.f32 %v522_v47, %v478_v38 }
 0x137   : > { %v475_v49 = vpop.f32.mrf.mxu0 }
 0x139   : > { %v511_v50 = vpop.f32.mrf.mxu1 }
 0x13c   : > { %v524_v51 = vpop.f32.mrf.mxu2  ;;  %v633_v52 = vpop.f32.mrf.mxu3 }
 0x13f   : > { %v571_v53 = vpop.f32.mrf.mxu0 }
 0x140   : > { %v601_v13 = vadd.f32 %v571_v53, %v539_v8 }
 0x141   : > { %v584_v54 = vpop.f32.mrf.mxu1 }
 0x142   : > { %v602_v14 = vadd.f32 %v584_v54, %v540_v9  ;;  %v663_v19 = vadd.f32 %v633_v52, %v601_v13 }
 0x144   : > { %v597_v55 = vpop.f32.mrf.mxu2  ;;  %v635_v56 = vpop.f32.mrf.mxu3 }
 0x145   : > { %v603_v20 = vadd.f32 %v597_v55, %v541_v18 }
 0x147   : > { %v573_v57 = vpop.f32.mrf.mxu0 }
 0x149   : > { %v586_v58 = vpop.f32.mrf.mxu1 }
 0x14c   : > { %v599_v59 = vpop.f32.mrf.mxu2  ;;  %v708_v60 = vpop.f32.mrf.mxu3 }
 0x14f   : > { %v646_v61 = vpop.f32.mrf.mxu0 }
 0x150   : > { %v664_v17 = vadd.f32 %v646_v61, %v602_v14 }
 0x151   : > { %v659_v62 = vpop.f32.mrf.mxu1 }
 0x152   : > { %v726_v21 = vadd.f32 %v708_v60, %v664_v17  ;;  %v665_v24 = vadd.f32 %v659_v62, %v603_v20 }
 0x154   : > { %v695_v63 = vpop.f32.mrf.mxu2  ;;  %v710_v0 = vpop.f32.mrf.mxu3 }
 0x155   : > { %v725_v22 = vadd.f32 %v695_v63, %v663_v19 }
 0x157   : > { %v648_v1 = vpop.f32.mrf.mxu0 }
 0x159   : > { %v661_v2 = vpop.f32.mrf.mxu1 }
 0x15c   : > { %v697_v3 = vpop.f32.mrf.mxu2  ;;  %v783_v4 = vpop.f32.mrf.mxu3 }
 0x15f   : > { %v721_v5 = vpop.f32.mrf.mxu0 }
 0x160   : > { %v727_v29 = vadd.f32 %v721_v5, %v665_v24 }
 0x161   : > { %v757_v6 = vpop.f32.mrf.mxu1 }
 0x162   : > { %v787_v26 = vadd.f32 %v757_v6, %v725_v22  ;;  %v789_v38 = vadd.f32 %v783_v4, %v727_v29 }
 0x164   : > { %v770_v10 = vpop.f32.mrf.mxu2  ;;  %v785_v11 = vpop.f32.mrf.mxu3 }
 0x165   : > { %v788_v27 = vadd.f32 %v770_v10, %v726_v21 }
 0x167   : > { %v723_v15 = vpop.f32.mrf.mxu0 }
 0x169   : > { %v759_v16 = vpop.f32.mrf.mxu1 }
 0x16c   : > { %v772_v23 = vpop.f32.mrf.mxu2 }
 0x16f   : > { %v819_v30 = vpop.f32.mrf.mxu0 }
 0x170   : > { %v849_v32 = vadd.f32 %v819_v30, %v787_v26 }
 0x171   : > { %v832_v31 = vpop.f32.mrf.mxu1 }
 0x172   : > { %v850_v33 = vadd.f32 %v832_v31, %v788_v27  ;;  %v858_v36 = vadd.f32 %v856_v28, %v849_v32 }
 0x174   : > { %v859_v37 = vadd.f32 %v856_v28, %v850_v33  ;;  %v873_v40 = vmul.f32 %v867_v34, %v858_v36  ;;  %v845_v42 = vpop.f32.mrf.mxu2 }
 0x175   : > { %v851_v43 = vadd.f32 %v845_v42, %v789_v38 }
 0x176   : > { %v861_v39 = vpack.c.bf16 %v859_v37, %v858_v36  ;;  %v874_v41 = vmul.f32 %v868_v35, %v859_v37  ;;  %v882_v46 = vmul.f32 %v873_v40, %v873_v40 }
 0x177   : > { %v860_v48 = vadd.f32 %v856_v28, %v851_v43  ;;  %v821_v49 = vpop.f32.mrf.mxu0 }
 0x178   : > { %863 = vst [vmem:[%s264_s16] sm:$0xff] %v861_v39  ;;  %v876_v45 = vadd.f32 %v874_v41, %v873_v40  ;;  %v883_v47 = vmul.f32 %v874_v41, %v874_v41 }
 0x179   : > { %v834_v50 = vpop.f32.mrf.mxu1  ;;  %v862_v52 = vpack.c.bf16 %v860_v48, %v860_v48  ;;  %v875_v53 = vmul.f32 %v869_v44, %v860_v48 }
 0x17a   : > { %v885_v51 = vadd.f32 %v883_v47, %v882_v46 }
 0x17b   : > { %864 = vst [vmem:[%s264_s16 + $0x8] sm:$0xf] %v862_v52  ;;  %v877_v54 = vadd.f32 %v876_v45, %v875_v53  ;;  %v884_v55 = vmul.f32 %v875_v53, %v875_v53 }
 0x17c   : > { %v847_v56 = vpop.f32.mrf.mxu2 }
 0x17d   : > { %878 = vadd.xlane.f32.xlu0 %v877_v54  ;;  %v886_v57 = vadd.f32 %v885_v51, %v884_v55 }
 0x17f   : > { %887 = vadd.xlane.f32.xlu1 %v886_v57 }
 0x1f0   : > { %v879_v58 = vpop.xlane.xlu0 %878 }
 0x1f1   : > { %881 = vst.msk [vmem:[%s269_s20] sm:$0xff] %vm880_vm9, %v879_v58 }
 0x1f2   : > { %v888_v59 = vpop.xlane.xlu1 %887 }
 0x1f3   : > { %889 = vst.msk [vmem:[%s273_s26] sm:$0xff] %vm880_vm9, %v888_v59 }
 0x1f4 PF: > { %s17_s21 = sadd.s32 1, %s1116_s21  }
 0x1f5   : > { %p14_p5 = scmp.ge.s32.totalorder %s17_s21, 4  }
 0x1f7   :  { %16 = sbr.rel (!%p14_p5) target bundleno = 1 (0x1), region = 98 }

// kernel: decoder_forward.7
= control target key start
LH: loop header
LB: loop body
LE: loop exit
PB: predicated region body
PF: predicated region fallthrough
CT: control target
= control target key end

     0   :  { %s2124_s12 = smov 0   ;;  %s2643_s0 = inlined_call_operand.vmem [shape: bf16[9,8,8], index: 0, kind: input, shape index: {}]   ;;  %s2644_s1 = inlined_call_operand.vmem [shape: f32[8,1], index: 1, kind: input, shape index: {}]   ;;  %s2645_s2 = inlined_call_operand.vmem [shape: bf16[2,8,1152], index: 2, kind: input, shape index: {}]   ;;  %s2646_s3 = inlined_call_operand.vmem [shape: f32[1,2048], index: 3, kind: output, shape index: {}]  }
   0x1 LB: > { %s2130_s13 = sadd.s32 4294967295, %s2093_s12   ;;  %p1943_p0 = scmp.ge.s32.totalorder %s2093_s12, 1  ;;  %s2093_s12 = sphi %s2124_s12, %s13_s12  }
   0x2   : > { %p137_p1 = scmp.lt.s32.totalorder %s2093_s12, 3 }
   0x4   : > { %p138_p2 = pnand %p1943_p0, %p137_p1 }
   0x5   : > { %p160_p3 = scmp.lt.s32.totalorder (!%p138_p2), %s2130_s13, 1  ;;  %s2095_s19 = smov (!%p138_p2), 127  }
   0x6   : > { %141 = sbr.rel (%p138_p2) target bundleno = 599 (0x257), region = 32  ;;  %s2096_s20 = smov (!%p138_p2), 126  }
   0x7   : > { %s2097_s21 = smov (!%p138_p2), 98   ;;  %s2098_s22 = smov (!%p138_p2), 97  }
   0x8   : > { %s2099_s23 = smov (!%p138_p2), 96   ;;  %s2100_s26 = smov (!%p138_p2), 68  }
   0x9   : > { %s2101_s27 = smov (!%p138_p2), 67   ;;  %s2102_s30 = smov (!%p138_p2), 66  }
   0xb   : > { %s161_s14 = scalar_select %p160_p3, %s2130_s13, 1  ;;  %vm224_vm0 = vcmask 1039360   ;;  %vm237_vm1 = vcmask 1043456   ;;  %v1946_v32 = vld [vmem:[%s2643_s0 + $0x4] sm:$0xf]  ;;  %vm233_vm2 = vcmask 64512  }
   0xc   : > { %vm537_vm3 = vcmask 1031168   ;;  %v171_v62 = vld [vmem:[%s2643_s0] sm:$0xf]  ;;  %vm705_vm4 = vcmask 801792   ;;  %vm873_vm5 = vcmask 793600   ;;  %vm1041_vm6 = vcmask 785408  }
   0xd   : > { %s2036_s15 = smul.u32 36, %s161_s14  ;;  %vm1209_vm7 = vcmask 556032   ;;  %vm1377_vm8 = vcmask 547840   ;;  %vm1545_vm9 = vcmask 539648   ;;  %vm1874_vm15 = vcmask 1040384  }
   0xf   : > { %s164_s18 = scalar_lea.vmem %s2645_s2, %s2036_s15 }
  0x10   : > { %v180_v0 = vld [vmem:[%s164_s18 + $0x10] sm:$0xff]  ;;  %v179_v1 = vld [vmem:[%s164_s18 + $0x8] sm:$0xff]  ;;  %v178_v2 = vld [vmem:[%s164_s18] sm:$0xff] }
  0x11   : > { %v192_v3 = vunpack.c.l.b16 %v180_v0  ;;  %v190_v4 = vunpack.c.l.b16 %v179_v1  ;;  %v189_v5 = vunpack.c.h.b16 %v178_v2  ;;  %v181_v9 = vld [vmem:[%s164_s18 + $0x18] sm:$0xff]  ;;  %v191_v10 = vunpack.c.h.b16 %v179_v1  ;;  %v182_v16 = vld [vmem:[%s164_s18 + $0x20] sm:$0xf] }
  0x12   : > { %v188_v11 = vunpack.c.l.b16 %v178_v2  ;;  %v194_v12 = vunpack.c.l.b16 %v181_v9  ;;  %v195_v17 = vunpack.c.h.b16 %v181_v9  ;;  %v196_v18 = vunpack.c.l.b16 %v182_v16 }
  0x13   : > { %v2139_v6 = vpack.c.b16 %v192_v3, %v192_v3  ;;  %v2141_v7 = vpack.c.b16 %v190_v4, %v190_v4  ;;  %v2143_v8 = vpack.c.b16 %v189_v5, %v189_v5  ;;  %v2148_v13 = vpack.c.b16 %v191_v10, %v191_v10 }
  0x14   : > { %v2150_v14 = vpack.c.b16 %v188_v11, %v188_v11  ;;  %v2152_v15 = vpack.c.b16 %v194_v12, %v194_v12  ;;  %v193_v19 = vunpack.c.h.b16 %v180_v0  ;;  %v2157_v20 = vpack.c.b16 %v195_v17, %v195_v17 }
  0x15   : > { %214 = vrot.lane.b32.xlu1 %v2139_v6, %s2095_s19  ;;  %210 = vrot.lane.b32.xlu0 %v2141_v7, %s2095_s19  ;;  %v2159_v21 = vpack.c.b16 %v196_v18, %v196_v18  ;;  %v393_v33 = vsel %vm237_vm1, %v2143_v8, 0  ;;  %v396_v49 = vsel %vm237_vm1, %v2141_v7, 0  ;;  %v399_v50 = vsel %vm237_vm1, %v2148_v13, 0 }
  0x16   : > { %208 = vrot.lane.b32.xlu2 %v2143_v8, %s2095_s19  ;;  %v2161_v22 = vpack.c.b16 %v193_v19, %v193_v19  ;;  %v390_v44 = vsel %vm237_vm1, %v2150_v14, 0  ;;  %v408_v56 = vsel %vm237_vm1, %v2152_v15, 0  ;;  %v411_v57 = vsel %vm237_vm1, %v2157_v20, 0 }
  0x17   : > { %v402_v59 = vsel %vm237_vm1, %v2139_v6, 0 }
  0x18   : > { %v405_v53 = vsel %vm237_vm1, %v2161_v22, 0 }
  0x1d   : > { %212 = vrot.lane.b32.xlu0 %v2148_v13, %s2095_s19  ;;  %206 = vrot.lane.b32.xlu1 %v2150_v14, %s2095_s19 }
  0x1e   : > { %218 = vrot.lane.b32.xlu2 %v2152_v15, %s2095_s19 }
  0x25   : > { %220 = vrot.lane.b32.xlu0 %v2157_v20, %s2095_s19  ;;  %222 = vrot.lane.b32.xlu1 %v2159_v21, %s2095_s19 }
  0x26   : > { %216 = vrot.lane.b32.xlu2 %v2161_v22, %s2095_s19 }
  0x2d   : > { %525 = vrot.lane.b32.xlu1 %v2148_v13, %s2096_s20  ;;  %523 = vrot.lane.b32.xlu0 %v2141_v7, %s2096_s20 }
  0x2e   : > { %527 = vrot.lane.b32.xlu2 %v2139_v6, %s2096_s20 }
  0x35   : > { %521 = vrot.lane.b32.xlu1 %v2143_v8, %s2096_s20  ;;  %519 = vrot.lane.b32.xlu0 %v2150_v14, %s2096_s20 }
  0x36   : > { %531 = vrot.lane.b32.xlu2 %v2152_v15, %s2096_s20 }
  0x3d   : > { %533 = vrot.lane.b32.xlu0 %v2157_v20, %s2096_s20  ;;  %535 = vrot.lane.b32.xlu1 %v2159_v21, %s2096_s20 }
  0x3e   : > { %529 = vrot.lane.b32.xlu2 %v2161_v22, %s2096_s20 }
  0x45   : > { %693 = vrot.lane.b32.xlu1 %v2148_v13, %s2097_s21  ;;  %691 = vrot.lane.b32.xlu0 %v2141_v7, %s2097_s21 }
  0x46   : > { %695 = vrot.lane.b32.xlu2 %v2139_v6, %s2097_s21 }
  0x4d   : > { %689 = vrot.lane.b32.xlu1 %v2143_v8, %s2097_s21  ;;  %687 = vrot.lane.b32.xlu0 %v2150_v14, %s2097_s21 }
  0x4e   : > { %699 = vrot.lane.b32.xlu2 %v2152_v15, %s2097_s21 }
  0x55   : > { %701 = vrot.lane.b32.xlu0 %v2157_v20, %s2097_s21  ;;  %703 = vrot.lane.b32.xlu1 %v2159_v21, %s2097_s21 }
  0x56   : > { %697 = vrot.lane.b32.xlu2 %v2161_v22, %s2097_s21 }
  0x5d   : > { %861 = vrot.lane.b32.xlu1 %v2148_v13, %s2098_s22  ;;  %859 = vrot.lane.b32.xlu0 %v2141_v7, %s2098_s22 }
  0x5e   : > { %863 = vrot.lane.b32.xlu2 %v2139_v6, %s2098_s22 }
  0x65   : > { %857 = vrot.lane.b32.xlu1 %v2143_v8, %s2098_s22  ;;  %855 = vrot.lane.b32.xlu0 %v2150_v14, %s2098_s22 }
  0x66   : > { %867 = vrot.lane.b32.xlu2 %v2152_v15, %s2098_s22 }
  0x6d   : > { %869 = vrot.lane.b32.xlu0 %v2157_v20, %s2098_s22  ;;  %871 = vrot.lane.b32.xlu1 %v2159_v21, %s2098_s22 }
  0x6e   : > { %865 = vrot.lane.b32.xlu2 %v2161_v22, %s2098_s22  ;;  %s1945_s22 = sshll.u32 %s2130_s13, 3 }
  0x6f   : > { %p166_p4 = scmp.lt.s32.totalorder %s1945_s22, 15 }
  0x70   : > { %v209_v23 = vpop.permute.xlu2 %208 }
  0x71   : > { %s2650_s22 = smov (!%p166_p4, %s1945_s22), 15 }
  0x72   : > { %s168_s24 = scalar_lea.vmem %s2646_s3, %s2650_s22 }
  0x75   : > { %1029 = vrot.lane.b32.xlu1 %v2148_v13, %s2099_s23  ;;  %1027 = vrot.lane.b32.xlu0 %v2141_v7, %s2099_s23 }
  0x76   : > { %1031 = vrot.lane.b32.xlu2 %v2139_v6, %s2099_s23 }
  0x78   : > { %v219_v24 = vpop.permute.xlu2 %218 }
  0x7d   : > { %1025 = vrot.lane.b32.xlu1 %v2143_v8, %s2099_s23  ;;  %1023 = vrot.lane.b32.xlu0 %v2150_v14, %s2099_s23 }
  0x7e   : > { %1035 = vrot.lane.b32.xlu2 %v2152_v15, %s2099_s23 }
  0x80   : > { %v217_v25 = vpop.permute.xlu2 %216 }
  0x81   : > { %v230_v26 = vsel %vm224_vm0, %v217_v25, %v219_v24 }
  0x82   : > { %v254_v30 = vsel %vm237_vm1, %v230_v26, 0 }
  0x85   : > { %1037 = vrot.lane.b32.xlu0 %v2157_v20, %s2099_s23  ;;  %1039 = vrot.lane.b32.xlu1 %v2159_v21, %s2099_s23 }
  0x86   : > { %1033 = vrot.lane.b32.xlu2 %v2161_v22, %s2099_s23 }
  0x87   : > { %v215_v27 = vpop.permute.xlu1 %214  ;;  %v211_v28 = vpop.permute.xlu0 %210 }
  0x88   : > { %v226_v29 = vsel %vm224_vm0, %v209_v23, %v211_v28  ;;  %v229_v36 = vsel %vm224_vm0, %v215_v27, %v217_v25  ;;  %v528_v55 = vpop.permute.xlu2 %527 }
  0x89   : > { %v242_v31 = vsel %vm237_vm1, %v226_v29, 0  ;;  %v251_v43 = vsel %vm237_vm1, %v229_v36, 0 }
  0x8a   : > { %282 = vmatpush.bf16.msra.mxu1 %v242_v31 }
  0x8d   : > { %1948 = vmatmul.msk.bf16.vlgmr.msra.gmra.mxu1 %vm233_vm2, %v1946_v32  ;;  %1197 = vrot.lane.b32.xlu1 %v2148_v13, %s2100_s26 }
  0x8e   : > { %334 = vmatpush.bf16.msrb.mxu1 %v254_v30  ;;  %1195 = vrot.lane.b32.xlu0 %v2141_v7, %s2100_s26 }
  0x8f   : > { %v213_v34 = vpop.permute.xlu0 %212  ;;  %v207_v35 = vpop.permute.xlu1 %206  ;;  %1199 = vrot.lane.b32.xlu2 %v2139_v6, %s2100_s26 }
  0x90   : > { %v225_v37 = vsel %vm224_vm0, %v207_v35, %v209_v23  ;;  %v227_v38 = vsel %vm224_vm0, %v211_v28, %v213_v34  ;;  %v228_v39 = vsel %vm224_vm0, %v213_v34, %v215_v27  ;;  %v532_v0 = vpop.permute.xlu2 %531 }
  0x91   : > { %v239_v40 = vsel %vm237_vm1, %v225_v37, 0  ;;  %v245_v41 = vsel %vm237_vm1, %v227_v38, 0  ;;  %v248_v42 = vsel %vm237_vm1, %v228_v39, 0 }
  0x92   : > { %433 = vmatpush.bf16.msra.mxu1 %v393_v33  ;;  %269 = vmatpush.bf16.msra.mxu0 %v239_v40 }
  0x93   : > { %295 = vmatpush.bf16.msra.mxu2 %v245_v41  ;;  %308 = vmatpush.bf16.msra.mxu3 %v248_v42 }
  0x95   : > { %1947 = vmatmul.msk.bf16.vlgmr.msra.gmra.mxu0 %vm233_vm2, %v1946_v32  ;;  %1193 = vrot.lane.b32.xlu1 %v2143_v8, %s2100_s26 }
  0x96   : > { %321 = vmatpush.bf16.msrb.mxu0 %v251_v43  ;;  %1949 = vmatmul.msk.bf16.vlgmr.msra.gmra.mxu2 %vm233_vm2, %v1946_v32 }
  0x97   : > { %1950 = vmatmul.msk.bf16.vlgmr.msra.gmra.mxu3 %vm233_vm2, %v1946_v32  ;;  %v221_v45 = vpop.permute.xlu0 %220  ;;  %v223_v46 = vpop.permute.xlu1 %222  ;;  %1191 = vrot.lane.b32.xlu0 %v2150_v14, %s2100_s26 }
  0x98   : > { %v231_v47 = vsel %vm224_vm0, %v219_v24, %v221_v45  ;;  %v232_v48 = vsel %vm224_vm0, %v221_v45, %v223_v46  ;;  %1203 = vrot.lane.b32.xlu2 %v2152_v15, %s2100_s26  ;;  %v530_v12 = vpop.permute.xlu2 %529 }
  0x99   : > { %v257_v51 = vsel %vm237_vm1, %v231_v47, 0  ;;  %v260_v52 = vsel %vm237_vm1, %v232_v48, 0  ;;  %v543_v16 = vsel %vm537_vm3, %v530_v12, %v532_v0  ;;  %v542_v23 = vsel %vm537_vm3, %v528_v55, %v530_v12 }
  0x9a   : > { %420 = vmatpush.bf16.msra.mxu0 %v390_v44  ;;  %347 = vmatpush.bf16.msrb.mxu2 %v257_v51  ;;  %v565_v18 = vsel %vm237_vm1, %v543_v16, 0  ;;  %v562_v26 = vsel %vm237_vm1, %v542_v23, 0 }
  0x9b   : > { %360 = vmatpush.bf16.msrb.mxu3 %v260_v52 }
  0x9d   : > { %1952 = vmatmul.msk.bf16.vlgmr.msrb.gmra.mxu1 %vm233_vm2, %v1946_v32  ;;  %1207 = vrot.lane.b32.xlu1 %v2159_v21, %s2100_s26 }
  0x9e   : > { %446 = vmatpush.bf16.msra.mxu2 %v396_v49  ;;  %485 = vmatpush.bf16.msrb.mxu1 %v405_v53 }
  0x9f   : > { %459 = vmatpush.bf16.msra.mxu3 %v399_v50  ;;  %v526_v54 = vpop.permute.xlu1 %525  ;;  %1205 = vrot.lane.b32.xlu0 %v2157_v20, %s2100_s26  ;;  %v524_v58 = vpop.permute.xlu0 %523  ;;  %v1972_v50 = vld [vmem:[%s2643_s0 + $0xc] sm:$0xf] }
  0xa0   : > { %1201 = vrot.lane.b32.xlu2 %v2161_v22, %s2100_s26  ;;  %v540_v2 = vsel %vm537_vm3, %v524_v58, %v526_v54  ;;  %v541_v3 = vsel %vm537_vm3, %v526_v54, %v528_v55  ;;  %v696_v27 = vpop.permute.xlu2 %695 }
  0xa1   : > { %v556_v9 = vsel %vm237_vm1, %v540_v2, 0  ;;  %v559_v10 = vsel %vm237_vm1, %v541_v3, 0 }
  0xa5   : > { %1951 = vmatmul.msk.bf16.vlgmr.msrb.gmra.mxu0 %vm233_vm2, %v1946_v32  ;;  %1365 = vrot.lane.b32.xlu1 %v2148_v13, %s2101_s27 }
  0xa6   : > { %1953 = vmatmul.msk.bf16.vlgmr.msrb.gmra.mxu2 %vm233_vm2, %v1946_v32  ;;  %472 = vmatpush.bf16.msrb.mxu0 %v402_v59 }
  0xa7   : > { %1954 = vmatmul.msk.bf16.vlgmr.msrb.gmra.mxu3 %vm233_vm2, %v1946_v32  ;;  %498 = vmatpush.bf16.msrb.mxu2 %v408_v56  ;;  %v522_v60 = vpop.permute.xlu1 %521  ;;  %v520_v1 = vpop.permute.xlu0 %519 }
  0xa8   : > { %511 = vmatpush.bf16.msrb.mxu3 %v411_v57  ;;  %v539_v61 = vsel %vm537_vm3, %v522_v60, %v524_v58  ;;  %1363 = vrot.lane.b32.xlu0 %v2141_v7, %s2101_s27  ;;  %v538_v4 = vsel %vm537_vm3, %v520_v1, %v522_v60  ;;  %v700_v32 = vpop.permute.xlu2 %699 }
  0xa9   : > { %1367 = vrot.lane.b32.xlu2 %v2139_v6, %s2101_s27  ;;  %v553_v63 = vsel %vm237_vm1, %v539_v61, 0  ;;  %v550_v11 = vsel %vm237_vm1, %v538_v4, 0 }
  0xad   : > { %1956 = vmatmul.msk.bf16.vlgmr.msra.gmra.mxu1 %vm233_vm2, %v171_v62  ;;  %1361 = vrot.lane.b32.xlu1 %v2143_v8, %s2101_s27 }
  0xae   : > { %593 = vmatpush.bf16.msra.mxu1 %v553_v63 }
  0xaf   : > { %v536_v5 = vpop.permute.xlu1 %535  ;;  %v534_v17 = vpop.permute.xlu0 %533 }
  0xb0   : > { %1359 = vrot.lane.b32.xlu0 %v2150_v14, %s2101_s27  ;;  %v544_v24 = vsel %vm537_vm3, %v532_v0, %v534_v17  ;;  %v545_v25 = vsel %vm537_vm3, %v534_v17, %v536_v5 }
  0xb1   : > { %1371 = vrot.lane.b32.xlu2 %v2152_v15, %s2101_s27  ;;  %v568_v28 = vsel %vm237_vm1, %v544_v24, 0  ;;  %v571_v29 = vsel %vm237_vm1, %v545_v25, 0 }
  0xb5   : > { %1955 = vmatmul.msk.bf16.vlgmr.msra.gmra.mxu0 %vm233_vm2, %v171_v62  ;;  %1375 = vrot.lane.b32.xlu1 %v2159_v21, %s2101_s27 }
  0xb6   : > { %1957 = vmatmul.msk.bf16.vlgmr.msra.gmra.mxu2 %vm233_vm2, %v171_v62  ;;  %580 = vmatpush.bf16.msra.mxu0 %v550_v11 }
  0xb7   : > { %1958 = vmatmul.msk.bf16.vlgmr.msra.gmra.mxu3 %vm233_vm2, %v171_v62  ;;  %606 = vmatpush.bf16.msra.mxu2 %v556_v9  ;;  %v694_v19 = vpop.permute.xlu1 %693  ;;  %v692_v30 = vpop.permute.xlu0 %691 }
  0xb8   : > { %619 = vmatpush.bf16.msra.mxu3 %v559_v10  ;;  %1373 = vrot.lane.b32.xlu0 %v2157_v20, %s2101_s27  ;;  %v708_v34 = vsel %vm705_vm4, %v692_v30, %v694_v19 }
  0xb9   : > { %1369 = vrot.lane.b32.xlu2 %v2161_v22, %s2101_s27  ;;  %v724_v35 = vsel %vm237_vm1, %v708_v34, 0 }
  0xbd   : > { %1960 = vmatmul.msk.bf16.vlgmr.msrb.gmra.mxu1 %vm233_vm2, %v171_v62  ;;  %1533 = vrot.lane.b32.xlu1 %v2148_v13, %s2102_s30  ;;  %v1963_v13 = vld [vmem:[%s2643_s0 + $0x8] sm:$0xf] }
  0xbe   : > { %645 = vmatpush.bf16.msrb.mxu1 %v565_v18 }
  0xbf   : > { %v688_v33 = vpop.permute.xlu0 %687 }
  0xc0   : > { %1531 = vrot.lane.b32.xlu0 %v2141_v7, %s2102_s30  ;;  %v690_v7 = vpop.permute.xlu1 %689 }
  0xc1   : > { %1535 = vrot.lane.b32.xlu2 %v2139_v6, %s2102_s30  ;;  %v707_v6 = vsel %vm705_vm4, %v690_v7, %v692_v30 }
  0xc2   : > { %v721_v31 = vsel %vm237_vm1, %v707_v6, 0 }
  0xc5   : > { %1959 = vmatmul.msk.bf16.vlgmr.msrb.gmra.mxu0 %vm233_vm2, %v171_v62  ;;  %1529 = vrot.lane.b32.xlu1 %v2143_v8, %s2102_s30  ;;  %v709_v8 = vsel %vm705_vm4, %v694_v19, %v696_v27  ;;  %v1981_v19 = vld [vmem:[%s2643_s0 + $0x10] sm:$0xf] }
  0xc6   : > { %1961 = vmatmul.msk.bf16.vlgmr.msrb.gmra.mxu2 %vm233_vm2, %v171_v62  ;;  %632 = vmatpush.bf16.msrb.mxu0 %v562_v26  ;;  %v727_v36 = vsel %vm237_vm1, %v709_v8, 0 }
  0xc7   : > { %1962 = vmatmul.msk.bf16.vlgmr.msrb.gmra.mxu3 %vm233_vm2, %v171_v62  ;;  %658 = vmatpush.bf16.msrb.mxu2 %v568_v28  ;;  %v702_v38 = vpop.permute.xlu0 %701 }
  0xc8   : > { %671 = vmatpush.bf16.msrb.mxu3 %v571_v29  ;;  %1527 = vrot.lane.b32.xlu0 %v2150_v14, %s2102_s30  ;;  %v706_v14 = vsel %vm705_vm4, %v688_v33, %v690_v7  ;;  %v712_v41 = vsel %vm705_vm4, %v700_v32, %v702_v38 }
  0xc9   : > { %1539 = vrot.lane.b32.xlu2 %v2152_v15, %s2102_s30  ;;  %v704_v15 = vpop.permute.xlu1 %703  ;;  %v718_v37 = vsel %vm237_vm1, %v706_v14, 0  ;;  %v736_v45 = vsel %vm237_vm1, %v712_v41, 0 }
  0xca   : > { %v713_v42 = vsel %vm705_vm4, %v702_v38, %v704_v15 }
  0xcb   : > { %v739_v46 = vsel %vm237_vm1, %v713_v42, 0 }
  0xcd   : > { %1965 = vmatmul.msk.bf16.vlgmr.msra.gmra.mxu1 %vm233_vm2, %v1963_v13  ;;  %1543 = vrot.lane.b32.xlu1 %v2159_v21, %s2102_s30 }
  0xce   : > { %761 = vmatpush.bf16.msra.mxu1 %v721_v31 }
  0xcf   : > { %v860_v47 = vpop.permute.xlu0 %859 }
  0xd0   : > { %1541 = vrot.lane.b32.xlu0 %v2157_v20, %s2102_s30  ;;  %v698_v20 = vpop.permute.xlu2 %697 }
  0xd1   : > { %1537 = vrot.lane.b32.xlu2 %v2161_v22, %s2102_s30  ;;  %v711_v21 = vsel %vm705_vm4, %v698_v20, %v700_v32  ;;  %v862_v39 = vpop.permute.xlu1 %861  ;;  %v710_v40 = vsel %vm705_vm4, %v696_v27, %v698_v20 }
  0xd2   : > { %v733_v22 = vsel %vm237_vm1, %v711_v21, 0  ;;  %v730_v43 = vsel %vm237_vm1, %v710_v40, 0  ;;  %v876_v54 = vsel %vm873_vm5, %v860_v47, %v862_v39 }
  0xd3   : > { %v892_v58 = vsel %vm237_vm1, %v876_v54, 0 }
  0xd5   : > { %1964 = vmatmul.msk.bf16.vlgmr.msra.gmra.mxu0 %vm233_vm2, %v1963_v13 }
  0xd6   : > { %1966 = vmatmul.msk.bf16.vlgmr.msra.gmra.mxu2 %vm233_vm2, %v1963_v13  ;;  %748 = vmatpush.bf16.msra.mxu0 %v718_v37 }
  0xd7   : > { %1967 = vmatmul.msk.bf16.vlgmr.msra.gmra.mxu3 %vm233_vm2, %v1963_v13  ;;  %774 = vmatpush.bf16.msra.mxu2 %v724_v35  ;;  %v856_v53 = vpop.permute.xlu0 %855 }
  0xd8   : > { %787 = vmatpush.bf16.msra.mxu3 %v727_v36  ;;  %v864_v44 = vpop.permute.xlu2 %863 }
  0xd9   : > { %v858_v48 = vpop.permute.xlu1 %857  ;;  %v877_v55 = vsel %vm873_vm5, %v862_v39, %v864_v44 }
  0xda   : > { %v875_v49 = vsel %vm873_vm5, %v858_v48, %v860_v47  ;;  %v874_v56 = vsel %vm873_vm5, %v856_v53, %v858_v48  ;;  %v895_v59 = vsel %vm237_vm1, %v877_v55, 0  ;;  %v1990_v53 = vld [vmem:[%s2643_s0 + $0x14] sm:$0xf] }
  0xdb   : > { %v889_v51 = vsel %vm237_vm1, %v875_v49, 0  ;;  %v886_v60 = vsel %vm237_vm1, %v874_v56, 0 }
  0xdd   : > { %1969 = vmatmul.msk.bf16.vlgmr.msrb.gmra.mxu1 %vm233_vm2, %v1963_v13 }
  0xde   : > { %813 = vmatpush.bf16.msrb.mxu1 %v733_v22 }
  0xdf   : > { %v870_v63 = vpop.permute.xlu0 %869 }
  0xe0   : > { %v868_v52 = vpop.permute.xlu2 %867 }
  0xe1   : > { %v872_v57 = vpop.permute.xlu1 %871  ;;  %v880_v3 = vsel %vm873_vm5, %v868_v52, %v870_v63 }
  0xe2   : > { %v881_v4 = vsel %vm873_vm5, %v870_v63, %v872_v57  ;;  %v904_v10 = vsel %vm237_vm1, %v880_v3, 0 }
  0xe3   : > { %v907_v11 = vsel %vm237_vm1, %v881_v4, 0 }
  0xe5   : > { %1968 = vmatmul.msk.bf16.vlgmr.msrb.gmra.mxu0 %vm233_vm2, %v1963_v13 }
  0xe6   : > { %1970 = vmatmul.msk.bf16.vlgmr.msrb.gmra.mxu2 %vm233_vm2, %v1963_v13  ;;  %800 = vmatpush.bf16.msrb.mxu0 %v730_v43 }
  0xe7   : > { %1971 = vmatmul.msk.bf16.vlgmr.msrb.gmra.mxu3 %vm233_vm2, %v1963_v13  ;;  %826 = vmatpush.bf16.msrb.mxu2 %v736_v45  ;;  %v1028_v12 = vpop.permute.xlu0 %1027 }
  0xe8   : > { %839 = vmatpush.bf16.msrb.mxu3 %v739_v46  ;;  %v866_v61 = vpop.permute.xlu2 %865 }
  0xe9   : > { %v879_v62 = vsel %vm873_vm5, %v866_v61, %v868_v52  ;;  %v1030_v1 = vpop.permute.xlu1 %1029  ;;  %v878_v2 = vsel %vm873_vm5, %v864_v44, %v866_v61 }
  0xea   : > { %v901_v0 = vsel %vm237_vm1, %v879_v62, 0  ;;  %v898_v5 = vsel %vm237_vm1, %v878_v2, 0  ;;  %v1044_v26 = vsel %vm1041_vm6, %v1028_v12, %v1030_v1 }
  0xeb   : > { %v1060_v7 = vsel %vm237_vm1, %v1044_v26, 0 }
  0xed   : > { %1974 = vmatmul.msk.bf16.vlgmr.msra.gmra.mxu1 %vm233_vm2, %v1972_v50 }
  0xee   : > { %929 = vmatpush.bf16.msra.mxu1 %v889_v51 }
  0xef   : > { %v1024_v25 = vpop.permute.xlu0 %1023 }
  0xf0   : > { %v1032_v9 = vpop.permute.xlu2 %1031 }
  0xf1   : > { %v1026_v16 = vpop.permute.xlu1 %1025  ;;  %v1045_v27 = vsel %vm1041_vm6, %v1030_v1, %v1032_v9 }
  0xf2   : > { %v1043_v17 = vsel %vm1041_vm6, %v1026_v16, %v1028_v12  ;;  %v1042_v28 = vsel %vm1041_vm6, %v1024_v25, %v1026_v16  ;;  %v1063_v13 = vsel %vm237_vm1, %v1045_v27, 0 }
  0xf3   : > { %v1057_v23 = vsel %vm237_vm1, %v1043_v17, 0  ;;  %v1054_v31 = vsel %vm237_vm1, %v1042_v28, 0 }
  0xf5   : > { %1973 = vmatmul.msk.bf16.vlgmr.msra.gmra.mxu0 %vm233_vm2, %v1972_v50 }
  0xf6   : > { %1975 = vmatmul.msk.bf16.vlgmr.msra.gmra.mxu2 %vm233_vm2, %v1972_v50  ;;  %916 = vmatpush.bf16.msra.mxu0 %v886_v60 }
  0xf7   : > { %1976 = vmatmul.msk.bf16.vlgmr.msra.gmra.mxu3 %vm233_vm2, %v1972_v50  ;;  %942 = vmatpush.bf16.msra.mxu2 %v892_v58  ;;  %v1038_v14 = vpop.permute.xlu0 %1037 }
  0xf8   : > { %955 = vmatpush.bf16.msra.mxu3 %v895_v59  ;;  %v1036_v24 = vpop.permute.xlu2 %1035 }
  0xf9   : > { %v1040_v6 = vpop.permute.xlu1 %1039  ;;  %v1048_v22 = vsel %vm1041_vm6, %v1036_v24, %v1038_v14 }
  0xfa   : > { %v1049_v39 = vsel %vm1041_vm6, %v1038_v14, %v1040_v6  ;;  %v1072_v44 = vsel %vm237_vm1, %v1048_v22, 0 }
  0xfb   : > { %v1075_v45 = vsel %vm237_vm1, %v1049_v39, 0  ;;  %v1999_v39 = vld [vmem:[%s2643_s0 + $0x18] sm:$0xf] }
  0xfd   : > { %1978 = vmatmul.msk.bf16.vlgmr.msrb.gmra.mxu1 %vm233_vm2, %v1972_v50 }
  0xfe   : > { %981 = vmatpush.bf16.msrb.mxu1 %v901_v0 }
 0x100   : > { %v1034_v32 = vpop.permute.xlu2 %1033  ;;  %v1196_v46 = vpop.permute.xlu0 %1195 }
 0x101   : > { %v1047_v34 = vsel %vm1041_vm6, %v1034_v32, %v1036_v24  ;;  %v1198_v37 = vpop.permute.xlu1 %1197  ;;  %v1046_v21 = vsel %vm1041_vm6, %v1032_v9, %v1034_v32 }
 0x102   : > { %v1069_v36 = vsel %vm237_vm1, %v1047_v34, 0  ;;  %v1066_v42 = vsel %vm237_vm1, %v1046_v21, 0  ;;  %v1212_v59 = vsel %vm1209_vm7, %v1196_v46, %v1198_v37 }
 0x103   : > { %v1228_v2 = vsel %vm237_vm1, %v1212_v59, 0 }
 0x105   : > { %1977 = vmatmul.msk.bf16.vlgmr.msrb.gmra.mxu0 %vm233_vm2, %v1972_v50 }
 0x106   : > { %1979 = vmatmul.msk.bf16.vlgmr.msrb.gmra.mxu2 %vm233_vm2, %v1972_v50  ;;  %968 = vmatpush.bf16.msrb.mxu0 %v898_v5 }
 0x107   : > { %1980 = vmatmul.msk.bf16.vlgmr.msrb.gmra.mxu3 %vm233_vm2, %v1972_v50  ;;  %994 = vmatpush.bf16.msrb.mxu2 %v904_v10 }
 0x108   : > { %1007 = vmatpush.bf16.msrb.mxu3 %v907_v11  ;;  %v1200_v43 = vpop.permute.xlu2 %1199 }
 0x109   : > { %v1194_v47 = vpop.permute.xlu1 %1193  ;;  %v1192_v57 = vpop.permute.xlu0 %1191  ;;  %v1213_v61 = vsel %vm1209_vm7, %v1198_v37, %v1200_v43 }
 0x10a   : > { %v284_v18 = vpop.f32.mrf.mxu1  ;;  %v1211_v49 = vsel %vm1209_vm7, %v1194_v47, %v1196_v46  ;;  %v1210_v62 = vsel %vm1209_vm7, %v1192_v57, %v1194_v47  ;;  %v1231_v4 = vsel %vm237_vm1, %v1213_v61, 0 }
 0x10b   : > { %v1225_v55 = vsel %vm237_vm1, %v1211_v49, 0  ;;  %v1222_v5 = vsel %vm237_vm1, %v1210_v62, 0 }
 0x10d   : > { %1983 = vmatmul.msk.bf16.vlgmr.msra.gmra.mxu1 %vm233_vm2, %v1981_v19 }
 0x10e   : > { %1097 = vmatpush.bf16.msra.mxu1 %v1057_v23 }
 0x110   : > { %v1204_v56 = vpop.permute.xlu2 %1203 }
 0x111   : > { %v1208_v3 = vpop.permute.xlu1 %1207  ;;  %v1206_v17 = vpop.permute.xlu0 %1205 }
 0x112   : > { %v271_v29 = vpop.f32.mrf.mxu0  ;;  %v286_v30 = vpop.f32.mrf.mxu1 }
 0x113   : > { %v1216_v30 = vsel %vm1209_vm7, %v1204_v56, %v1206_v17 }
 0x114   : > { %v1240_v34 = vsel %vm237_vm1, %v1216_v30, 0 }
 0x115   : > { %1982 = vmatmul.msk.bf16.vlgmr.msra.gmra.mxu0 %vm233_vm2, %v1981_v19 }
 0x116   : > { %1984 = vmatmul.msk.bf16.vlgmr.msra.gmra.mxu2 %vm233_vm2, %v1981_v19  ;;  %1084 = vmatpush.bf16.msra.mxu0 %v1054_v31 }
 0x117   : > { %1985 = vmatmul.msk.bf16.vlgmr.msra.gmra.mxu3 %vm233_vm2, %v1981_v19  ;;  %1110 = vmatpush.bf16.msra.mxu2 %v1060_v7  ;;  %v1217_v7 = vsel %vm1209_vm7, %v1206_v17, %v1208_v3 }
 0x118   : > { %1123 = vmatpush.bf16.msra.mxu3 %v1063_v13  ;;  %v1202_v9 = vpop.permute.xlu2 %1201 }
 0x119   : > { %v2386_v33 = vpop.f32.mrf.mxu2  ;;  %v1215_v11 = vsel %vm1209_vm7, %v1202_v9, %v1204_v56  ;;  %v1366_v26 = vpop.permute.xlu1 %1365  ;;  %v1214_v28 = vsel %vm1209_vm7, %v1200_v43, %v1202_v9 }
 0x11a   : > { %v2389_v8 = vpop.f32.mrf.mxu3  ;;  %v273_v15 = vpop.f32.mrf.mxu0  ;;  %v1237_v25 = vsel %vm237_vm1, %v1215_v11, 0  ;;  %v1234_v32 = vsel %vm237_vm1, %v1214_v28, 0 }
 0x11b   : > { %v2391_v35 = vpop.f32.mrf.mxu1  ;;  %v1364_v14 = vpop.permute.xlu0 %1363 }
 0x11d   : > { %1987 = vmatmul.msk.bf16.vlgmr.msrb.gmra.mxu1 %vm233_vm2, %v1981_v19 }
 0x11e   : > { %1149 = vmatpush.bf16.msrb.mxu1 %v1069_v36 }
 0x121   : > { %v299_v20 = vpop.f32.mrf.mxu2  ;;  %v1362_v15 = vpop.permute.xlu1 %1361 }
 0x122   : > { %v312_v38 = vpop.f32.mrf.mxu3  ;;  %v2398_v40 = vpop.f32.mrf.mxu0  ;;  %v1379_v36 = vsel %vm1377_vm8, %v1362_v15, %v1364_v14 }
 0x123   : > { %v338_v41 = vpop.f32.mrf.mxu1  ;;  %v1360_v43 = vpop.permute.xlu0 %1359 }
 0x124   : > { %v1393_v41 = vsel %vm237_vm1, %v1379_v36, 0 }
 0x125   : > { %1986 = vmatmul.msk.bf16.vlgmr.msrb.gmra.mxu0 %vm233_vm2, %v1981_v19 }
 0x126   : > { %1988 = vmatmul.msk.bf16.vlgmr.msrb.gmra.mxu2 %vm233_vm2, %v1981_v19  ;;  %1136 = vmatpush.bf16.msrb.mxu0 %v1066_v42 }
 0x127   : > { %1989 = vmatmul.msk.bf16.vlgmr.msrb.gmra.mxu3 %vm233_vm2, %v1981_v19  ;;  %1162 = vmatpush.bf16.msrb.mxu2 %v1072_v44 }
 0x128   : > { %1175 = vmatpush.bf16.msrb.mxu3 %v1075_v45  ;;  %v1380_v45 = vsel %vm1377_vm8, %v1364_v14, %v1366_v26 }
 0x129   : > { %v2406_v48 = vpop.f32.mrf.mxu2 }
 0x12a   : > { %v2409_v50 = vpop.f32.mrf.mxu3  ;;  %v325_v51 = vpop.f32.mrf.mxu0 }
 0x12b   : > { %v435_v52 = vpop.f32.mrf.mxu1  ;;  %v1374_v61 = vpop.permute.xlu0 %1373 }
 0x12c   : > { %v2414_v54 = vadd.f32 %v435_v52, %v284_v18  ;;  %v1396_v52 = vsel %vm237_vm1, %v1380_v45, 0 }
 0x12d   : > { %1992 = vmatmul.msk.bf16.vlgmr.msra.gmra.mxu1 %vm233_vm2, %v1990_v53 }
 0x12e   : > { %1265 = vmatpush.bf16.msra.mxu1 %v1225_v55 }
 0x131   : > { %v351_v58 = vpop.f32.mrf.mxu2 }
 0x132   : > { %v364_v60 = vpop.f32.mrf.mxu3  ;;  %v422_v63 = vpop.f32.mrf.mxu0 }
 0x133   : > { %v437_v0 = vpop.f32.mrf.mxu1  ;;  %v2421_v1 = vadd.f32 %v422_v63, %v271_v29 }
 0x135   : > { %1991 = vmatmul.msk.bf16.vlgmr.msra.gmra.mxu0 %vm233_vm2, %v1990_v53 }
 0x136   : > { %1993 = vmatmul.msk.bf16.vlgmr.msra.gmra.mxu2 %vm233_vm2, %v1990_v53  ;;  %1252 = vmatpush.bf16.msra.mxu0 %v1222_v5 }
 0x137   : > { %1994 = vmatmul.msk.bf16.vlgmr.msra.gmra.mxu3 %vm233_vm2, %v1990_v53  ;;  %1278 = vmatpush.bf16.msra.mxu2 %v1228_v2 }
 0x138   : > { %1291 = vmatpush.bf16.msra.mxu3 %v1231_v4 }
 0x139   : > { %v448_v10 = vpop.f32.mrf.mxu2 }
 0x13a   : > { %v2431_v12 = vadd.f32 %v448_v10, %v2386_v33  ;;  %v461_v16 = vpop.f32.mrf.mxu3  ;;  %v424_v19 = vpop.f32.mrf.mxu0 }
 0x13b   : > { %v2434_v18 = vadd.f32 %v461_v16, %v2389_v8  ;;  %v487_v23 = vpop.f32.mrf.mxu1  ;;  %v1368_v33 = vpop.permute.xlu2 %1367  ;;  %v1243_v8 = vsel %vm237_vm1, %v1217_v7, 0 }
 0x13c   : > { %v2437_v24 = vadd.f32 %v487_v23, %v2391_v35  ;;  %v1381_v47 = vsel %vm1377_vm8, %v1366_v26, %v1368_v33 }
 0x13d   : > { %1996 = vmatmul.msk.bf16.vlgmr.msrb.gmra.mxu1 %vm233_vm2, %v1990_v53 }
 0x13e   : > { %1317 = vmatpush.bf16.msrb.mxu1 %v1237_v25  ;;  %v1532_v25 = vpop.permute.xlu0 %1531 }
 0x141   : > { %v450_v27 = vpop.f32.mrf.mxu2 }
 0x142   : > { %v463_v29 = vpop.f32.mrf.mxu3  ;;  %v474_v6 = vpop.f32.mrf.mxu0 }
 0x143   : > { %v489_v13 = vpop.f32.mrf.mxu1  ;;  %v2445_v31 = vadd.f32 %v474_v6, %v2398_v40  ;;  %v1372_v42 = vpop.permute.xlu2 %1371 }
 0x144   : > { %v1384_v10 = vsel %vm1377_vm8, %v1372_v42, %v1374_v61 }
 0x145   : > { %1995 = vmatmul.msk.bf16.vlgmr.msrb.gmra.mxu0 %vm233_vm2, %v1990_v53  ;;  %v1408_v23 = vsel %vm237_vm1, %v1384_v10, 0 }
 0x146   : > { %1997 = vmatmul.msk.bf16.vlgmr.msrb.gmra.mxu2 %vm233_vm2, %v1990_v53  ;;  %1304 = vmatpush.bf16.msrb.mxu0 %v1234_v32 }
 0x147   : > { %1998 = vmatmul.msk.bf16.vlgmr.msrb.gmra.mxu3 %vm233_vm2, %v1990_v53  ;;  %1330 = vmatpush.bf16.msrb.mxu2 %v1240_v34  ;;  %v1376_v53 = vpop.permute.xlu1 %1375 }
 0x148   : > { %1343 = vmatpush.bf16.msrb.mxu3 %v1243_v8  ;;  %v1385_v11 = vsel %vm1377_vm8, %v1374_v61, %v1376_v53  ;;  %v1528_v8 = vpop.permute.xlu0 %1527 }
 0x149   : > { %v500_v35 = vpop.f32.mrf.mxu2 }
 0x14a   : > { %v2455_v37 = vadd.f32 %v500_v35, %v2406_v48  ;;  %v513_v20 = vpop.f32.mrf.mxu3  ;;  %v476_v38 = vpop.f32.mrf.mxu0  ;;  %v1378_v48 = vsel %vm1377_vm8, %v1360_v43, %v1362_v15 }
 0x14b   : > { %v2458_v21 = vadd.f32 %v513_v20, %v2409_v50  ;;  %v595_v22 = vpop.f32.mrf.mxu1  ;;  %v1390_v55 = vsel %vm237_vm1, %v1378_v48, 0  ;;  %v1370_v56 = vpop.permute.xlu2 %1369 }
 0x14c   : > { %v2464_v40 = vadd.f32 %v595_v22, %v2414_v54  ;;  %v1399_v54 = vsel %vm237_vm1, %v1381_v47, 0  ;;  %v1383_v58 = vsel %vm1377_vm8, %v1370_v56, %v1372_v42  ;;  %v1382_v5 = vsel %vm1377_vm8, %v1368_v33, %v1370_v56 }
 0x14d   : > { %2001 = vmatmul.msk.bf16.vlgmr.msra.gmra.mxu1 %vm233_vm2, %v1999_v39  ;;  %v1405_v2 = vsel %vm237_vm1, %v1383_v58, 0 }
 0x14e   : > { %1433 = vmatpush.bf16.msra.mxu1 %v1393_v41 }
 0x14f   : > { %v1534_v3 = vpop.permute.xlu1 %1533 }
 0x150   : > { %v1548_v15 = vsel %vm1545_vm9, %v1532_v25, %v1534_v3  ;;  %v1542_v53 = vpop.permute.xlu0 %1541 }
 0x151   : > { %v502_v44 = vpop.f32.mrf.mxu2  ;;  %v1564_v22 = vsel %vm237_vm1, %v1548_v15, 0 }
 0x152   : > { %v515_v46 = vpop.f32.mrf.mxu3  ;;  %v582_v49 = vpop.f32.mrf.mxu0 }
 0x153   : > { %v597_v50 = vpop.f32.mrf.mxu1  ;;  %v2472_v51 = vadd.f32 %v582_v49, %v2421_v1  ;;  %v2499_v19 = vpop.permute.xlu2 %1535  ;;  %v2103_v49 = vmov 0  }
 0x154   : > { %v1549_v36 = vsel %vm1545_vm9, %v1534_v3, %v2499_v19  ;;  %2054 = vset.pattern.permute.xlu0 %v2103_v49  ;;  %v1693_v50 = vld [vmem:[%s2644_s1] sm:$0xff] }
 0x155   : > { %2000 = vmatmul.msk.bf16.vlgmr.msra.gmra.mxu0 %vm233_vm2, %v1999_v39  ;;  %1696 = vperm.xlu0 %2054, %v1693_v50  }
 0x156   : > { %2002 = vmatmul.msk.bf16.vlgmr.msra.gmra.mxu2 %vm233_vm2, %v1999_v39  ;;  %1420 = vmatpush.bf16.msra.mxu0 %v1390_v55 }
 0x157   : > { %2003 = vmatmul.msk.bf16.vlgmr.msra.gmra.mxu3 %vm233_vm2, %v1999_v39  ;;  %1446 = vmatpush.bf16.msra.mxu2 %v1396_v52  ;;  %v1530_v26 = vpop.permute.xlu1 %1529 }
 0x158   : > { %1459 = vmatpush.bf16.msra.mxu3 %v1399_v54  ;;  %v1547_v28 = vsel %vm1545_vm9, %v1530_v26, %v1532_v25 }
 0x159   : > { %v608_v57 = vpop.f32.mrf.mxu2  ;;  %v1561_v33 = vsel %vm237_vm1, %v1547_v28, 0 }
 0x15a   : > { %v2482_v59 = vadd.f32 %v608_v57, %v2431_v12  ;;  %v621_v60 = vpop.f32.mrf.mxu3  ;;  %v584_v63 = vpop.f32.mrf.mxu0 }
 0x15b   : > { %v2485_v62 = vadd.f32 %v621_v60, %v2434_v18  ;;  %v647_v0 = vpop.f32.mrf.mxu1  ;;  %v1402_v18 = vsel %vm237_vm1, %v1382_v5, 0  ;;  %v1540_v34 = vpop.permute.xlu2 %1539 }
 0x15c   : > { %v2488_v1 = vadd.f32 %v647_v0, %v2437_v24  ;;  %v1411_v24 = vsel %vm237_vm1, %v1385_v11, 0  ;;  %v1552_v58 = vsel %vm1545_vm9, %v1540_v34, %v1542_v53  ;;  %v2017_v11 = vld [vmem:[%s2643_s0 + $0x20] sm:$0xf] }
 0x15d   : > { %2005 = vmatmul.msk.bf16.vlgmr.msrb.gmra.mxu1 %vm233_vm2, %v1999_v39  ;;  %v1576_v0 = vsel %vm237_vm1, %v1552_v58, 0 }
 0x15e   : > { %1485 = vmatpush.bf16.msrb.mxu1 %v1405_v2 }
 0x15f   : > { %v1544_v54 = vpop.permute.xlu1 %1543 }
 0x161   : > { %v610_v4 = vpop.f32.mrf.mxu2 }
 0x162   : > { %v623_v9 = vpop.f32.mrf.mxu3  ;;  %v634_v12 = vpop.f32.mrf.mxu0 }
 0x163   : > { %v649_v16 = vpop.f32.mrf.mxu1  ;;  %v2496_v17 = vadd.f32 %v634_v12, %v2445_v31  ;;  %v2008_v31 = vld [vmem:[%s2643_s0 + $0x1c] sm:$0xf]  ;;  %v1538_v41 = vpop.permute.xlu2 %1537 }
 0x164   : > { %v1551_v43 = vsel %vm1545_vm9, %v1538_v41, %v1540_v34  ;;  %v1550_v56 = vsel %vm1545_vm9, %v2499_v19, %v1538_v41 }
 0x165   : > { %2004 = vmatmul.msk.bf16.vlgmr.msrb.gmra.mxu0 %vm233_vm2, %v1999_v39  ;;  %v1573_v52 = vsel %vm237_vm1, %v1551_v43, 0  ;;  %v1570_v63 = vsel %vm237_vm1, %v1550_v56, 0 }
 0x166   : > { %2006 = vmatmul.msk.bf16.vlgmr.msrb.gmra.mxu2 %vm233_vm2, %v1999_v39  ;;  %1472 = vmatpush.bf16.msrb.mxu0 %v1402_v18 }
 0x167   : > { %2007 = vmatmul.msk.bf16.vlgmr.msrb.gmra.mxu3 %vm233_vm2, %v1999_v39  ;;  %1498 = vmatpush.bf16.msrb.mxu2 %v1408_v23  ;;  %v1567_v39 = vsel %vm237_vm1, %v1549_v36, 0 }
 0x168   : > { %1511 = vmatpush.bf16.msrb.mxu3 %v1411_v24 }
 0x169   : > { %v660_v27 = vpop.f32.mrf.mxu2 }
 0x16a   : > { %v2508_v29 = vadd.f32 %v660_v27, %v2455_v37  ;;  %v673_v30 = vpop.f32.mrf.mxu3  ;;  %v636_v6 = vpop.f32.mrf.mxu0  ;;  %v1546_v37 = vsel %vm1545_vm9, %v1528_v8, %v1530_v26 }
 0x16b   : > { %v2511_v7 = vadd.f32 %v673_v30, %v2458_v21  ;;  %v763_v13 = vpop.f32.mrf.mxu1 }
 0x16c   : > { %v2517_v32 = vadd.f32 %v763_v13, %v2464_v40  ;;  %v1558_v40 = vsel %vm237_vm1, %v1546_v37, 0 }
 0x16d   : > { %2010 = vmatmul.msk.bf16.vlgmr.msra.gmra.mxu1 %vm233_vm2, %v2008_v31 }
 0x16e   : > { %1601 = vmatpush.bf16.msra.mxu1 %v1561_v33 }
 0x171   : > { %v662_v14 = vpop.f32.mrf.mxu2 }
 0x172   : > { %v675_v35 = vpop.f32.mrf.mxu3  ;;  %v750_v20 = vpop.f32.mrf.mxu0 }
 0x173   : > { %v765_v21 = vpop.f32.mrf.mxu1  ;;  %v845_v38 = vadd.f32 %v750_v20, %v2472_v51 }
 0x175   : > { %2009 = vmatmul.msk.bf16.vlgmr.msra.gmra.mxu0 %vm233_vm2, %v2008_v31 }
 0x176   : > { %2011 = vmatmul.msk.bf16.vlgmr.msra.gmra.mxu2 %vm233_vm2, %v2008_v31  ;;  %1588 = vmatpush.bf16.msra.mxu0 %v1558_v40 }
 0x177   : > { %2012 = vmatmul.msk.bf16.vlgmr.msra.gmra.mxu3 %vm233_vm2, %v2008_v31  ;;  %1614 = vmatpush.bf16.msra.mxu2 %v1564_v22 }
 0x178   : > { %1627 = vmatpush.bf16.msra.mxu3 %v1567_v39 }
 0x179   : > { %v776_v42 = vpop.f32.mrf.mxu2 }
 0x17a   : > { %v847_v44 = vadd.f32 %v776_v42, %v2482_v59  ;;  %v789_v45 = vpop.f32.mrf.mxu3  ;;  %v752_v47 = vpop.f32.mrf.mxu0  ;;  %v1553_v59 = vsel %vm1545_vm9, %v1542_v53, %v1544_v54 }
 0x17b   : > { %v848_v46 = vadd.f32 %v789_v45, %v2485_v62  ;;  %v815_v48 = vpop.f32.mrf.mxu1 }
 0x17c   : > { %v850_v51 = vadd.f32 %v815_v48, %v2488_v1  ;;  %v1579_v1 = vsel %vm237_vm1, %v1553_v59, 0 }
 0x17d   : > { %2014 = vmatmul.msk.bf16.vlgmr.msrb.gmra.mxu1 %vm233_vm2, %v2008_v31 }
 0x17e   : > { %1653 = vmatpush.bf16.msrb.mxu1 %v1573_v52 }
 0x181   : > { %v778_v55 = vpop.f32.mrf.mxu2 }
 0x182   : > { %v791_v57 = vpop.f32.mrf.mxu3  ;;  %v802_v60 = vpop.f32.mrf.mxu0 }
 0x183   : > { %v817_v61 = vpop.f32.mrf.mxu1  ;;  %v849_v62 = vadd.f32 %v802_v60, %v2496_v17 }
 0x185   : > { %2013 = vmatmul.msk.bf16.vlgmr.msrb.gmra.mxu0 %vm233_vm2, %v2008_v31 }
 0x186   : > { %2015 = vmatmul.msk.bf16.vlgmr.msrb.gmra.mxu2 %vm233_vm2, %v2008_v31  ;;  %1640 = vmatpush.bf16.msrb.mxu0 %v1570_v63 }
 0x187   : > { %2016 = vmatmul.msk.bf16.vlgmr.msrb.gmra.mxu3 %vm233_vm2, %v2008_v31  ;;  %1666 = vmatpush.bf16.msrb.mxu2 %v1576_v0 }
 0x188   : > { %1679 = vmatpush.bf16.msrb.mxu3 %v1579_v1 }
 0x189   : > { %v828_v2 = vpop.f32.mrf.mxu2 }
 0x18a   : > { %v851_v3 = vadd.f32 %v828_v2, %v2508_v29  ;;  %v841_v4 = vpop.f32.mrf.mxu3  ;;  %v804_v9 = vpop.f32.mrf.mxu0 }
 0x18b   : > { %v852_v5 = vadd.f32 %v841_v4, %v2511_v7  ;;  %v931_v10 = vpop.f32.mrf.mxu1 }
 0x18c   : > { %v1014_v12 = vadd.f32 %v931_v10, %v2517_v32 }
 0x18d   : > { %2019 = vmatmul.msk.bf16.vlgmr.msra.gmra.mxu1 %vm233_vm2, %v2017_v11 }
 0x191   : > { %v830_v16 = vpop.f32.mrf.mxu2 }
 0x192   : > { %v843_v17 = vpop.f32.mrf.mxu3  ;;  %v918_v18 = vpop.f32.mrf.mxu0 }
 0x193   : > { %v933_v19 = vpop.f32.mrf.mxu1  ;;  %v1013_v23 = vadd.f32 %v918_v18, %v845_v38 }
 0x195   : > { %2018 = vmatmul.msk.bf16.vlgmr.msra.gmra.mxu0 %vm233_vm2, %v2017_v11 }
 0x196   : > { %2020 = vmatmul.msk.bf16.vlgmr.msra.gmra.mxu2 %vm233_vm2, %v2017_v11 }
 0x197   : > { %2021 = vmatmul.msk.bf16.vlgmr.msra.gmra.mxu3 %vm233_vm2, %v2017_v11 }
 0x199   : > { %v944_v24 = vpop.f32.mrf.mxu2 }
 0x19a   : > { %v1015_v25 = vadd.f32 %v944_v24, %v847_v44  ;;  %v957_v26 = vpop.f32.mrf.mxu3  ;;  %v920_v28 = vpop.f32.mrf.mxu0 }
 0x19b   : > { %v1016_v27 = vadd.f32 %v957_v26, %v848_v46  ;;  %v983_v29 = vpop.f32.mrf.mxu1 }
 0x19c   : > { %v1018_v30 = vadd.f32 %v983_v29, %v850_v51 }
 0x19d   : > { %2023 = vmatmul.msk.bf16.vlgmr.msrb.gmra.mxu1 %vm233_vm2, %v2017_v11 }
 0x1a1   : > { %v946_v7 = vpop.f32.mrf.mxu2 }
 0x1a2   : > { %v959_v6 = vpop.f32.mrf.mxu3  ;;  %v970_v13 = vpop.f32.mrf.mxu0 }
 0x1a3   : > { %v985_v31 = vpop.f32.mrf.mxu1  ;;  %v1017_v32 = vadd.f32 %v970_v13, %v849_v62 }
 0x1a5   : > { %2022 = vmatmul.msk.bf16.vlgmr.msrb.gmra.mxu0 %vm233_vm2, %v2017_v11 }
 0x1a6   : > { %2024 = vmatmul.msk.bf16.vlgmr.msrb.gmra.mxu2 %vm233_vm2, %v2017_v11 }
 0x1a7   : > { %2025 = vmatmul.msk.bf16.vlgmr.msrb.gmra.mxu3 %vm233_vm2, %v2017_v11 }
 0x1a9   : > { %v996_v33 = vpop.f32.mrf.mxu2 }
 0x1aa   : > { %v1019_v34 = vadd.f32 %v996_v33, %v851_v3  ;;  %v1009_v8 = vpop.f32.mrf.mxu3  ;;  %v972_v15 = vpop.f32.mrf.mxu0 }
 0x1ab   : > { %v1020_v14 = vadd.f32 %v1009_v8, %v852_v5  ;;  %v1099_v35 = vpop.f32.mrf.mxu1 }
 0x1ac   : > { %v1182_v36 = vadd.f32 %v1099_v35, %v1014_v12 }
 0x1b1   : > { %v998_v37 = vpop.f32.mrf.mxu2 }
 0x1b2   : > { %v1011_v20 = vpop.f32.mrf.mxu3  ;;  %v1086_v21 = vpop.f32.mrf.mxu0 }
 0x1b3   : > { %v1101_v38 = vpop.f32.mrf.mxu1  ;;  %v1181_v22 = vadd.f32 %v1086_v21, %v1013_v23 }
 0x1b9   : > { %v1112_v39 = vpop.f32.mrf.mxu2 }
 0x1ba   : > { %v1183_v40 = vadd.f32 %v1112_v39, %v1015_v25  ;;  %v1125_v41 = vpop.f32.mrf.mxu3  ;;  %v1088_v43 = vpop.f32.mrf.mxu0 }
 0x1bb   : > { %v1184_v42 = vadd.f32 %v1125_v41, %v1016_v27  ;;  %v1151_v44 = vpop.f32.mrf.mxu1 }
 0x1bc   : > { %v1186_v45 = vadd.f32 %v1151_v44, %v1018_v30 }
 0x1c1   : > { %v1114_v46 = vpop.f32.mrf.mxu2 }
 0x1c2   : > { %v1127_v47 = vpop.f32.mrf.mxu3  ;;  %v1138_v48 = vpop.f32.mrf.mxu0 }
 0x1c3   : > { %v1153_v49 = vpop.f32.mrf.mxu1  ;;  %v1185_v50 = vadd.f32 %v1138_v48, %v1017_v32 }
 0x1c7   : > { %v2574_v35 = vpop.permute.xlu0 %1696 }
 0x1c9   : > { %v1164_v51 = vpop.f32.mrf.mxu2 }
 0x1ca   : > { %v1187_v52 = vadd.f32 %v1164_v51, %v1019_v34  ;;  %v1177_v53 = vpop.f32.mrf.mxu3  ;;  %v1140_v55 = vpop.f32.mrf.mxu0 }
 0x1cb   : > { %v1188_v54 = vadd.f32 %v1177_v53, %v1020_v14  ;;  %v1267_v56 = vpop.f32.mrf.mxu1 }
 0x1cc   : > { %v1350_v57 = vadd.f32 %v1267_v56, %v1182_v36 }
 0x1d1   : > { %v1166_v58 = vpop.f32.mrf.mxu2 }
 0x1d2   : > { %v1179_v59 = vpop.f32.mrf.mxu3  ;;  %v1254_v60 = vpop.f32.mrf.mxu0 }
 0x1d3   : > { %v1269_v61 = vpop.f32.mrf.mxu1  ;;  %v1349_v62 = vadd.f32 %v1254_v60, %v1181_v22 }
 0x1d9   : > { %v1280_v63 = vpop.f32.mrf.mxu2 }
 0x1da   : > { %v1351_v0 = vadd.f32 %v1280_v63, %v1183_v40  ;;  %v1293_v1 = vpop.f32.mrf.mxu3  ;;  %v1256_v3 = vpop.f32.mrf.mxu0 }
 0x1db   : > { %v1352_v2 = vadd.f32 %v1293_v1, %v1184_v42  ;;  %v1319_v4 = vpop.f32.mrf.mxu1 }
 0x1dc   : > { %v1354_v5 = vadd.f32 %v1319_v4, %v1186_v45 }
 0x1e1   : > { %v1282_v9 = vpop.f32.mrf.mxu2 }
 0x1e2   : > { %v1295_v10 = vpop.f32.mrf.mxu3  ;;  %v1306_v11 = vpop.f32.mrf.mxu0 }
 0x1e3   : > { %v1321_v12 = vpop.f32.mrf.mxu1  ;;  %v1353_v16 = vadd.f32 %v1306_v11, %v1185_v50 }
 0x1e9   : > { %v1332_v17 = vpop.f32.mrf.mxu2 }
 0x1ea   : > { %v2566_v18 = vadd.f32 %v1332_v17, %v1187_v52  ;;  %v1345_v19 = vpop.f32.mrf.mxu3  ;;  %v1308_v24 = vpop.f32.mrf.mxu0 }
 0x1eb   : > { %v2568_v23 = vadd.f32 %v1345_v19, %v1188_v54  ;;  %v1435_v25 = vpop.f32.mrf.mxu1 }
 0x1ec   : > { %v1518_v26 = vadd.f32 %v1435_v25, %v1350_v57 }
 0x1f1   : > { %v1334_v27 = vpop.f32.mrf.mxu2 }
 0x1f2   : > { %v1347_v28 = vpop.f32.mrf.mxu3  ;;  %v1422_v29 = vpop.f32.mrf.mxu0 }
 0x1f3   : > { %v1437_v30 = vpop.f32.mrf.mxu1  ;;  %v1517_v39 = vadd.f32 %v1422_v29, %v1349_v62 }
 0x1f9   : > { %v1448_v7 = vpop.f32.mrf.mxu2 }
 0x1fa   : > { %v1461_v6 = vpop.f32.mrf.mxu3  ;;  %v1424_v13 = vpop.f32.mrf.mxu0  ;;  %v1519_v46 = vadd.f32 %v1448_v7, %v1351_v0 }
 0x1fb   : > { %v1487_v31 = vpop.f32.mrf.mxu1  ;;  %v1520_v50 = vadd.f32 %v1461_v6, %v1352_v2 }
 0x1fc   : > { %v1522_v51 = vadd.f32 %v1487_v31, %v1354_v5 }
 0x201   : > { %v1450_v32 = vpop.f32.mrf.mxu2 }
 0x202   : > { %v1463_v33 = vpop.f32.mrf.mxu3  ;;  %v1474_v34 = vpop.f32.mrf.mxu0 }
 0x203   : > { %v1489_v8 = vpop.f32.mrf.mxu1  ;;  %v1521_v4 = vadd.f32 %v1474_v34, %v1353_v16 }
 0x209   : > { %v2570_v14 = vpop.f32.mrf.mxu2 }
 0x20a   : > { %v2572_v15 = vpop.f32.mrf.mxu3  ;;  %v1476_v36 = vpop.f32.mrf.mxu0  ;;  %v1523_v34 = vadd.f32 %v2570_v14, %v2566_v18 }
 0x20b   : > { %v1603_v37 = vpop.f32.mrf.mxu1 }
 0x20c   : > { %v1686_v20 = vadd.f32 %v1603_v37, %v1518_v26 }
 0x20e   : > { %v1700_v21 = vadd.f32 %v2574_v35, %v1686_v20 }
 0x210   : > { %v2027_v38 = vmul.f32 -1.442695, %v1700_v21 }
 0x211   : > { %v1502_v22 = vpop.f32.mrf.mxu2 }
 0x212   : > { %2055 = vpow2.f32 %v2027_v38  ;;  %v1515_v40 = vpop.f32.mrf.mxu3  ;;  %v1590_v41 = vpop.f32.mrf.mxu0  ;;  %v1524_v22 = vadd.f32 %v2572_v15, %v2568_v23 }
 0x213   : > { %v1605_v42 = vpop.f32.mrf.mxu1  ;;  %v1685_v43 = vadd.f32 %v1590_v41, %v1517_v39 }
 0x215   : > { %v1699_v44 = vadd.f32 %v2574_v35, %v1685_v43 }
 0x217   : > { %v2026_v47 = vmul.f32 -1.442695, %v1699_v44 }
 0x218   : > { %v2056_v45 = vpop.eup %2055 }
 0x219   : > { %v2578_v48 = vadd.f32 1.0, %v2056_v45  ;;  %v1616_v49 = vpop.f32.mrf.mxu2  ;;  %2057 = vpow2.f32 %v2026_v47 }
 0x21a   : > { %v1687_v52 = vadd.f32 %v1616_v49, %v1519_v46  ;;  %v1629_v53 = vpop.f32.mrf.mxu3  ;;  %v1592_v54 = vpop.f32.mrf.mxu0 }
 0x21b   : > { %2059 = vrcp.f32 %v2578_v48  ;;  %v1655_v55 = vpop.f32.mrf.mxu1  ;;  %v1688_v57 = vadd.f32 %v1629_v53, %v1520_v50  ;;  %vm1759_vm11 = vweird.f32 %v2578_v48  ;;  %v1765_v29 = vand.u32 2147483648, %v2578_v48 }
 0x21c   : > { %v1701_v56 = vadd.f32 %v2574_v35, %v1687_v52  ;;  %v1690_v58 = vadd.f32 %v1655_v55, %v1522_v51  ;;  %v1763_v13 = vand.u32 2147483647, %v2578_v48 }
 0x21d   : > { %v1702_v60 = vadd.f32 %v2574_v35, %v1688_v57  ;;  %v1766_v39 = vor.u32 1.1754944e-38, %v1765_v29 }
 0x21e   : > { %v2028_v59 = vmul.f32 -1.442695, %v1701_v56  ;;  %v1704_v61 = vadd.f32 %v2574_v35, %v1690_v58  ;;  %vm1764_vm14 = vcmp.eq.f32.partialorder %v1763_v13, 8.507059e+37 }
 0x21f   : > { %v2058_v62 = vpop.eup %2057  ;;  %v2029_v63 = vmul.f32 -1.442695, %v1702_v60 }
 0x220   : > { %2061 = vpow2.f32 %v2028_v59  ;;  %v2031_v0 = vmul.f32 -1.442695, %v1704_v61  ;;  %v1731_v2 = vadd.f32 1.0, %v2058_v62 }
 0x221   : > { %v2060_v1 = vpop.eup %2059  ;;  %v1618_v3 = vpop.f32.mrf.mxu2  ;;  %2063 = vpow2.f32 %v2029_v63 }
 0x222   : > { %v1755_v5 = vmul.f32 %v2060_v1, %v2578_v48  ;;  %v1631_v9 = vpop.f32.mrf.mxu3  ;;  %2065 = vrcp.f32 %v1731_v2  ;;  %v1642_v10 = vpop.f32.mrf.mxu0  ;;  %vm1760_vm10 = vweird.f32 %v2060_v1  ;;  %v1748_v21 = vand.u32 2147483647, %v1731_v2 }
 0x223   : > { %v1657_v11 = vpop.f32.mrf.mxu1  ;;  %2067 = vpow2.f32 %v2031_v0  ;;  %v1689_v17 = vadd.f32 %v1642_v10, %v1521_v4  ;;  %vm2596_vm12 = vmor %vm1759_vm11, %vm1760_vm10  ;;  %v1750_v40 = vand.u32 2147483648, %v1731_v2  ;;  %vm1744_vm0 = vweird.f32 %v1731_v2 }
 0x224   : > { %v1756_v12 = vsub.f32 1.0, %v1755_v5  ;;  %vm1749_vm2 = vcmp.eq.f32.partialorder %v1748_v21, 8.507059e+37 }
 0x225   : > { %v1703_v25 = vadd.f32 %v2574_v35, %v1689_v17  ;;  %v1751_v23 = vor.u32 1.1754944e-38, %v1750_v40 }
 0x226   : > { %v2062_v19 = vpop.eup %2061  ;;  %v1757_v24 = vmul.f32 %v2060_v1, %v1756_v12 }
 0x227   : > { %v2586_v26 = vadd.f32 1.0, %v2062_v19  ;;  %v2064_v27 = vpop.eup %2063  ;;  %v2030_v32 = vmul.f32 -1.442695, %v1703_v25 }
 0x228   : > { %v1758_v28 = vadd.f32 %v2060_v1, %v1757_v24  ;;  %v2066_v16 = vpop.eup %2065  ;;  %v2592_v31 = vadd.f32 1.0, %v2064_v27 }
 0x229   : > { %2069 = vrcp.f32 %v2586_v26  ;;  %v1668_v30 = vpop.f32.mrf.mxu2  ;;  %v2068_v7 = vpop.eup %2067  ;;  %v1740_v6 = vmul.f32 %v2066_v16, %v1731_v2  ;;  %vm1745_vm13 = vweird.f32 %v2066_v16  ;;  %vm1774_vm4 = vweird.f32 %v2586_v26 }
 0x22a   : > { %v1681_v33 = vpop.f32.mrf.mxu3  ;;  %v2600_v36 = vadd.f32 1.0, %v2068_v7  ;;  %v1644_v37 = vpop.f32.mrf.mxu0  ;;  %v1762_v38 = vsel %vm2596_vm12, %v2060_v1, %v1758_v28  ;;  %2071 = vrcp.f32 %v2592_v31  ;;  %v1691_v42 = vadd.f32 %v1668_v30, %v1523_v34  ;;  %vm1746_vm3 = vmor %vm1744_vm0, %vm1745_vm13 }
 0x22b   : > { %v1741_v20 = vsub.f32 1.0, %v1740_v6  ;;  %v1767_v41 = vsel %vm1764_vm14, %v1766_v39, %v1762_v38  ;;  %v1692_v43 = vadd.f32 %v1681_v33, %v1524_v22  ;;  %v1780_v52 = vand.u32 2147483648, %v2586_v26 }
 0x22c   : > { %2073 = vrcp.f32 %v2600_v36  ;;  %v1705_v15 = vadd.f32 %v2574_v35, %v1691_v42  ;;  %v1867_v50 = vrot.slane %v1767_v41, 7  ;;  %v1778_v56 = vand.u32 2147483647, %v2586_v26 }
 0x22d   : > { %v1742_v18 = vmul.f32 %v2066_v16, %v1741_v20  ;;  %2075 = vpow2.f32 %v2030_v32  ;;  %v1706_v46 = vadd.f32 %v2574_v35, %v1692_v43  ;;  %v1781_v2 = vor.u32 1.1754944e-38, %v1780_v52 }
 0x22e   : > { %v2032_v58 = vmul.f32 -1.442695, %v1705_v15  ;;  %v1795_v3 = vand.u32 2147483648, %v2592_v31  ;;  %v1793_v9 = vand.u32 2147483647, %v2592_v31  ;;  %vm1779_vm8 = vcmp.eq.f32.partialorder %v1778_v56, 8.507059e+37 }
 0x22f   : > { %v2070_v14 = vpop.eup %2069  ;;  %v1743_v44 = vadd.f32 %v2066_v16, %v1742_v18  ;;  %v2033_v0 = vmul.f32 -1.442695, %v1706_v46  ;;  %vm1789_vm9 = vweird.f32 %v2592_v31  ;;  %vm1876_vm12 = vcmask 1042434  }
 0x230   : > { %v1770_v45 = vmul.f32 %v2070_v14, %v2586_v26  ;;  %v2072_v48 = vpop.eup %2071  ;;  %vm1775_vm5 = vweird.f32 %v2070_v14  ;;  %2077 = vpow2.f32 %v2032_v58  ;;  %v1796_v17 = vor.u32 1.1754944e-38, %v1795_v3 }
 0x231   : > { %v1670_v47 = vpop.f32.mrf.mxu2  ;;  %v1747_v49 = vsel %vm1746_vm3, %v2066_v16, %v1743_v44  ;;  %v1785_v57 = vmul.f32 %v2072_v48, %v2592_v31  ;;  %vm1776_vm6 = vmor %vm1774_vm4, %vm1775_vm5  ;;  %vm1790_vm7 = vweird.f32 %v2072_v48  ;;  %vm1794_vm11 = vcmp.eq.f32.partialorder %v1793_v9, 8.507059e+37 }
 0x232   : > { %v1771_v51 = vsub.f32 1.0, %v1770_v45  ;;  %v1683_v53 = vpop.f32.mrf.mxu3  ;;  %v2613_v54 = vpop.eup %2073  ;;  %v1752_v55 = vsel %vm1749_vm2, %v1751_v23, %v1747_v49  ;;  %vm1791_vm10 = vmor %vm1789_vm9, %vm1790_vm7  ;;  %vm1878_vm13 = vcmask 1041408   ;;  %v1825_v31 = vand.u32 2147483648, %v2600_v36 }
 0x233   : > { %v2076_v59 = vpop.eup %2075  ;;  %v1875_v60 = vsel %vm1874_vm15, %v1752_v55, %v1867_v50  ;;  %v1815_v61 = vmul.f32 %v2613_v54, %v2600_v36  ;;  %v1786_v62 = vsub.f32 1.0, %v1785_v57  ;;  %vm1820_vm14 = vweird.f32 %v2613_v54 }
 0x234   : > { %v1772_v35 = vmul.f32 %v2070_v14, %v1771_v51  ;;  %v1735_v63 = vadd.f32 1.0, %v2076_v59  ;;  %vm1819_vm15 = vweird.f32 %v2600_v36  ;;  %v1823_v33 = vand.u32 2147483647, %v2600_v36 }
 0x235   : > { %v1816_v4 = vsub.f32 1.0, %v1815_v61  ;;  %v1787_v5 = vmul.f32 %v2072_v48, %v1786_v62  ;;  %vm1821_vm0 = vmor %vm1819_vm15, %vm1820_vm14  ;;  %v1826_v22 = vor.u32 1.1754944e-38, %v1825_v31  ;;  %vm1880_vm7 = vcmask 1044484  }
 0x236   : > { %v1773_v1 = vadd.f32 %v2070_v14, %v1772_v35  ;;  %2079 = vrcp.f32 %v1735_v63  ;;  %v2078_v24 = vpop.eup %2077  ;;  %v1808_v37 = vand.u32 2147483647, %v1735_v63  ;;  %v1810_v20 = vand.u32 2147483648, %v1735_v63 }
 0x237   : > { %2081 = vpow2.f32 %v2033_v0  ;;  %v1788_v12 = vadd.f32 %v2072_v48, %v1787_v5  ;;  %v1817_v19 = vmul.f32 %v2613_v54, %v1816_v4  ;;  %v1737_v28 = vadd.f32 1.0, %v2078_v24 }
 0x238   : > { %v1777_v10 = vsel %vm1776_vm6, %v2070_v14, %v1773_v1  ;;  %vm1824_vm3 = vcmp.eq.f32.partialorder %v1823_v33, 8.507059e+37  ;;  %vm1804_vm4 = vweird.f32 %v1735_v63  ;;  %v1811_v14 = vor.u32 1.1754944e-38, %v1810_v20 }
 0x239   : > { %v1782_v11 = vsel %vm1779_vm8, %v1781_v2, %v1777_v10  ;;  %v1792_v26 = vsel %vm1791_vm10, %v2072_v48, %v1788_v12  ;;  %v1818_v7 = vadd.f32 %v2613_v54, %v1817_v19  ;;  %2083 = vrcp.f32 %v1737_v28 }
 0x23a   : > { %v1868_v25 = vrot.slane %v1782_v11, 6  ;;  %v1797_v27 = vsel %vm1794_vm11, %v1796_v17, %v1792_v26  ;;  %vm1809_vm6 = vcmp.eq.f32.partialorder %v1808_v37, 8.507059e+37  ;;  %v1838_v15 = vand.u32 2147483647, %v1737_v28 }
 0x23b   : > { %v1869_v29 = vrot.slane %v1797_v27, 5  ;;  %v1822_v21 = vsel %vm1821_vm0, %v2613_v54, %v1818_v7  ;;  %v1840_v46 = vand.u32 2147483648, %v1737_v28  ;;  %vm1834_vm9 = vweird.f32 %v1737_v28 }
 0x23c   : > { %v2080_v16 = vpop.eup %2079  ;;  %v1827_v18 = vsel %vm1824_vm3, %v1826_v22, %v1822_v21  ;;  %vm1839_vm11 = vcmp.eq.f32.partialorder %v1838_v15, 8.507059e+37  ;;  %vm1882_vm0 = vcmask 1046534  }
 0x23d   : > { %v2082_v30 = vpop.eup %2081  ;;  %v1800_v6 = vmul.f32 %v2080_v16, %v1735_v63  ;;  %v1877_v13 = vsel %vm1876_vm12, %v1868_v25, %v1869_v29  ;;  %vm1805_vm2 = vweird.f32 %v2080_v16  ;;  %v1871_v45 = vrot.slane %v1827_v18, 3 }
 0x23e   : > { %v2630_v32 = vsel %vm1878_vm13, %v1875_v60, %v1877_v13  ;;  %v1738_v8 = vadd.f32 1.0, %v2082_v30  ;;  %vm1806_vm5 = vmor %vm1804_vm4, %vm1805_vm2  ;;  %v1841_v52 = vor.u32 1.1754944e-38, %v1840_v46  ;;  %vm1884_vm2 = vcmask 1045508  }
 0x23f   : > { %v1801_v34 = vsub.f32 1.0, %v1800_v6  ;;  %v2084_v39 = vpop.eup %2083 }
 0x240   : > { %2085 = vrcp.f32 %v1738_v8  ;;  %v1830_v36 = vmul.f32 %v2084_v39, %v1737_v28  ;;  %vm1835_vm8 = vweird.f32 %v2084_v39  ;;  %v1855_v53 = vand.u32 2147483648, %v1738_v8 }
 0x241   : > { %v1802_v38 = vmul.f32 %v2080_v16, %v1801_v34  ;;  %vm1836_vm10 = vmor %vm1834_vm9, %vm1835_vm8  ;;  %v1853_v56 = vand.u32 2147483647, %v1738_v8  ;;  %vm1849_vm13 = vweird.f32 %v1738_v8 }
 0x242   : > { %v1831_v43 = vsub.f32 1.0, %v1830_v36  ;;  %v1856_v59 = vor.u32 1.1754944e-38, %v1855_v53 }
 0x243   : > { %v1803_v40 = vadd.f32 %v2080_v16, %v1802_v38  ;;  %vm1854_vm15 = vcmp.eq.f32.partialorder %v1853_v56, 8.507059e+37 }
 0x244   : > { %v1832_v47 = vmul.f32 %v2084_v39, %v1831_v43 }
 0x245   : > { %v1807_v41 = vsel %vm1806_vm5, %v2080_v16, %v1803_v40 }
 0x246   : > { %v1812_v42 = vsel %vm1809_vm6, %v1811_v14, %v1807_v41  ;;  %v2086_v44 = vpop.eup %2085  ;;  %v1833_v50 = vadd.f32 %v2084_v39, %v1832_v47 }
 0x247   : > { %v1870_v23 = vrot.slane %v1812_v42, 4  ;;  %v1845_v48 = vmul.f32 %v2086_v44, %v1738_v8  ;;  %vm1850_vm12 = vweird.f32 %v2086_v44 }
 0x248   : > { %v1837_v54 = vsel %vm1836_vm10, %v2084_v39, %v1833_v50  ;;  %vm1851_vm14 = vmor %vm1849_vm13, %vm1850_vm12 }
 0x249   : > { %v1881_v49 = vsel %vm1880_vm7, %v1870_v23, %v1871_v45  ;;  %v1846_v51 = vsub.f32 1.0, %v1845_v48  ;;  %v1842_v57 = vsel %vm1839_vm11, %v1841_v52, %v1837_v54 }
 0x24a   : > { %v1872_v60 = vrot.slane %v1842_v57, 2 }
 0x24b   : > { %v1847_v55 = vmul.f32 %v2086_v44, %v1846_v51 }
 0x24d   : > { %v1848_v58 = vadd.f32 %v2086_v44, %v1847_v55 }
 0x24f   : > { %v1852_v35 = vsel %vm1851_vm14, %v2086_v44, %v1848_v58 }
 0x250   : > { %v1857_v61 = vsel %vm1854_vm15, %v1856_v59, %v1852_v35 }
 0x251   : > { %v1873_v62 = vrot.slane %v1857_v61, 1 }
 0x253   : > { %v1883_v63 = vsel %vm1882_vm0, %v1872_v60, %v1873_v62 }
 0x254   : > { %v1885_v0 = vsel %vm1884_vm2, %v1881_v49, %v1883_v63 }
 0x255   : > { %v1886_v1 = vsel %vm237_vm1, %v2630_v32, %v1885_v0 }
 0x256   : > { %1888 = vst [vmem:[%s168_s24] sm:$0xff] %v1886_v1 }
 0x257 PF: > { %s13_s12 = sadd.s32 1, %s2093_s12  }
 0x258   : > { %p10_p5 = scmp.ge.s32.totalorder %s13_s12, 4  }
 0x25a   :  { %12 = sbr.rel (!%p10_p5) target bundleno = 1 (0x1), region = 70 }

</bundles_post_ra>
